<compile_context>
chip_gen: v5e
topology: v5e:2x2
jax: 0.10.0
libtpu: 0.0.40
codegen_flags: <defaults>
</compile_context>

<pallas_src>
import math
import functools

import jax
import jax.numpy as jnp
from jax.experimental import pallas as pl
from jax.experimental.pallas import tpu as pltpu

ROW_TILE = 256       # dst-node rows per grid step
EDGE_TILE = 1024     # edge rows per grid step (online-softmax reduction axis)
LN_EPS = 1e-5
NEG_INF = -1e30      # mask sentinel (assumes |attention scores| << 1e29)

_PARAMS_1D = pltpu.CompilerParams(dimension_semantics=("parallel",))


# ----------------------------------------------------------------------------- helpers
def _ln(x, g, b):
    mu = jnp.mean(x, axis=-1, keepdims=True)
    var = jnp.mean(jnp.square(x - mu), axis=-1, keepdims=True)
    return (x - mu) * jax.lax.rsqrt(var + LN_EPS) * g + b


def _pad_rows(x, tile):
    n = x.shape[0]
    n_pad = ((n + tile - 1) // tile) * tile
    if n_pad == n:
        return x
    return jnp.concatenate([x, jnp.zeros((n_pad - n,) + x.shape[1:], x.dtype)], axis=0)


def _pad_rows_to(x, n_pad):
    n = x.shape[0]
    if n_pad == n:
        return x
    return jnp.concatenate([x, jnp.zeros((n_pad - n,) + x.shape[1:], x.dtype)], axis=0)


def wrap_angle(a):
    return (a + math.pi) % (2.0 * math.pi) - math.pi


def angle_between_2d_vectors(ctr, nbr):
    return jnp.arctan2(ctr[..., 0] * nbr[..., 1] - ctr[..., 1] * nbr[..., 0],
                       jnp.sum(ctr[..., :2] * nbr[..., :2], axis=-1))


def _fourier_features(x, freqs):
    # x [N, d_in], freqs [d_in, F]  ->  [N, d_in*(2F+1)] laid out per-dim as (cosF, sinF, x)
    n = x.shape[0]
    ph = x[:, :, None] * freqs[None, :, :] * (2.0 * math.pi)
    feat = jnp.concatenate([jnp.cos(ph), jnp.sin(ph), x[:, :, None]], axis=-1)
    return feat.reshape(n, -1)


# ----------------------------------------------------------------------------- CSR edge prep
def prepare_edges(src_idx, dst_idx, n_dst):
    """Sort edges by dst and build per-dst-row-tile edge-tile ranges (CSR at tile granularity)."""
    e = int(src_idx.shape[0])
    order = jnp.argsort(dst_idx)
    src_s = jnp.asarray(src_idx, jnp.int32)[order]
    dst_s = jnp.asarray(dst_idx, jnp.int32)[order]
    e_pad = max(((e + EDGE_TILE - 1) // EDGE_TILE) * EDGE_TILE, EDGE_TILE)
    n_dst_pad = ((n_dst + ROW_TILE - 1) // ROW_TILE) * ROW_TILE
    n_row_tiles = n_dst_pad // ROW_TILE
    src_pad = jnp.zeros((e_pad,), jnp.int32).at[:e].set(src_s)
    dst_pad = jnp.full((1, e_pad), -1, jnp.int32).at[0, :e].set(dst_s)
    bounds = jnp.arange(n_row_tiles + 1, dtype=jnp.int32) * ROW_TILE
    pos = jnp.searchsorted(dst_s, bounds)                 # edge range per row tile
    e_start, e_end = pos[:-1], pos[1:]
    t_start = (e_start // EDGE_TILE).astype(jnp.int32)
    t_end = ((e_end + EDGE_TILE - 1) // EDGE_TILE).astype(jnp.int32)
    t_count = jnp.where(e_end > e_start, t_end - t_start, 0).astype(jnp.int32)
    # TODO(synk): host sync for the static grid extent; under jit pass a static upper bound.
    max_tiles = max(int(jnp.max(t_count)), 1)
    return dict(src=src_s, dst=dst_s, src_pad=src_pad, dst_pad=dst_pad,
                tile_start=t_start, tile_count=t_count,
                max_tiles=max_tiles, e_pad=e_pad)


# ----------------------------------------------------------------------------- fourier kernel
def _fourier_kernel(feat_ref, w1_ref, b1_ref, l1w_ref, l1b_ref,
                    w2_ref, b2_ref, low_ref, lob_ref, wo_ref, bo_ref,
                    o_ref, hbuf, *, d_in, hidden):
    # single block-diagonal first matmul:  [T, d_in*(2F+1)] @ [d_in*(2F+1), d_in*H]
    h = jnp.dot(feat_ref[...], w1_ref[...], preferred_element_type=jnp.float32) + b1_ref[...]
    l1w = l1w_ref[...]
    l1b = l1b_ref[...]
    for i in range(d_in):                 # d_in <= 3, static unroll
        lo, hi = i * hidden, (i + 1) * hidden
        hbuf[:, lo:hi] = jnp.maximum(_ln(h[:, lo:hi], l1w[:, lo:hi], l1b[:, lo:hi]), 0.0)
    # one stacked second matmul == sum over per-dim MLP outputs
    acc = jnp.dot(hbuf[...], w2_ref[...], preferred_element_type=jnp.float32) + b2_ref[...]
    y = jnp.maximum(_ln(acc, low_ref[...], lob_ref[...]), 0.0)
    o_ref[...] = jnp.dot(y, wo_ref[...], preferred_element_type=jnp.float32) + bo_ref[...]


def pallas_fourier_embedding(p, x):
    n, d_in = x.shape
    hidden = p['wo'].shape[1]
    d_feat = p['w1_bd'].shape[0]
    feat = _fourier_features(x, p['freqs'])
    featp = _pad_rows(feat, ROW_TILE)
    np_ = featp.shape[0]
    kern = functools.partial(_fourier_kernel, d_in=d_in, hidden=hidden)
    full = lambda s: pl.BlockSpec(s, lambda i: (0, 0))
    out = pl.pallas_call(
        kern,
        out_shape=jax.ShapeDtypeStruct((np_, hidden), jnp.float32),
        grid=(np_ // ROW_TILE,),
        in_specs=[pl.BlockSpec((ROW_TILE, d_feat), lambda i: (i, 0)),
                  full((d_feat, d_in * hidden)), full((1, d_in * hidden)),
                  full((1, d_in * hidden)), full((1, d_in * hidden)),
                  full((d_in * hidden, hidden)), full((1, hidden)),
                  full((1, hidden)), full((1, hidden)),
                  full((hidden, hidden)), full((1, hidden))],
        out_specs=pl.BlockSpec((ROW_TILE, hidden), lambda i: (i, 0)),
        scratch_shapes=[pltpu.VMEM((ROW_TILE, d_in * hidden), jnp.float32)],
        compiler_params=_PARAMS_1D,
    )(featp, p['w1_bd'], p['b1'], p['ln1_w'], p['ln1_b'],
      p['w2'], p['b2'], p['lno_w'], p['lno_b'], p['wo'], p['bo'])
    return out[:n]


# ----------------------------------------------------------------------------- src LN + fused k|v slab
def _ln_kv_kernel(x_ref, lw_ref, lb_ref, wkv_ref, bkv_ref, kv_ref):
    xn = _ln(x_ref[...], lw_ref[...], lb_ref[...])
    kv_ref[...] = jnp.dot(xn, wkv_ref[...], preferred_element_type=jnp.float32) + bkv_ref[...]


def pallas_ln_kv(x_pad, lw, lb, wkv, bkv):
    np_, hidden = x_pad.shape
    nh2 = wkv.shape[1]
    full = lambda s: pl.BlockSpec(s, lambda i: (0, 0))
    row = lambda d: pl.BlockSpec((ROW_TILE, d), lambda i: (i, 0))
    return pl.pallas_call(
        _ln_kv_kernel,
        out_shape=jax.ShapeDtypeStruct((np_, nh2), jnp.float32),
        grid=(np_ // ROW_TILE,),
        in_specs=[row(hidden), full((1, hidden)), full((1, hidden)),
                  full((hidden, nh2)), full((1, nh2))],
        out_specs=row(nh2),
        compiler_params=_PARAMS_1D,
    )(x_pad, lw, lb, wkv, bkv)


# ----------------------------------------------------------------------------- edge LN(r) + fused k'|v' slab (bf16)
def _edge_kv_kernel(r_ref, lw_ref, lb_ref, kvj_ref, wr_ref, br_ref, kpvp_ref):
    rn = _ln(r_ref[...], lw_ref[...], lb_ref[...])
    kpvp_ref[...] = (kvj_ref[...]
                     + jnp.dot(rn, wr_ref[...], preferred_element_type=jnp.float32)
                     + br_ref[...]).astype(jnp.bfloat16)


def pallas_edge_kv(r_pad, lw, lb, kv_j_pad, wr, br):
    e_pad, hidden = r_pad.shape
    nh2 = wr.shape[1]
    full = lambda s: pl.BlockSpec(s, lambda i: (0, 0))
    row = lambda d: pl.BlockSpec((EDGE_TILE, d), lambda i: (i, 0))
    return pl.pallas_call(
        _edge_kv_kernel,
        out_shape=jax.ShapeDtypeStruct((e_pad, nh2), jnp.bfloat16),
        grid=(e_pad // EDGE_TILE,),
        in_specs=[row(hidden), full((1, hidden)), full((1, hidden)),
                  row(nh2),
                  full((hidden, nh2)), full((1, nh2))],
        out_specs=row(nh2),
        compiler_params=_PARAMS_1D,
    )(r_pad, lw, lb, kv_j_pad, wr, br)


# ----------------------------------------------------------------------------- fused dst-side attention layer
# prologue (j==0): LN(x_dst) + q projection into VMEM scratch
# body (j < tile_count[i]): flash-style online-softmax over this row tile's CSR edge range
# epilogue (j==last): softmax normalize, gate, out proj, postnorm, FFN, residuals
def _fused_attn_kernel(ts_ref, tc_ref,
                       x_ref, dst_ref, kpvp_ref,
                       ln_ref, wq_ref, bq_ref,
                       wga_ref, wgx_ref, bg_ref,
                       ws_ref, bs_ref, wo_ref, bo_ref,
                       w1_ref, b1_ref, w2_ref, b2_ref,
                       out_ref,
                       xn_sc, q_sc, m_sc, l_sc, acc_sc,
                       *, num_heads, head_dim, scale):
    i = pl.program_id(0)
    j = pl.program_id(1)
    nhhd = num_heads * head_dim

    @pl.when(j == 0)
    def _():
        lnp = ln_ref[...]
        xn = _ln(x_ref[...], lnp[0:1, :], lnp[1:2, :])
        xn_sc[...] = xn
        q = jnp.dot(xn, wq_ref[...], preferred_element_type=jnp.float32) + bq_ref[...]
        q_sc[...] = (q * scale).astype(jnp.bfloat16)     # fold scale into q, bf16 MXU operand
        m_sc[...] = jnp.full_like(m_sc, NEG_INF)
        l_sc[...] = jnp.zeros_like(l_sc)
        acc_sc[...] = jnp.zeros_like(acc_sc)

    @pl.when(j < tc_ref[i])
    def _():
        rows = i * ROW_TILE + jax.lax.broadcasted_iota(jnp.int32, (ROW_TILE, EDGE_TILE), 0)
        mask = dst_ref[...] == rows                      # [ROW_TILE, EDGE_TILE]
        bias = jnp.where(mask, 0.0, NEG_INF).astype(jnp.float32)
        qb = q_sc[...]                                   # [R, nhhd] bf16 (pre-scaled)
        kpvp = kpvp_ref[...]                             # [E_T, 2*nhhd] bf16 (k'|v')
        m_old = m_sc[...]
        l_old = l_sc[...]
        acc_old = acc_sc[...]
        new_m, new_l, new_acc = [], [], []
        for h in range(num_heads):                       # tiny static unroll
            lo, hi = h * head_dim, (h + 1) * head_dim
            s = jax.lax.dot_general(qb[:, lo:hi], kpvp[:, lo:hi],
                                    (((1,), (1,)), ((), ())),
                                    preferred_element_type=jnp.float32) + bias
            m_o = m_old[:, lo:lo + 1]
            m_n = jnp.maximum(m_o, jnp.max(s, axis=-1, keepdims=True))
            a = jnp.exp(m_o - m_n)
            p = jnp.exp(s - m_n)                         # masked lanes underflow to 0 (no inf)
            l_n = a * l_old[:, lo:lo + 1] + jnp.sum(p, axis=-1, keepdims=True)
            pv = jnp.dot(p.astype(jnp.bfloat16), kpvp[:, nhhd + lo:nhhd + hi],
                         preferred_element_type=jnp.float32)
            acc_n = a * acc_old[:, lo:hi] + pv
            new_m.append(jnp.broadcast_to(m_n, (ROW_TILE, head_dim)))
            new_l.append(jnp.broadcast_to(l_n, (ROW_TILE, head_dim)))
            new_acc.append(acc_n)
        # single full-width scratch stores (no per-head narrow masked stores)
        m_sc[...] = jnp.concatenate(new_m, axis=-1)
        l_sc[...] = jnp.concatenate(new_l, axis=-1)
        acc_sc[...] = jnp.concatenate(new_acc, axis=-1)

    @pl.when(j == pl.num_programs(1) - 1)
    def _():
        lnp = ln_ref[...]
        m = m_sc[...]
        l = l_sc[...]
        l_safe = jnp.where(l == 0.0, 1.0, l)
        agg = jnp.where(m > -1e29, acc_sc[...] / l_safe, 0.0)   # rows with no edges -> 0
        xn = xn_sc[...]
        g = jax.nn.sigmoid(jnp.dot(agg, wga_ref[...], preferred_element_type=jnp.float32)
                           + jnp.dot(xn, wgx_ref[...], preferred_element_type=jnp.float32)
                           + bg_ref[...])
        s_lin = jnp.dot(xn, ws_ref[...], preferred_element_type=jnp.float32) + bs_ref[...]
        upd = agg + g * (s_lin - agg)
        attn_out = jnp.dot(upd, wo_ref[...], preferred_element_type=jnp.float32) + bo_ref[...]
        x1 = x_ref[...] + _ln(attn_out, lnp[2:3, :], lnp[3:4, :])
        h1 = _ln(x1, lnp[4:5, :], lnp[5:6, :])
        h1 = jnp.maximum(jnp.dot(h1, w1_ref[...], preferred_element_type=jnp.float32)
                         + b1_ref[...], 0.0)
        h1 = jnp.dot(h1, w2_ref[...], preferred_element_type=jnp.float32) + b2_ref[...]
        out_ref[...] = x1 + _ln(h1, lnp[6:7, :], lnp[7:8, :])


def pallas_fused_attention(x_dst_pad, edge, kpvp, p, num_heads, head_dim):
    nd_pad, hidden = x_dst_pad.shape
    nhhd = num_heads * head_dim
    ffn = p['ff_w1'].shape[1]
    e_pad = kpvp.shape[0]
    n_row_tiles = nd_pad // ROW_TILE
    max_tiles = edge['max_tiles']
    last_tile = e_pad // EDGE_TILE - 1
    scale = head_dim ** -0.5

    def edge_idx(i, j, ts, tc):
        return (0, jnp.minimum(ts[i] + j, last_tile))

    def kpvp_idx(i, j, ts, tc):
        return (jnp.minimum(ts[i] + j, last_tile), 0)

    row = lambda d: pl.BlockSpec((ROW_TILE, d), lambda i, j, *_: (i, 0))
    full = lambda s: pl.BlockSpec(s, lambda i, j, *_: (0, 0))

    kern = functools.partial(_fused_attn_kernel, num_heads=num_heads,
                             head_dim=head_dim, scale=scale)

    grid_spec = pltpu.PrefetchScalarGridSpec(
        num_scalar_prefetch=2,
        grid=(n_row_tiles, max_tiles),
        in_specs=[row(hidden),
                  pl.BlockSpec((1, EDGE_TILE), edge_idx),
                  pl.BlockSpec((EDGE_TILE, 2 * nhhd), kpvp_idx),
                  full((8, hidden)),
                  full((hidden, nhhd)), full((1, nhhd)),
                  full((nhhd, nhhd)), full((hidden, nhhd)), full((1, nhhd)),
                  full((hidden, nhhd)), full((1, nhhd)),
                  full((nhhd, hidden)), full((1, hidden)),
                  full((hidden, ffn)), full((1, ffn)),
                  full((ffn, hidden)), full((1, hidden))],
        out_specs=pl.BlockSpec((ROW_TILE, hidden), lambda i, j, *_: (i, 0)),
        scratch_shapes=[pltpu.VMEM((ROW_TILE, hidden), jnp.float32),   # xn (prenormed dst)
                        pltpu.VMEM((ROW_TILE, nhhd), jnp.bfloat16),    # q * scale
                        pltpu.VMEM((ROW_TILE, nhhd), jnp.float32),     # m (per-head, lane-bcast)
                        pltpu.VMEM((ROW_TILE, nhhd), jnp.float32),     # l
                        pltpu.VMEM((ROW_TILE, nhhd), jnp.float32)])    # acc

    visited = n_row_tiles * max_tiles * ROW_TILE * EDGE_TILE
    cost = pl.CostEstimate(
        flops=4 * visited * nhhd
              + 2 * nd_pad * (3 * hidden * nhhd + nhhd * nhhd + nhhd * hidden + 2 * hidden * ffn),
        transcendentals=visited * num_heads,
        bytes_accessed=n_row_tiles * max_tiles * EDGE_TILE * (2 * nhhd * 2 + 4)
                       + nd_pad * hidden * 4 * 3)

    return pl.pallas_call(
        kern,
        out_shape=jax.ShapeDtypeStruct((nd_pad, hidden), jnp.float32),
        grid_spec=grid_spec,
        compiler_params=pltpu.CompilerParams(
            dimension_semantics=("parallel", "arbitrary"),
            vmem_limit_bytes=48 * 1024 * 1024),            # fits v7x (64 MiB) with headroom
        cost_estimate=cost,
    )(edge['tile_start'], edge['tile_count'],
      x_dst_pad, edge['dst_pad'], kpvp,
      p['ln_pack'], p['wq'], p['bq'],
      p['wg_a'], p['wg_x'], p['bg'],
      p['ws'], p['bs'], p['wo_attn'], p['bo_attn'],
      p['ff_w1'], p['ff_b1'], p['ff_w2'], p['ff_b2'])


# ----------------------------------------------------------------------------- attention layer
def attention_layer_forward(p, x_src, x_dst, edge, n_dst, num_heads, head_dim):
    xs_p = _pad_rows(x_src, ROW_TILE)
    xd_p = _pad_rows(x_dst, ROW_TILE)
    kv = pallas_ln_kv(xs_p, p['pre_src_w'], p['pre_src_b'], p['wkv'], p['bkv'])
    # TODO(synk): per-edge source-row gather stays XLA glue; at nhhd=32 a manual-DMA row
    # gather inside the edge kernel would issue ~256 B DMAs and is not worthwhile.
    kv_j = jnp.take(kv, edge['src_pad'], axis=0)
    kpvp = pallas_edge_kv(edge['r_pad'], p['pre_r_w'], p['pre_r_b'], kv_j, p['wr'], p['br'])
    out = pallas_fused_attention(xd_p, edge, kpvp, p, num_heads, head_dim)
    return out[:n_dst]


# ----------------------------------------------------------------------------- params
def _init_linear(key, din, dout, bias=True, scale=0.05):
    kw, kb = jax.random.split(key)
    w = scale * jax.random.normal(kw, (din, dout), jnp.float32)
    if bias:
        b = scale * jax.random.normal(kb, (1, dout), jnp.float32)
    else:
        b = jnp.zeros((1, dout), jnp.float32)
    return w, b


def init_fourier_params(key, d_in, hidden, f):
    keys = jax.random.split(key, 2 * d_in + 2)
    freqs = jax.random.normal(keys[0], (d_in, f), jnp.float32)
    d_feat = 2 * f + 1
    w1_bd = jnp.zeros((d_in * d_feat, d_in * hidden), jnp.float32)
    b1_list, w2_list = [], []
    b2_sum = jnp.zeros((1, hidden), jnp.float32)
    for i in range(d_in):
        w1, b1 = _init_linear(keys[1 + 2 * i], d_feat, hidden)
        w2, b2 = _init_linear(keys[2 + 2 * i], hidden, hidden)
        w1_bd = w1_bd.at[i * d_feat:(i + 1) * d_feat, i * hidden:(i + 1) * hidden].set(w1)
        b1_list.append(b1[0])
        w2_list.append(w2)
        b2_sum = b2_sum + b2
    wo, bo = _init_linear(keys[-1], hidden, hidden)
    return dict(freqs=freqs,
                w1_bd=w1_bd,
                b1=jnp.concatenate(b1_list)[None, :],
                ln1_w=jnp.ones((1, d_in * hidden), jnp.float32),
                ln1_b=jnp.zeros((1, d_in * hidden), jnp.float32),
                w2=jnp.concatenate(w2_list, axis=0),
                b2=b2_sum,
                lno_w=jnp.ones((1, hidden), jnp.float32),
                lno_b=jnp.zeros((1, hidden), jnp.float32),
                wo=wo, bo=bo)


def init_attention_params(key, hidden, num_heads, head_dim, bipartite):
    nhhd = num_heads * head_dim
    ks = jax.random.split(key, 10)
    wq, bq = _init_linear(ks[0], hidden, nhhd)
    wk, _ = _init_linear(ks[1], hidden, nhhd, bias=False)
    wv, bv = _init_linear(ks[2], hidden, nhhd)
    wkr, _ = _init_linear(ks[3], hidden, nhhd, bias=False)
    wvr, bvr = _init_linear(ks[4], hidden, nhhd)
    ws, bs = _init_linear(ks[5], hidden, nhhd)
    wg, bg = _init_linear(ks[6], nhhd + hidden, nhhd)
    wo_attn, bo_attn = _init_linear(ks[7], nhhd, hidden)
    ff_w1, ff_b1 = _init_linear(ks[8], hidden, 4 * hidden)
    ff_w2, ff_b2 = _init_linear(ks[9], 4 * hidden, hidden)
    ones = jnp.ones((1, hidden), jnp.float32)
    zeros = jnp.zeros((1, hidden), jnp.float32)
    zeros_nh = jnp.zeros((1, nhhd), jnp.float32)
    # lane-dense fused slabs: [k|v] and [k_r|v_r] (to_k / to_k_r have no bias)
    wkv = jnp.concatenate([wk, wv], axis=1)
    bkv = jnp.concatenate([zeros_nh, bv], axis=1)
    wr = jnp.concatenate([wkr, wvr], axis=1)
    br = jnp.concatenate([zeros_nh, bvr], axis=1)
    # packed LN params for the fused dst-side kernel:
    #   rows 0-1: dst prenorm (== src prenorm when not bipartite), 2-3: attn postnorm,
    #   rows 4-5: ff prenorm, 6-7: ff postnorm      (fresh LayerNorms: weight=1, bias=0)
    ln_pack = jnp.concatenate([ones, zeros, ones, zeros, ones, zeros, ones, zeros], axis=0)
    return dict(pre_src_w=ones, pre_src_b=zeros,
                pre_r_w=ones, pre_r_b=zeros,
                wkv=wkv, bkv=bkv, wr=wr, br=br,
                wq=wq, bq=bq,
                wg_a=wg[:nhhd], wg_x=wg[nhhd:], bg=bg,
                ws=ws, bs=bs,
                wo_attn=wo_attn, bo_attn=bo_attn,
                ff_w1=ff_w1, ff_b1=ff_b1, ff_w2=ff_w2, ff_b2=ff_b2,
                ln_pack=ln_pack)


def init_qcnet_map_encoder_params(key, input_dim, hidden_dim, num_freq_bands,
                                  num_map_layers, num_heads, head_dim):
    if input_dim == 2:
        d_x_pt, d_r = 1, 3
    elif input_dim == 3:
        d_x_pt, d_r = 2, 4
    else:
        raise ValueError(input_dim)
    ks = jax.random.split(key, 4 + 2 * num_map_layers)
    return dict(
        x_pt_emb=init_fourier_params(ks[0], d_x_pt, hidden_dim, num_freq_bands),
        x_pl_emb=init_fourier_params(ks[1], 2, hidden_dim, num_freq_bands),
        r_pt2pl_emb=init_fourier_params(ks[2], d_r, hidden_dim, num_freq_bands),
        r_pl2pl_emb=init_fourier_params(ks[3], d_r, hidden_dim, num_freq_bands),
        pt2pl_layers=[init_attention_params(ks[4 + 2 * i], hidden_dim, num_heads, head_dim, True)
                      for i in range(num_map_layers)],
        pl2pl_layers=[init_attention_params(ks[5 + 2 * i], hidden_dim, num_heads, head_dim, False)
                      for i in range(num_map_layers)],
    )


# ----------------------------------------------------------------------------- forward
def qcnet_map_encoder_forward(params, *, input_dim, hidden_dim, num_historical_steps,
                              num_heads, head_dim, num_layers,
                              pos_pt, orient_pt, pos_pl, orient_pl, orient_vector_pl,
                              x_pt, edge_index_pt2pl, edge_index_pl2pl):
    n_pl = pos_pl.shape[0]
    x_pt_emb = pallas_fourier_embedding(params['x_pt_emb'], x_pt)
    x_pl = pallas_fourier_embedding(params['x_pl_emb'], pos_pl[:, :2])

    # ---- pt2pl edges: sort by dst once, build CSR tile metadata, embed relative-pose feats
    edge_pt2pl = prepare_edges(edge_index_pt2pl[0], edge_index_pt2pl[1], n_pl)
    src, dst = edge_pt2pl['src'], edge_pt2pl['dst']
    rel_pos = pos_pt[src] - pos_pl[dst]
    rel_orient = wrap_angle(orient_pt[src] - orient_pl[dst])
    if input_dim == 2:
        r_pt2pl_feat = jnp.stack(
            [jnp.linalg.norm(rel_pos[:, :2], axis=-1),
             angle_between_2d_vectors(orient_vector_pl[dst], rel_pos[:, :2]),
             rel_orient], axis=-1)
    else:
        r_pt2pl_feat = jnp.stack(
            [jnp.linalg.norm(rel_pos[:, :2], axis=-1),
             angle_between_2d_vectors(orient_vector_pl[dst], rel_pos[:, :2]),
             rel_pos[:, -1], rel_orient], axis=-1)
    r_pt2pl = pallas_fourier_embedding(params['r_pt2pl_emb'], r_pt2pl_feat)
    edge_pt2pl['r_pad'] = _pad_rows_to(r_pt2pl, edge_pt2pl['e_pad'])

    # ---- pl2pl edges
    edge_pl2pl = prepare_edges(edge_index_pl2pl[0], edge_index_pl2pl[1], n_pl)
    src2, dst2 = edge_pl2pl['src'], edge_pl2pl['dst']
    rel_pos2 = pos_pl[src2] - pos_pl[dst2]
    rel_orient2 = wrap_angle(orient_pl[src2] - orient_pl[dst2])
    if input_dim == 2:
        r_pl2pl_feat = jnp.stack(
            [jnp.linalg.norm(rel_pos2[:, :2], axis=-1),
             angle_between_2d_vectors(orient_vector_pl[dst2], rel_pos2[:, :2]),
             rel_orient2], axis=-1)
    else:
        r_pl2pl_feat = jnp.stack(
            [jnp.linalg.norm(rel_pos2[:, :2], axis=-1),
             angle_between_2d_vectors(orient_vector_pl[dst2], rel_pos2[:, :2]),
             rel_pos2[:, -1], rel_orient2], axis=-1)
    r_pl2pl = pallas_fourier_embedding(params['r_pl2pl_emb'], r_pl2pl_feat)
    edge_pl2pl['r_pad'] = _pad_rows_to(r_pl2pl, edge_pl2pl['e_pad'])

    for i in range(num_layers):
        x_pl = attention_layer_forward(params['pt2pl_layers'][i], x_pt_emb, x_pl,
                                       edge_pt2pl, n_pl, num_heads, head_dim)
        x_pl = attention_layer_forward(params['pl2pl_layers'][i], x_pl, x_pl,
                                       edge_pl2pl, n_pl, num_heads, head_dim)

    x_pl_out = jnp.repeat(x_pl, num_historical_steps, axis=0).reshape(
        -1, num_historical_steps, hidden_dim)
    return {'x_pt': x_pt_emb, 'x_pl': x_pl_out}


# ----------------------------------------------------------------------------- main
if __name__ == "__main__":
    input_dim = 2
    hidden_dim = 32
    num_historical_steps = 4
    num_freq_bands = 4
    num_map_layers = 2
    num_heads = 2
    head_dim = 16
    N_pt, N_pl = 16, 8

    key = jax.random.PRNGKey(0)
    kp = jax.random.split(key, 8)
    pos_pt = 5.0 * jax.random.normal(kp[0], (N_pt, 2), jnp.float32)
    orient_pt = jax.random.uniform(kp[1], (N_pt,), jnp.float32, -math.pi, math.pi)
    pos_pl = 5.0 * jax.random.normal(kp[2], (N_pl, 2), jnp.float32)
    orient_pl = jax.random.uniform(kp[3], (N_pl,), jnp.float32, -math.pi, math.pi)
    orient_vector_pl = jnp.stack([jnp.cos(orient_pl), jnp.sin(orient_pl)], axis=-1)
    x_pt = jax.random.normal(kp[4], (N_pt, 1), jnp.float32)

    # pt2pl edges: each map point attaches to one polygon
    edge_index_pt2pl = jnp.stack([jnp.arange(N_pt, dtype=jnp.int32),
                                  jnp.arange(N_pt, dtype=jnp.int32) % N_pl])
    # pl2pl edges: ring connectivity (i+1 -> i, i+2 -> i)
    i_idx = jnp.arange(N_pl, dtype=jnp.int32)
    src2 = jnp.concatenate([(i_idx + 1) % N_pl, (i_idx + 2) % N_pl])
    dst2 = jnp.concatenate([i_idx, i_idx])
    edge_index_pl2pl = jnp.stack([src2, dst2])

    params = init_qcnet_map_encoder_params(kp[5], input_dim, hidden_dim, num_freq_bands,
                                           num_map_layers, num_heads, head_dim)

    out = qcnet_map_encoder_forward(
        params, input_dim=input_dim, hidden_dim=hidden_dim,
        num_historical_steps=num_historical_steps, num_heads=num_heads,
        head_dim=head_dim, num_layers=num_map_layers,
        pos_pt=pos_pt, orient_pt=orient_pt, pos_pl=pos_pl, orient_pl=orient_pl,
        orient_vector_pl=orient_vector_pl, x_pt=x_pt,
        edge_index_pt2pl=edge_index_pt2pl, edge_index_pl2pl=edge_index_pl2pl)
    jax.block_until_ready(out)

    assert out['x_pt'].shape == (N_pt, hidden_dim)
    assert out['x_pl'].shape == (N_pl, num_historical_steps, hidden_dim)
    assert bool(jnp.all(jnp.isfinite(out['x_pt']))) and bool(jnp.all(jnp.isfinite(out['x_pl'])))
    print("KERNEL_OK")
</pallas_src>

<mosaic_0001>
module attributes {stable_mosaic.version = 11 : i64} {
  func.func @_fourier_kernel(%arg0: i32, %arg1: memref<256x9xf32, #tpu.memory_space<vmem>>, %arg2: memref<9x32xf32, #tpu.memory_space<vmem>>, %arg3: memref<1x32xf32, #tpu.memory_space<vmem>>, %arg4: memref<1x32xf32, #tpu.memory_space<vmem>>, %arg5: memref<1x32xf32, #tpu.memory_space<vmem>>, %arg6: memref<32x32xf32, #tpu.memory_space<vmem>>, %arg7: memref<1x32xf32, #tpu.memory_space<vmem>>, %arg8: memref<1x32xf32, #tpu.memory_space<vmem>>, %arg9: memref<1x32xf32, #tpu.memory_space<vmem>>, %arg10: memref<32x32xf32, #tpu.memory_space<vmem>>, %arg11: memref<1x32xf32, #tpu.memory_space<vmem>>, %arg12: memref<256x32xf32, #tpu.memory_space<vmem>>, %arg13: memref<256x32xf32, #tpu.memory_space<vmem>>) attributes {dimension_semantics = [#tpu.dimension_semantics<parallel>], iteration_bounds = array<i64: 1>, scalar_prefetch = 0 : i64, scratch_operands = 1 : i64, tpu.core_type = #tpu.core_type<tc>, window_params = [{transform_indices = @transform_0, window_bounds = array<i64: 256, 9>}, {pipeline_mode = #tpu.pipeline_mode<synchronous>, transform_indices = @transform_1, window_bounds = array<i64: 9, 32>}, {pipeline_mode = #tpu.pipeline_mode<synchronous>, transform_indices = @transform_2, window_bounds = array<i64: 1, 32>}, {pipeline_mode = #tpu.pipeline_mode<synchronous>, transform_indices = @transform_3, window_bounds = array<i64: 1, 32>}, {pipeline_mode = #tpu.pipeline_mode<synchronous>, transform_indices = @transform_4, window_bounds = array<i64: 1, 32>}, {pipeline_mode = #tpu.pipeline_mode<synchronous>, transform_indices = @transform_5, window_bounds = array<i64: 32, 32>}, {pipeline_mode = #tpu.pipeline_mode<synchronous>, transform_indices = @transform_6, window_bounds = array<i64: 1, 32>}, {pipeline_mode = #tpu.pipeline_mode<synchronous>, transform_indices = @transform_7, window_bounds = array<i64: 1, 32>}, {pipeline_mode = #tpu.pipeline_mode<synchronous>, transform_indices = @transform_8, window_bounds = array<i64: 1, 32>}, {pipeline_mode = #tpu.pipeline_mode<synchronous>, transform_indices = @transform_9, window_bounds = array<i64: 32, 32>}, {pipeline_mode = #tpu.pipeline_mode<synchronous>, transform_indices = @transform_10, window_bounds = array<i64: 1, 32>}, {transform_indices = @transform_11, window_bounds = array<i64: 256, 32>}]} {
    %c0 = arith.constant 0 : index
    %c0_0 = arith.constant 0 : index
    %0 = vector.load %arg1[%c0, %c0_0] : memref<256x9xf32, #tpu.memory_space<vmem>>, vector<256x9xf32>
    %c0_1 = arith.constant 0 : index
    %c0_2 = arith.constant 0 : index
    %1 = vector.load %arg2[%c0_1, %c0_2] : memref<9x32xf32, #tpu.memory_space<vmem>>, vector<9x32xf32>
    %cst = arith.constant dense<0.000000e+00> : vector<256x32xf32>
    %2 = tpu.matmul %0, %1, %cst {dimension_numbers = #tpu.dot_dimension_numbers<[1], [0], [0], [1], [0, 0, 1, 1], [], []>} : vector<256x9xf32>, vector<9x32xf32>, vector<256x32xf32> -> vector<256x32xf32>
    %c0_3 = arith.constant 0 : index
    %c0_4 = arith.constant 0 : index
    %3 = vector.load %arg3[%c0_3, %c0_4] : memref<1x32xf32, #tpu.memory_space<vmem>>, vector<1x32xf32>
    %4 = vector.broadcast %3 : vector<1x32xf32> to vector<256x32xf32>
    %5 = arith.addf %2, %4 : vector<256x32xf32>
    %c0_5 = arith.constant 0 : index
    %c0_6 = arith.constant 0 : index
    %6 = vector.load %arg4[%c0_5, %c0_6] : memref<1x32xf32, #tpu.memory_space<vmem>>, vector<1x32xf32>
    %c0_7 = arith.constant 0 : index
    %c0_8 = arith.constant 0 : index
    %7 = vector.load %arg5[%c0_7, %c0_8] : memref<1x32xf32, #tpu.memory_space<vmem>>, vector<1x32xf32>
    %cst_9 = arith.constant dense<0.000000e+00> : vector<256xf32>
    %8 = vector.multi_reduction <add>, %5, %cst_9 [1] : vector<256x32xf32> to vector<256xf32>
    %9 = vector.shape_cast %8 : vector<256xf32> to vector<256x1xf32>
    %cst_10 = arith.constant 3.200000e+01 : f32
    %10 = vector.broadcast %cst_10 : f32 to vector<256x1xf32>
    %11 = arith.divf %9, %10 : vector<256x1xf32>
    %12 = vector.broadcast %11 : vector<256x1xf32> to vector<256x32xf32>
    %13 = arith.subf %5, %12 : vector<256x32xf32>
    %14 = arith.mulf %13, %13 : vector<256x32xf32>
    %cst_11 = arith.constant dense<0.000000e+00> : vector<256xf32>
    %15 = vector.multi_reduction <add>, %14, %cst_11 [1] : vector<256x32xf32> to vector<256xf32>
    %16 = vector.shape_cast %15 : vector<256xf32> to vector<256x1xf32>
    %cst_12 = arith.constant 3.200000e+01 : f32
    %17 = vector.broadcast %cst_12 : f32 to vector<256x1xf32>
    %18 = arith.divf %16, %17 : vector<256x1xf32>
    %19 = vector.broadcast %11 : vector<256x1xf32> to vector<256x32xf32>
    %20 = arith.subf %5, %19 : vector<256x32xf32>
    %cst_13 = arith.constant 9.99999974E-6 : f32
    %21 = vector.broadcast %cst_13 : f32 to vector<256x1xf32>
    %22 = arith.addf %18, %21 : vector<256x1xf32>
    %23 = math.rsqrt %22 : vector<256x1xf32>
    %24 = vector.broadcast %23 : vector<256x1xf32> to vector<256x32xf32>
    %25 = arith.mulf %20, %24 : vector<256x32xf32>
    %26 = vector.broadcast %6 : vector<1x32xf32> to vector<256x32xf32>
    %27 = arith.mulf %25, %26 : vector<256x32xf32>
    %28 = vector.broadcast %7 : vector<1x32xf32> to vector<256x32xf32>
    %29 = arith.addf %27, %28 : vector<256x32xf32>
    %cst_14 = arith.constant 0.000000e+00 : f32
    %30 = vector.broadcast %cst_14 : f32 to vector<256x32xf32>
    %31 = arith.maximumf %29, %30 : vector<256x32xf32>
    %c0_15 = arith.constant 0 : index
    %c0_16 = arith.constant 0 : index
    %32 = vector.load %arg13[%c0_15, %c0_16] : memref<256x32xf32, #tpu.memory_space<vmem>>, vector<256x32xf32>
    tpu.vector_store %arg13[%c0_15, %c0_16], %31 {strides = array<i32>} : memref<256x32xf32, #tpu.memory_space<vmem>>, vector<256x32xf32>,
    %c0_17 = arith.constant 0 : index
    %c0_18 = arith.constant 0 : index
    %33 = vector.load %arg13[%c0_17, %c0_18] : memref<256x32xf32, #tpu.memory_space<vmem>>, vector<256x32xf32>
    %c0_19 = arith.constant 0 : index
    %c0_20 = arith.constant 0 : index
    %34 = vector.load %arg6[%c0_19, %c0_20] : memref<32x32xf32, #tpu.memory_space<vmem>>, vector<32x32xf32>
    %cst_21 = arith.constant dense<0.000000e+00> : vector<256x32xf32>
    %35 = tpu.matmul %33, %34, %cst_21 {dimension_numbers = #tpu.dot_dimension_numbers<[1], [0], [0], [1], [0, 0, 1, 1], [], []>} : vector<256x32xf32>, vector<32x32xf32>, vector<256x32xf32> -> vector<256x32xf32>
    %c0_22 = arith.constant 0 : index
    %c0_23 = arith.constant 0 : index
    %36 = vector.load %arg7[%c0_22, %c0_23] : memref<1x32xf32, #tpu.memory_space<vmem>>, vector<1x32xf32>
    %37 = vector.broadcast %36 : vector<1x32xf32> to vector<256x32xf32>
    %38 = arith.addf %35, %37 : vector<256x32xf32>
    %c0_24 = arith.constant 0 : index
    %c0_25 = arith.constant 0 : index
    %39 = vector.load %arg8[%c0_24, %c0_25] : memref<1x32xf32, #tpu.memory_space<vmem>>, vector<1x32xf32>
    %c0_26 = arith.constant 0 : index
    %c0_27 = arith.constant 0 : index
    %40 = vector.load %arg9[%c0_26, %c0_27] : memref<1x32xf32, #tpu.memory_space<vmem>>, vector<1x32xf32>
    %cst_28 = arith.constant dense<0.000000e+00> : vector<256xf32>
    %41 = vector.multi_reduction <add>, %38, %cst_28 [1] : vector<256x32xf32> to vector<256xf32>
    %42 = vector.shape_cast %41 : vector<256xf32> to vector<256x1xf32>
    %cst_29 = arith.constant 3.200000e+01 : f32
    %43 = vector.broadcast %cst_29 : f32 to vector<256x1xf32>
    %44 = arith.divf %42, %43 : vector<256x1xf32>
    %45 = vector.broadcast %44 : vector<256x1xf32> to vector<256x32xf32>
    %46 = arith.subf %38, %45 : vector<256x32xf32>
    %47 = arith.mulf %46, %46 : vector<256x32xf32>
    %cst_30 = arith.constant dense<0.000000e+00> : vector<256xf32>
    %48 = vector.multi_reduction <add>, %47, %cst_30 [1] : vector<256x32xf32> to vector<256xf32>
    %49 = vector.shape_cast %48 : vector<256xf32> to vector<256x1xf32>
    %cst_31 = arith.constant 3.200000e+01 : f32
    %50 = vector.broadcast %cst_31 : f32 to vector<256x1xf32>
    %51 = arith.divf %49, %50 : vector<256x1xf32>
    %52 = vector.broadcast %44 : vector<256x1xf32> to vector<256x32xf32>
    %53 = arith.subf %38, %52 : vector<256x32xf32>
    %cst_32 = arith.constant 9.99999974E-6 : f32
    %54 = vector.broadcast %cst_32 : f32 to vector<256x1xf32>
    %55 = arith.addf %51, %54 : vector<256x1xf32>
    %56 = math.rsqrt %55 : vector<256x1xf32>
    %57 = vector.broadcast %56 : vector<256x1xf32> to vector<256x32xf32>
    %58 = arith.mulf %53, %57 : vector<256x32xf32>
    %59 = vector.broadcast %39 : vector<1x32xf32> to vector<256x32xf32>
    %60 = arith.mulf %58, %59 : vector<256x32xf32>
    %61 = vector.broadcast %40 : vector<1x32xf32> to vector<256x32xf32>
    %62 = arith.addf %60, %61 : vector<256x32xf32>
    %cst_33 = arith.constant 0.000000e+00 : f32
    %63 = vector.broadcast %cst_33 : f32 to vector<256x32xf32>
    %64 = arith.maximumf %62, %63 : vector<256x32xf32>
    %c0_34 = arith.constant 0 : index
    %c0_35 = arith.constant 0 : index
    %65 = vector.load %arg10[%c0_34, %c0_35] : memref<32x32xf32, #tpu.memory_space<vmem>>, vector<32x32xf32>
    %cst_36 = arith.constant dense<0.000000e+00> : vector<256x32xf32>
    %66 = tpu.matmul %64, %65, %cst_36 {dimension_numbers = #tpu.dot_dimension_numbers<[1], [0], [0], [1], [0, 0, 1, 1], [], []>} : vector<256x32xf32>, vector<32x32xf32>, vector<256x32xf32> -> vector<256x32xf32>
    %c0_37 = arith.constant 0 : index
    %c0_38 = arith.constant 0 : index
    %67 = vector.load %arg11[%c0_37, %c0_38] : memref<1x32xf32, #tpu.memory_space<vmem>>, vector<1x32xf32>
    %68 = vector.broadcast %67 : vector<1x32xf32> to vector<256x32xf32>
    %69 = arith.addf %66, %68 : vector<256x32xf32>
    %c0_39 = arith.constant 0 : index
    %c0_40 = arith.constant 0 : index
    %70 = vector.load %arg12[%c0_39, %c0_40] : memref<256x32xf32, #tpu.memory_space<vmem>>, vector<256x32xf32>
    tpu.vector_store %arg12[%c0_39, %c0_40], %69 {strides = array<i32>} : memref<256x32xf32, #tpu.memory_space<vmem>>, vector<256x32xf32>,
    return
  }
  func.func @transform_0(%arg0: i32) -> (i32, i32) {
    %c0_i32 = arith.constant 0 : i32
    %c0_i32_0 = arith.constant 0 : i32
    return %arg0, %c0_i32 : i32, i32
  }
  func.func @transform_1(%arg0: i32) -> (i32, i32) {
    %c0_i32 = arith.constant 0 : i32
    %c0_i32_0 = arith.constant 0 : i32
    %c0_i32_1 = arith.constant 0 : i32
    return %c0_i32, %c0_i32_0 : i32, i32
  }
  func.func @transform_2(%arg0: i32) -> (i32, i32) {
    %c0_i32 = arith.constant 0 : i32
    %c0_i32_0 = arith.constant 0 : i32
    %c0_i32_1 = arith.constant 0 : i32
    return %c0_i32, %c0_i32_0 : i32, i32
  }
  func.func @transform_3(%arg0: i32) -> (i32, i32) {
    %c0_i32 = arith.constant 0 : i32
    %c0_i32_0 = arith.constant 0 : i32
    %c0_i32_1 = arith.constant 0 : i32
    return %c0_i32, %c0_i32_0 : i32, i32
  }
  func.func @transform_4(%arg0: i32) -> (i32, i32) {
    %c0_i32 = arith.constant 0 : i32
    %c0_i32_0 = arith.constant 0 : i32
    %c0_i32_1 = arith.constant 0 : i32
    return %c0_i32, %c0_i32_0 : i32, i32
  }
  func.func @transform_5(%arg0: i32) -> (i32, i32) {
    %c0_i32 = arith.constant 0 : i32
    %c0_i32_0 = arith.constant 0 : i32
    %c0_i32_1 = arith.constant 0 : i32
    return %c0_i32, %c0_i32_0 : i32, i32
  }
  func.func @transform_6(%arg0: i32) -> (i32, i32) {
    %c0_i32 = arith.constant 0 : i32
    %c0_i32_0 = arith.constant 0 : i32
    %c0_i32_1 = arith.constant 0 : i32
    return %c0_i32, %c0_i32_0 : i32, i32
  }
  func.func @transform_7(%arg0: i32) -> (i32, i32) {
    %c0_i32 = arith.constant 0 : i32
    %c0_i32_0 = arith.constant 0 : i32
    %c0_i32_1 = arith.constant 0 : i32
    return %c0_i32, %c0_i32_0 : i32, i32
  }
  func.func @transform_8(%arg0: i32) -> (i32, i32) {
    %c0_i32 = arith.constant 0 : i32
    %c0_i32_0 = arith.constant 0 : i32
    %c0_i32_1 = arith.constant 0 : i32
    return %c0_i32, %c0_i32_0 : i32, i32
  }
  func.func @transform_9(%arg0: i32) -> (i32, i32) {
    %c0_i32 = arith.constant 0 : i32
    %c0_i32_0 = arith.constant 0 : i32
    %c0_i32_1 = arith.constant 0 : i32
    return %c0_i32, %c0_i32_0 : i32, i32
  }
  func.func @transform_10(%arg0: i32) -> (i32, i32) {
    %c0_i32 = arith.constant 0 : i32
    %c0_i32_0 = arith.constant 0 : i32
    %c0_i32_1 = arith.constant 0 : i32
    return %c0_i32, %c0_i32_0 : i32, i32
  }
  func.func @transform_11(%arg0: i32) -> (i32, i32) {
    %c0_i32 = arith.constant 0 : i32
    %c0_i32_0 = arith.constant 0 : i32
    return %arg0, %c0_i32 : i32, i32
  }
}

</mosaic_0001>

<bundles_post_ra>
// kernel: tpu_custom_call.1
= control target key start
LH: loop header
LB: loop body
LE: loop exit
PB: predicated region body
PF: predicated region fallthrough
CT: control target
= control target key end

     0   :  { %vm173_vm0 = vcmask 1040384   ;;  %vm76_vm1 = vcmask 72704   ;;  %vm292_vm2 = vcmask 261120   ;;  %v2700_v46 = vmov 32.0   ;;  %s4883_s1 = inlined_call_operand.vmem [shape: f32[9,32], index: 1, kind: input, shape index: {}]   ;;  %s4884_s0 = inlined_call_operand.vmem [shape: f32[256,9], index: 0, kind: input, shape index: {}]   ;;  %s4885_s2 = inlined_call_operand.vmem [shape: f32[1,32], index: 2, kind: input, shape index: {}]   ;;  %s4886_s3 = inlined_call_operand.vmem [shape: f32[1,32], index: 3, kind: input, shape index: {}]   ;;  %s4887_s4 = inlined_call_operand.vmem [shape: f32[1,32], index: 4, kind: input, shape index: {}]   ;;  %s4888_s5 = inlined_call_operand.vmem [shape: f32[32,32], index: 5, kind: input, shape index: {}]   ;;  %s4889_s6 = inlined_call_operand.vmem [shape: f32[1,32], index: 6, kind: input, shape index: {}]   ;;  %s4890_s7 = inlined_call_operand.vmem [shape: f32[1,32], index: 7, kind: input, shape index: {}]   ;;  %s4891_s8 = inlined_call_operand.vmem [shape: f32[1,32], index: 8, kind: input, shape index: {}]   ;;  %s4892_s9 = inlined_call_operand.vmem [shape: f32[32,32], index: 9, kind: input, shape index: {}]   ;;  %s4893_s10 = inlined_call_operand.vmem [shape: f32[1,32], index: 10, kind: input, shape index: {}]   ;;  %s4894_s11 = inlined_call_operand.vmem [shape: f32[256,32], index: 11, kind: output, shape index: {}]  }
   0x1   :  { %v71_v0 = vld [vmem:[%s4883_s1 + $0x8] sm:$0x1]  ;;  %v70_v1 = vld [vmem:[%s4883_s1] sm:$0xff]  ;;  %v40_v4 = vld [vmem:[%s4884_s0 + $0x10] sm:$0xff]  ;;  %2563 = vrcp.f32 %v2700_v46 }
   0x2   :  { %2448 = vmatpush.msk.msra.mxu0 %vm173_vm0, %v71_v0  ;;  %v38_v2 = vld [vmem:[%s4884_s0] sm:$0xff]  ;;  %2545 = vmatpush.msk.msra.mxu3 %vm173_vm0, %v71_v0  ;;  %v39_v3 = vld [vmem:[%s4884_s0 + $0x8] sm:$0xff]  ;;  %v41_v5 = vld [vmem:[%s4884_s0 + $0x18] sm:$0xff] }
   0x3   :  { %v42_v6 = vld [vmem:[%s4884_s0 + $0x20] sm:$0xff]  ;;  %v43_v7 = vld [vmem:[%s4884_s0 + $0x28] sm:$0xff]  ;;  %v44_v8 = vld [vmem:[%s4884_s0 + $0x30] sm:$0xff] }
   0x4   :  { %192 = vmatpush.msra.mxu0 %v70_v1  ;;  %2546 = vmatpush.msra.mxu3 %v70_v1  ;;  %v45_v9 = vld [vmem:[%s4884_s0 + $0x38] sm:$0xff]  ;;  %v46_v10 = vld [vmem:[%s4884_s0 + $0x40] sm:$0xff]  ;;  %v47_v11 = vld [vmem:[%s4884_s0 + $0x48] sm:$0xff] }
   0x5   :  { %2449 = vmatmul.msk.f32.vlgmr.msra.gmra.mxu0 %vm76_vm1, %v38_v2  ;;  %v48_v12 = vld [vmem:[%s4884_s0 + $0x50] sm:$0xff]  ;;  %v2813_v13 = vld [vmem:[%s4885_s2] ss:$0 sm:$0xff]  ;;  %v49_v17 = vld [vmem:[%s4884_s0 + $0x58] sm:$0xff] }
   0x6   :  { %v50_v21 = vld [vmem:[%s4884_s0 + $0x60] sm:$0xff]  ;;  %v51_v25 = vld [vmem:[%s4884_s0 + $0x68] sm:$0xff]  ;;  %v52_v28 = vld [vmem:[%s4884_s0 + $0x70] sm:$0xff] }
   0x7   :  { %v53_v32 = vld [vmem:[%s4884_s0 + $0x78] sm:$0xff]  ;;  %v54_v36 = vld [vmem:[%s4884_s0 + $0x80] sm:$0xff]  ;;  %v55_v40 = vld [vmem:[%s4884_s0 + $0x88] sm:$0xff]  ;;  %v2564_v48 = vpop.eup %2563 }
   0x8   :  { %v56_v42 = vld [vmem:[%s4884_s0 + $0x90] sm:$0xff]  ;;  %v57_v43 = vld [vmem:[%s4884_s0 + $0x98] sm:$0xff]  ;;  %v58_v44 = vld [vmem:[%s4884_s0 + $0xa0] sm:$0xff]  ;;  %v390_v50 = vmul.f32 32.0, %v2564_v48  ;;  %vm394_vm3 = vweird.f32 %v2564_v48 }
   0x9   :  { %v59_v45 = vld [vmem:[%s4884_s0 + $0xa8] sm:$0xff]  ;;  %v60_v47 = vld [vmem:[%s4884_s0 + $0xb0] sm:$0xff]  ;;  %v61_v51 = vld [vmem:[%s4884_s0 + $0xb8] sm:$0xff] }
   0xa   :  { %v391_v52 = vsub.f32 1.0, %v390_v50  ;;  %v62_v55 = vld [vmem:[%s4884_s0 + $0xc0] sm:$0xff]  ;;  %v63_v57 = vld [vmem:[%s4884_s0 + $0xc8] sm:$0xff]  ;;  %v64_v63 = vld [vmem:[%s4884_s0 + $0xd0] sm:$0xff] }
   0xb   :  { %2474 = vmatmul.msk.f32.vlgmr.msra.gmra.mxu3 %vm76_vm1, %v63_v57 }
   0xc   :  { %v392_v54 = vmul.f32 %v2564_v48, %v391_v52 }
   0xd   :  { %2450 = vmatmul.msk.f32.gmra.mxu0 %vm76_vm1, %v39_v3 }
   0xe   :  { %v393_v56 = vadd.f32 %v2564_v48, %v392_v54 }
  0x10   :  { %v2911_v58 = vsel %vm394_vm3, %v2564_v48, %v393_v56 }
  0x13   :  { %2475 = vmatmul.msk.f32.gmra.mxu3 %vm76_vm1, %v64_v63 }
  0x15   :  { %2451 = vmatmul.msk.f32.gmra.mxu0 %vm76_vm1, %v40_v4 }
  0x1d   :  { %2452 = vmatmul.msk.f32.gmra.mxu0 %vm76_vm1, %v41_v5 }
  0x25   :  { %2453 = vmatmul.msk.f32.gmra.mxu0 %vm76_vm1, %v42_v6 }
  0x2d   :  { %2454 = vmatmul.msk.f32.gmra.mxu0 %vm76_vm1, %v43_v7  ;;  %v65_v7 = vld [vmem:[%s4884_s0 + $0xd8] sm:$0xff] }
  0x2e   :  { %2476 = vmatmul.msk.f32.gmra.mxu3 %vm76_vm1, %v65_v7 }
  0x35   :  { %2455 = vmatmul.msk.f32.gmra.mxu0 %vm76_vm1, %v44_v8 }
  0x3d   :  { %2456 = vmatmul.msk.f32.gmra.mxu0 %vm76_vm1, %v45_v9 }
  0x45   :  { %2457 = vmatmul.msk.f32.gmra.mxu0 %vm76_vm1, %v46_v10 }
  0x4d   :  { %2458 = vmatmul.msk.f32.gmra.mxu0 %vm76_vm1, %v47_v11 }
  0x55   :  { %2459 = vmatmul.msk.f32.gmra.mxu0 %vm76_vm1, %v48_v12 }
  0x5d   :  { %2460 = vmatmul.msk.f32.gmra.mxu0 %vm76_vm1, %v49_v17  ;;  %v66_v17 = vld [vmem:[%s4884_s0 + $0xe0] sm:$0xff] }
  0x5e   :  { %2477 = vmatmul.msk.f32.gmra.mxu3 %vm76_vm1, %v66_v17 }
  0x65   :  { %2461 = vmatmul.msk.f32.gmra.mxu0 %vm76_vm1, %v50_v21 }
  0x6d   :  { %2462 = vmatmul.msk.f32.gmra.mxu0 %vm76_vm1, %v51_v25 }
  0x75   :  { %2463 = vmatmul.msk.f32.gmra.mxu0 %vm76_vm1, %v52_v28 }
  0x7d   :  { %2464 = vmatmul.msk.f32.gmra.mxu0 %vm76_vm1, %v53_v32 }
  0x82   :  { %v194_v14 = vpop.f32.mrf.mxu0 }
  0x83   :  { %v2817_v15 = vadd.f32 %v2813_v13, %v194_v14 }
  0x85   :  { %v293_v16 = vsel %vm292_vm2, %v2817_v15, 0.0  ;;  %2465 = vmatmul.msk.f32.gmra.mxu0 %vm76_vm1, %v54_v36 }
  0x86   :  { %294 = vadd.xlane.f32.xlu0 %v293_v16 }
  0x8a   :  { %v197_v18 = vpop.f32.mrf.mxu0 }
  0x8b   :  { %v2826_v19 = vadd.f32 %v2813_v13, %v197_v18 }
  0x8d   :  { %v296_v20 = vsel %vm292_vm2, %v2826_v19, 0.0  ;;  %2466 = vmatmul.msk.f32.gmra.mxu0 %vm76_vm1, %v55_v40 }
  0x8e   :  { %297 = vadd.xlane.f32.xlu0 %v296_v20 }
  0x92   :  { %v200_v22 = vpop.f32.mrf.mxu0 }
  0x93   :  { %v2835_v23 = vadd.f32 %v2813_v13, %v200_v22 }
  0x95   :  { %v299_v24 = vsel %vm292_vm2, %v2835_v23, 0.0  ;;  %2467 = vmatmul.msk.f32.gmra.mxu0 %vm76_vm1, %v56_v42 }
  0x96   :  { %300 = vadd.xlane.f32.xlu1 %v299_v24  ;;  %v67_v24 = vld [vmem:[%s4884_s0 + $0xe8] sm:$0xff] }
  0x97   :  { %2478 = vmatmul.msk.f32.gmra.mxu3 %vm76_vm1, %v67_v24 }
  0x9a   :  { %v203_v26 = vpop.f32.mrf.mxu0 }
  0x9b   :  { %v2844_v27 = vadd.f32 %v2813_v13, %v203_v26 }
  0x9d   :  { %v302_v29 = vsel %vm292_vm2, %v2844_v27, 0.0  ;;  %2468 = vmatmul.msk.f32.gmra.mxu0 %vm76_vm1, %v57_v43 }
  0x9e   :  { %303 = vadd.xlane.f32.xlu1 %v302_v29 }
  0xa2   :  { %v206_v30 = vpop.f32.mrf.mxu0 }
  0xa3   :  { %v2853_v31 = vadd.f32 %v2813_v13, %v206_v30 }
  0xa5   :  { %v305_v33 = vsel %vm292_vm2, %v2853_v31, 0.0  ;;  %2469 = vmatmul.msk.f32.gmra.mxu0 %vm76_vm1, %v58_v44 }
  0xa6   :  { %306 = vadd.xlane.f32.xlu2 %v305_v33 }
  0xaa   :  { %v209_v34 = vpop.f32.mrf.mxu0 }
  0xab   :  { %v2862_v35 = vadd.f32 %v2813_v13, %v209_v34 }
  0xad   :  { %v308_v37 = vsel %vm292_vm2, %v2862_v35, 0.0  ;;  %2470 = vmatmul.msk.f32.gmra.mxu0 %vm76_vm1, %v59_v45 }
  0xae   :  { %309 = vadd.xlane.f32.xlu2 %v308_v37 }
  0xb2   :  { %v212_v38 = vpop.f32.mrf.mxu0 }
  0xb3   :  { %v2871_v39 = vadd.f32 %v2813_v13, %v212_v38 }
  0xb5   :  { %v311_v41 = vsel %vm292_vm2, %v2871_v39, 0.0  ;;  %2471 = vmatmul.msk.f32.gmra.mxu0 %vm76_vm1, %v60_v47 }
  0xb6   :  { %312 = vadd.xlane.f32.xlu1 %v311_v41 }
  0xba   :  { %v215_v49 = vpop.f32.mrf.mxu0 }
  0xbb   :  { %v2926_v5 = vadd.f32 %v2813_v13, %v215_v49 }
  0xbd   :  { %2472 = vmatmul.msk.f32.gmra.mxu0 %vm76_vm1, %v61_v51  ;;  %v314_v8 = vsel %vm292_vm2, %v2926_v5, 0.0 }
  0xc2   :  { %v218_v53 = vpop.f32.mrf.mxu0 }
  0xc3   :  { %v2942_v14 = vadd.f32 %v2813_v13, %v218_v53 }
  0xc5   :  { %2473 = vmatmul.msk.f32.gmra.mxu0 %vm76_vm1, %v62_v55 }
  0xca   :  { %v221_v59 = vpop.f32.mrf.mxu0 }
  0xd2   :  { %v224_v3 = vpop.f32.mrf.mxu0 }
  0xd3   :  { %v2974_v34 = vadd.f32 %v2813_v13, %v224_v3 }
  0xd5   :  { %v323_v36 = vsel %vm292_vm2, %v2974_v34, 0.0 }
  0xf9   :  { %v295_v60 = vpop.xlane.xlu0 %294 }
  0xfa   :  { %v396_v61 = vmul.f32 %v2911_v58, %v295_v60 }
  0xfc   :  { %v2915_v62 = vsub.f32 %v2817_v15, %v396_v61  ;;  %v227_v15 = vpop.f32.mrf.mxu0 }
  0xfd   :  { %v2986_v43 = vadd.f32 %v2813_v13, %v227_v15 }
  0xfe   :  { %v460_v0 = vmul.f32 %v2915_v62, %v2915_v62 }
  0xff   :  { %v326_v45 = vsel %vm292_vm2, %v2986_v43, 0.0 }
 0x100   :  { %v492_v1 = vsel %vm292_vm2, %v460_v0, 0.0  ;;  %v68_v0 = vld [vmem:[%s4884_s0 + $0xf0] sm:$0xff] }
 0x101   :  { %493 = vadd.xlane.f32.xlu0 %v492_v1  ;;  %v298_v2 = vpop.xlane.xlu0 %297  ;;  %2479 = vmatmul.msk.f32.gmra.mxu3 %vm76_vm1, %v68_v0  ;;  %v1173_v1 = vld [vmem:[%s4888_s5 + $0x18] sm:$0xff]  ;;  %v269_v0 = vpop.f32.mrf.mxu3 }
 0x102   :  { %v397_v4 = vmul.f32 %v2911_v58, %v298_v2  ;;  %1286 = vmatpush.msra.mxu1 %v1173_v1  ;;  %2547 = vmatpush.msrb.mxu3 %v1173_v1 }
 0x104   :  { %v2929_v6 = vsub.f32 %v2826_v19, %v397_v4  ;;  %v317_v19 = vsel %vm292_vm2, %v2942_v14, 0.0  ;;  %v230_v26 = vpop.f32.mrf.mxu0  ;;  %v1172_v4 = vld [vmem:[%s4888_s5 + $0x10] sm:$0xff] }
 0x105   :  { %v3000_v50 = vadd.f32 %v2813_v13, %v230_v26  ;;  %1287 = vmatpush.msra.mxu1 %v1172_v4  ;;  %2548 = vmatpush.msrb.mxu3 %v1172_v4 }
 0x106   :  { %v461_v9 = vmul.f32 %v2929_v6, %v2929_v6 }
 0x107   :  { %v329_v51 = vsel %vm292_vm2, %v3000_v50, 0.0 }
 0x108   :  { %v495_v10 = vsel %vm292_vm2, %v461_v9, 0.0  ;;  %v69_v9 = vld [vmem:[%s4884_s0 + $0xf8] sm:$0xff] }
 0x109   :  { %v301_v11 = vpop.xlane.xlu1 %300  ;;  %315 = vadd.xlane.f32.xlu0 %v314_v8  ;;  %496 = vadd.xlane.f32.xlu2 %v495_v10  ;;  %v1171_v10 = vld [vmem:[%s4888_s5 + $0x8] sm:$0xff] }
 0x10a   :  { %v398_v12 = vmul.f32 %v2911_v58, %v301_v11  ;;  %2480 = vmatmul.msk.f32.gmra.mxu3 %vm76_vm1, %v69_v9  ;;  %1288 = vmatpush.msra.mxu1 %v1171_v10  ;;  %v1170_v11 = vld [vmem:[%s4888_s5] sm:$0xff] }
 0x10b   :  { %2549 = vmatpush.msrb.mxu3 %v1171_v10 }
 0x10c   :  { %v2945_v16 = vsub.f32 %v2835_v23, %v398_v12  ;;  %v2958_v23 = vadd.f32 %v2813_v13, %v221_v59  ;;  %v233_v38 = vpop.f32.mrf.mxu0  ;;  %1289 = vmatpush.msra.mxu1 %v1170_v11 }
 0x10d   :  { %v3013_v55 = vadd.f32 %v2813_v13, %v233_v38  ;;  %2550 = vmatpush.msrb.mxu3 %v1170_v11 }
 0x10e   :  { %v462_v18 = vmul.f32 %v2945_v16, %v2945_v16  ;;  %v320_v28 = vsel %vm292_vm2, %v2958_v23, 0.0 }
 0x10f   :  { %v332_v56 = vsel %vm292_vm2, %v3013_v55, 0.0 }
 0x110   :  { %v498_v20 = vsel %vm292_vm2, %v462_v18, 0.0 }
 0x111   :  { %499 = vadd.xlane.f32.xlu1 %v498_v20  ;;  %v304_v21 = vpop.xlane.xlu1 %303  ;;  %318 = vadd.xlane.f32.xlu2 %v317_v19 }
 0x112   :  { %v399_v22 = vmul.f32 %v2911_v58, %v304_v21 }
 0x114   :  { %v2964_v25 = vsub.f32 %v2844_v27, %v399_v22  ;;  %v2995_v46 = vpop.f32.mrf.mxu0 }
 0x116   :  { %v463_v29 = vmul.f32 %v2964_v25, %v2964_v25 }
 0x118   :  { %v501_v30 = vsel %vm292_vm2, %v463_v29, 0.0 }
 0x119   :  { %v307_v32 = vpop.xlane.xlu2 %306  ;;  %321 = vadd.xlane.f32.xlu1 %v320_v28  ;;  %502 = vadd.xlane.f32.xlu0 %v501_v30 }
 0x11a   :  { %v400_v33 = vmul.f32 %v2911_v58, %v307_v32 }
 0x11c   :  { %v2977_v27 = vsub.f32 %v2853_v31, %v400_v33  ;;  %v3010_v54 = vpop.f32.mrf.mxu0 }
 0x11e   :  { %v464_v37 = vmul.f32 %v2977_v27, %v2977_v27 }
 0x120   :  { %v504_v40 = vsel %vm292_vm2, %v464_v37, 0.0 }
 0x121   :  { %v310_v41 = vpop.xlane.xlu2 %309  ;;  %324 = vadd.xlane.f32.xlu0 %v323_v36  ;;  %505 = vadd.xlane.f32.xlu2 %v504_v40  ;;  %v3066_v40 = vadd.f32 %v2813_v13, %v2995_v46 }
 0x122   :  { %v401_v42 = vmul.f32 %v2911_v58, %v310_v41 }
 0x124   :  { %v2989_v31 = vsub.f32 %v2862_v35, %v401_v42 }
 0x126   :  { %v465_v44 = vmul.f32 %v2989_v31, %v2989_v31 }
 0x128   :  { %v507_v47 = vsel %vm292_vm2, %v465_v44, 0.0 }
 0x129   :  { %508 = vadd.xlane.f32.xlu1 %v507_v47  ;;  %v313_v48 = vpop.xlane.xlu1 %312  ;;  %327 = vadd.xlane.f32.xlu2 %v326_v45  ;;  %v3076_v47 = vld [vmem:[%s4886_s3] ss:$0 sm:$0xff] }
 0x12a   :  { %v402_v49 = vmul.f32 %v2911_v58, %v313_v48 }
 0x12c   :  { %v3003_v35 = vsub.f32 %v2871_v39, %v402_v49  ;;  %v3017_v39 = vpop.f32.mrf.mxu0 }
 0x12e   :  { %v466_v52 = vmul.f32 %v3003_v35, %v3003_v35 }
 0x130   :  { %v510_v53 = vsel %vm292_vm2, %v466_v52, 0.0 }
 0x131   :  { %330 = vadd.xlane.f32.xlu1 %v329_v51  ;;  %511 = vadd.xlane.f32.xlu0 %v510_v53  ;;  %v335_v53 = vsel %vm292_vm2, %v3066_v40, 0.0 }
 0x134   :  { %v3019_v57 = vpop.f32.mrf.mxu0 }
 0x139   :  { %333 = vadd.xlane.f32.xlu0 %v332_v56 }
 0x13c   :  { %v3021_v59 = vpop.f32.mrf.mxu0 }
 0x144   :  { %v3023_v60 = vpop.f32.mrf.mxu0 }
 0x14c   :  { %v3025_v61 = vpop.f32.mrf.mxu0 }
 0x154   :  { %v3027_v63 = vpop.f32.mrf.mxu0 }
 0x15c   :  { %v3040_v8 = vpop.f32.mrf.mxu0 }
 0x164   :  { %v3059_v26 = vpop.f32.mrf.mxu0 }
 0x16c   :  { %v266_v56 = vpop.f32.mrf.mxu0 }
 0x174   :  { %v494_v2 = vpop.xlane.xlu0 %493 }
 0x175   :  { %v588_v3 = vmul.f32 %v494_v2, %v2911_v58 }
 0x177   :  { %v620_v7 = vadd.f32 1e-05, %v588_v3 }
 0x179   :  { %2565 = vrsqrt.f32 %v620_v7  ;;  %vm658_vm5 = vweird.f32 %v620_v7 }
 0x17c   :  { %v497_v12 = vpop.xlane.xlu2 %496  ;;  %v316_v15 = vpop.xlane.xlu0 %315 }
 0x17d   :  { %v589_v17 = vmul.f32 %v497_v12, %v2911_v58  ;;  %v403_v18 = vmul.f32 %v2911_v58, %v316_v15  ;;  %v3098_v12 = vadd.f32 %v2813_v13, %v3010_v54 }
 0x17f   :  { %v2566_v19 = vpop.eup %2565  ;;  %v621_v20 = vadd.f32 1e-05, %v589_v17  ;;  %v3055_v21 = vsub.f32 %v2926_v5, %v403_v18 }
 0x180   :  { %v653_v22 = vmul.f32 %v2566_v19, %v620_v7  ;;  %vm659_vm4 = vweird.f32 %v2566_v19 }
 0x181   :  { %2567 = vrsqrt.f32 %v621_v20  ;;  %v467_v24 = vmul.f32 %v3055_v21, %v3055_v21  ;;  %vm660_vm6 = vmor %vm658_vm5, %vm659_vm4  ;;  %vm668_vm8 = vweird.f32 %v621_v20 }
 0x182   :  { %v654_v28 = vmul.f32 %v2566_v19, %v653_v22 }
 0x183   :  { %v513_v29 = vsel %vm292_vm2, %v467_v24, 0.0 }
 0x184   :  { %v655_v30 = vmul.f32 0.5, %v654_v28  ;;  %v500_v32 = vpop.xlane.xlu1 %499  ;;  %v319_v33 = vpop.xlane.xlu2 %318  ;;  %514 = vadd.xlane.f32.xlu2 %v513_v29 }
 0x185   :  { %v590_v36 = vmul.f32 %v500_v32, %v2911_v58  ;;  %v404_v37 = vmul.f32 %v2911_v58, %v319_v33  ;;  %v338_v32 = vsel %vm292_vm2, %v3098_v12, 0.0 }
 0x186   :  { %v656_v5 = vsub.f32 1.5, %v655_v30 }
 0x187   :  { %v2568_v38 = vpop.eup %2567  ;;  %v3068_v41 = vadd.f32 1e-05, %v590_v36  ;;  %v3071_v42 = vsub.f32 %v2942_v14, %v404_v37  ;;  %v3084_v14 = vld [vmem:[%s4887_s4] ss:$0 sm:$0xff] }
 0x188   :  { %v657_v44 = vmul.f32 %v2566_v19, %v656_v5  ;;  %v663_v45 = vmul.f32 %v2568_v38, %v621_v20  ;;  %vm669_vm7 = vweird.f32 %v2568_v38 }
 0x189   :  { %2569 = vrsqrt.f32 %v3068_v41  ;;  %v468_v46 = vmul.f32 %v3071_v42, %v3071_v42  ;;  %vm670_vm9 = vmor %vm668_vm8, %vm669_vm7  ;;  %vm678_vm11 = vweird.f32 %v3068_v41 }
 0x18a   :  { %v661_v48 = vsel %vm660_vm6, %v2566_v19, %v657_v44  ;;  %v664_v49 = vmul.f32 %v2568_v38, %v663_v45  ;;  %v272_v45 = vpop.f32.mrf.mxu3 }
 0x18b   :  { %v972_v51 = vmul.f32 %v661_v48, %v2915_v62  ;;  %v516_v52 = vsel %vm292_vm2, %v468_v46, 0.0  ;;  %v3094_v62 = vadd.f32 %v2813_v13, %v266_v56 }
 0x18c   :  { %v665_v1 = vmul.f32 0.5, %v664_v49  ;;  %v322_v2 = vpop.xlane.xlu1 %321  ;;  %517 = vadd.xlane.f32.xlu1 %v516_v52  ;;  %336 = vadd.xlane.f32.xlu2 %v335_v53  ;;  %v503_v3 = vpop.xlane.xlu0 %502  ;;  %v3125_v49 = vadd.f32 %v2813_v13, %v3017_v39 }
 0x18d   :  { %v1007_v4 = vmul.f32 %v3076_v47, %v972_v51  ;;  %v405_v7 = vmul.f32 %v2911_v58, %v322_v2  ;;  %v591_v9 = vmul.f32 %v503_v3, %v2911_v58  ;;  %v365_v30 = vsel %vm292_vm2, %v3094_v62, 0.0 }
 0x18e   :  { %v666_v10 = vsub.f32 1.5, %v665_v1 }
 0x18f   :  { %v2570_v11 = vpop.eup %2569  ;;  %v1042_v15 = vadd.f32 %v3084_v14, %v1007_v4  ;;  %v3102_v17 = vsub.f32 %v2958_v23, %v405_v7  ;;  %v3104_v18 = vadd.f32 1e-05, %v591_v9 }
 0x190   :  { %v667_v19 = vmul.f32 %v2568_v38, %v666_v10  ;;  %v673_v22 = vmul.f32 %v2570_v11, %v3068_v41  ;;  %vm679_vm10 = vweird.f32 %v2570_v11  ;;  %v341_v41 = vsel %vm292_vm2, %v3125_v49, 0.0 }
 0x191   :  { %v1074_v24 = vmax.f32 %v1042_v15, 0.0  ;;  %2571 = vrsqrt.f32 %v3104_v18  ;;  %v469_v28 = vmul.f32 %v3102_v17, %v3102_v17  ;;  %vm680_vm12 = vmor %vm678_vm11, %vm679_vm10  ;;  %vm688_vm14 = vweird.f32 %v3104_v18 }
 0x192   :  { %v671_v54 = vsel %vm670_vm9, %v2568_v38, %v667_v19  ;;  %v674_v29 = vmul.f32 %v2570_v11, %v673_v22 }
 0x193   :  { %1106 = vst.msk [vmem:[#allocation2] sm:$0xff] %vm292_vm2, %v1074_v24  ;;  %v973_v23 = vmul.f32 %v671_v54, %v2929_v6  ;;  %v519_v20 = vsel %vm292_vm2, %v469_v28, 0.0  ;;  %v3121_v6 = vadd.f32 %v2813_v13, %v269_v0  ;;  %v3150_v28 = vadd.f32 %v2813_v13, %v272_v45 }
 0x194   :  { %v675_v33 = vmul.f32 0.5, %v674_v29  ;;  %520 = vadd.xlane.f32.xlu0 %v519_v20  ;;  %339 = vadd.xlane.f32.xlu1 %v338_v32  ;;  %v506_v36 = vpop.xlane.xlu2 %505  ;;  %v325_v37 = vpop.xlane.xlu0 %324  ;;  %v3154_v29 = vadd.f32 %v2813_v13, %v3019_v57 }
 0x195   :  { %v1008_v5 = vmul.f32 %v3076_v47, %v973_v23  ;;  %v592_v38 = vmul.f32 %v506_v36, %v2911_v58  ;;  %366 = vadd.xlane.f32.xlu2 %v365_v30  ;;  %v406_v44 = vmul.f32 %v2911_v58, %v325_v37  ;;  %v368_v7 = vsel %vm292_vm2, %v3121_v6, 0.0  ;;  %v275_v32 = vpop.f32.mrf.mxu3 }
 0x196   :  { %v676_v46 = vsub.f32 1.5, %v675_v33 }
 0x197   :  { %v2572_v48 = vpop.eup %2571  ;;  %v1043_v51 = vadd.f32 %v3084_v14, %v1008_v5  ;;  %v3128_v52 = vadd.f32 1e-05, %v592_v38  ;;  %v3131_v53 = vsub.f32 %v2974_v34, %v406_v44 }
 0x198   :  { %v677_v56 = vmul.f32 %v2570_v11, %v676_v46  ;;  %v683_v1 = vmul.f32 %v2572_v48, %v3104_v18  ;;  %vm689_vm13 = vweird.f32 %v2572_v48  ;;  %v344_v18 = vsel %vm292_vm2, %v3154_v29, 0.0 }
 0x199   :  { %v1075_v2 = vmax.f32 %v1043_v51, 0.0  ;;  %2573 = vrsqrt.f32 %v3128_v52  ;;  %v470_v39 = vmul.f32 %v3131_v53, %v3131_v53  ;;  %vm690_vm15 = vmor %vm688_vm14, %vm689_vm13  ;;  %vm698_vm1 = vweird.f32 %v3128_v52 }
 0x19a   :  { %v681_v0 = vsel %vm680_vm12, %v2570_v11, %v677_v56  ;;  %v684_v3 = vmul.f32 %v2572_v48, %v683_v1  ;;  %v1138_v4 = vld [vmem:[#allocation2] sm:$0xff] }
 0x19b   :  { %1107 = vst.msk [vmem:[#allocation2 + $0x8] sm:$0xff] %vm292_vm2, %v1075_v2  ;;  %v974_v34 = vmul.f32 %v681_v0, %v2945_v16  ;;  %2481 = vmatmul.msk.f32.vlgmr.msra.gmra.mxu1 %vm292_vm2, %v1138_v4  ;;  %v522_v9 = vsel %vm292_vm2, %v470_v39, 0.0  ;;  %v3179_v0 = vadd.f32 %v2813_v13, %v275_v32  ;;  %v3183_v4 = vadd.f32 %v2813_v13, %v3021_v59 }
 0x19c   :  { %v685_v10 = vmul.f32 0.5, %v684_v3  ;;  %v509_v15 = vpop.xlane.xlu1 %508  ;;  %342 = vadd.xlane.f32.xlu1 %v341_v41  ;;  %v328_v11 = vpop.xlane.xlu2 %327  ;;  %523 = vadd.xlane.f32.xlu0 %v522_v9 }
 0x19d   :  { %v1009_v19 = vmul.f32 %v3076_v47, %v974_v34  ;;  %v593_v22 = vmul.f32 %v509_v15, %v2911_v58  ;;  %v407_v24 = vmul.f32 %v2911_v58, %v328_v11  ;;  %369 = vadd.xlane.f32.xlu2 %v368_v7 }
 0x19e   :  { %v686_v16 = vsub.f32 1.5, %v685_v10 }
 0x19f   :  { %v2574_v54 = vpop.eup %2573  ;;  %v1044_v30 = vadd.f32 %v3084_v14, %v1009_v19  ;;  %v3157_v23 = vadd.f32 1e-05, %v593_v22  ;;  %v3160_v20 = vsub.f32 %v2986_v43, %v407_v24  ;;  %v371_v43 = vsel %vm292_vm2, %v3150_v28, 0.0  ;;  %v278_v19 = vpop.f32.mrf.mxu3 }
 0x1a0   :  { %v687_v33 = vmul.f32 %v2572_v48, %v686_v16  ;;  %v693_v36 = vmul.f32 %v2574_v54, %v3128_v52  ;;  %vm699_vm0 = vweird.f32 %v2574_v54  ;;  %v347_v52 = vsel %vm292_vm2, %v3183_v4, 0.0 }
 0x1a1   :  { %v1076_v37 = vmax.f32 %v1044_v30, 0.0  ;;  %2575 = vrsqrt.f32 %v3157_v23  ;;  %v471_v57 = vmul.f32 %v3160_v20, %v3160_v20  ;;  %vm700_vm3 = vmor %vm698_vm1, %vm699_vm0  ;;  %vm708_vm5 = vweird.f32 %v3157_v23 }
 0x1a2   :  { %v691_v5 = vsel %vm690_vm15, %v2572_v48, %v687_v33  ;;  %v694_v38 = vmul.f32 %v2574_v54, %v693_v36  ;;  %v1139_v44 = vld [vmem:[#allocation2 + $0x8] sm:$0xff] }
 0x1a3   :  { %1108 = vst.msk [vmem:[#allocation2 + $0x10] sm:$0xff] %vm292_vm2, %v1076_v37  ;;  %v975_v45 = vmul.f32 %v691_v5, %v2964_v25  ;;  %2482 = vmatmul.msk.f32.gmra.mxu1 %vm292_vm2, %v1139_v44  ;;  %v525_v46 = vsel %vm292_vm2, %v471_v57, 0.0  ;;  %v3208_v5 = vadd.f32 %v2813_v13, %v3023_v60 }
 0x1a4   :  { %v695_v51 = vmul.f32 0.5, %v694_v38  ;;  %v331_v56 = vpop.xlane.xlu1 %330  ;;  %345 = vadd.xlane.f32.xlu1 %v344_v18  ;;  %526 = vadd.xlane.f32.xlu0 %v525_v46  ;;  %v512_v48 = vpop.xlane.xlu0 %511 }
 0x1a5   :  { %v1010_v1 = vmul.f32 %v3076_v47, %v975_v45  ;;  %v408_v2 = vmul.f32 %v2911_v58, %v331_v56  ;;  %372 = vadd.xlane.f32.xlu2 %v371_v43  ;;  %v594_v39 = vmul.f32 %v512_v48, %v2911_v58 }
 0x1a6   :  { %v696_v25 = vsub.f32 1.5, %v695_v51 }
 0x1a7   :  { %v2576_v3 = vpop.eup %2575  ;;  %v1045_v7 = vadd.f32 %v3084_v14, %v1010_v1  ;;  %v3187_v34 = vsub.f32 %v3000_v50, %v408_v2  ;;  %v626_v41 = vadd.f32 1e-05, %v594_v39  ;;  %v374_v50 = vsel %vm292_vm2, %v3179_v0, 0.0  ;;  %v281_v2 = vpop.f32.mrf.mxu3 }
 0x1a8   :  { %v697_v9 = vmul.f32 %v2574_v54, %v696_v25  ;;  %v703_v10 = vmul.f32 %v2576_v3, %v3157_v23  ;;  %vm709_vm4 = vweird.f32 %v2576_v3  ;;  %v350_v23 = vsel %vm292_vm2, %v3208_v5, 0.0 }
 0x1a9   :  { %v1077_v15 = vmax.f32 %v1045_v7, 0.0  ;;  %2577 = vrsqrt.f32 %v626_v41  ;;  %v472_v11 = vmul.f32 %v3187_v34, %v3187_v34  ;;  %vm710_vm6 = vmor %vm708_vm5, %vm709_vm4  ;;  %v3227_v7 = vadd.f32 %v2813_v13, %v281_v2 }
 0x1aa   :  { %v701_v59 = vsel %vm700_vm3, %v2574_v54, %v697_v9  ;;  %v704_v22 = vmul.f32 %v2576_v3, %v703_v10  ;;  %v1140_v24 = vld [vmem:[#allocation2 + $0x10] sm:$0xff]  ;;  %vm718_vm8 = vweird.f32 %v626_v41 }
 0x1ab   :  { %1109 = vst.msk [vmem:[#allocation2 + $0x18] sm:$0xff] %vm292_vm2, %v1077_v15  ;;  %v976_v16 = vmul.f32 %v701_v59, %v2977_v27  ;;  %2483 = vmatmul.msk.f32.gmra.mxu1 %vm292_vm2, %v1140_v24  ;;  %v528_v30 = vsel %vm292_vm2, %v472_v11, 0.0  ;;  %v3204_v27 = vadd.f32 %v2813_v13, %v278_v19  ;;  %v380_v59 = vsel %vm292_vm2, %v3227_v7, 0.0 }
 0x1ac   :  { %v705_v32 = vmul.f32 0.5, %v704_v22  ;;  %348 = vadd.xlane.f32.xlu1 %v347_v52  ;;  %529 = vadd.xlane.f32.xlu0 %v528_v30  ;;  %v334_v54 = vpop.xlane.xlu0 %333 }
 0x1ad   :  { %v1011_v33 = vmul.f32 %v3076_v47, %v976_v16  ;;  %375 = vadd.xlane.f32.xlu2 %v374_v50  ;;  %v409_v36 = vmul.f32 %v2911_v58, %v334_v54  ;;  %v377_v60 = vsel %vm292_vm2, %v3204_v27, 0.0 }
 0x1ae   :  { %v706_v37 = vsub.f32 1.5, %v705_v32 }
 0x1af   :  { %v2578_v57 = vpop.eup %2577  ;;  %v1046_v38 = vadd.f32 %v3084_v14, %v1011_v33  ;;  %v3212_v44 = vsub.f32 %v3013_v55, %v409_v36 }
 0x1b0   :  { %v707_v43 = vmul.f32 %v2576_v3, %v706_v37  ;;  %v713_v45 = vmul.f32 %v2578_v57, %v626_v41  ;;  %vm719_vm7 = vweird.f32 %v2578_v57  ;;  %v3244_v41 = vadd.f32 %v2813_v13, %v3027_v63 }
 0x1b1   :  { %v1078_v18 = vmax.f32 %v1046_v38, 0.0  ;;  %v473_v46 = vmul.f32 %v3212_v44, %v3212_v44  ;;  %vm720_vm9 = vmor %vm718_vm8, %vm719_vm7 }
 0x1b2   :  { %v711_v51 = vsel %vm710_vm6, %v2576_v3, %v707_v43  ;;  %v714_v56 = vmul.f32 %v2578_v57, %v713_v45  ;;  %v1141_v48 = vld [vmem:[#allocation2 + $0x18] sm:$0xff] }
 0x1b3   :  { %1110 = vst.msk [vmem:[#allocation2 + $0x20] sm:$0xff] %vm292_vm2, %v1078_v18  ;;  %v977_v55 = vmul.f32 %v711_v51, %v2989_v31  ;;  %2484 = vmatmul.msk.f32.gmra.mxu1 %vm292_vm2, %v1141_v48  ;;  %v531_v1 = vsel %vm292_vm2, %v473_v46, 0.0  ;;  %v3231_v31 = vadd.f32 %v2813_v13, %v3025_v61 }
 0x1b4   :  { %v715_v39 = vmul.f32 0.5, %v714_v56  ;;  %351 = vadd.xlane.f32.xlu1 %v350_v23  ;;  %532 = vadd.xlane.f32.xlu0 %v531_v1 }
 0x1b5   :  { %v1012_v25 = vmul.f32 %v3076_v47, %v977_v55  ;;  %378 = vadd.xlane.f32.xlu2 %v377_v60  ;;  %v353_v61 = vsel %vm292_vm2, %v3231_v31, 0.0 }
 0x1b6   :  { %v716_v3 = vsub.f32 1.5, %v715_v39 }
 0x1b7   :  { %v1047_v9 = vadd.f32 %v3084_v14, %v1012_v25 }
 0x1b8   :  { %v717_v10 = vmul.f32 %v2578_v57, %v716_v3 }
 0x1b9   :  { %v1079_v15 = vmax.f32 %v1047_v9, 0.0 }
 0x1ba   :  { %v721_v11 = vsel %vm720_vm9, %v2578_v57, %v717_v10  ;;  %v1142_v19 = vld [vmem:[#allocation2 + $0x20] sm:$0xff] }
 0x1bb   :  { %1111 = vst.msk [vmem:[#allocation2 + $0x28] sm:$0xff] %vm292_vm2, %v1079_v15  ;;  %v978_v22 = vmul.f32 %v721_v11, %v3003_v35  ;;  %2485 = vmatmul.msk.f32.gmra.mxu1 %vm292_vm2, %v1142_v19  ;;  %v356_v35 = vsel %vm292_vm2, %v3244_v41, 0.0  ;;  %v284_v19 = vpop.f32.mrf.mxu3 }
 0x1bc   :  { %354 = vadd.xlane.f32.xlu1 %v353_v61 }
 0x1bd   :  { %v1013_v24 = vmul.f32 %v3076_v47, %v978_v22  ;;  %381 = vadd.xlane.f32.xlu2 %v380_v59 }
 0x1bf   :  { %v1048_v50 = vadd.f32 %v3084_v14, %v1013_v24 }
 0x1c1   :  { %v1080_v16 = vmax.f32 %v1048_v50, 0.0 }
 0x1c2   :  { %v1143_v52 = vld [vmem:[#allocation2 + $0x28] sm:$0xff] }
 0x1c3   :  { %1112 = vst.msk [vmem:[#allocation2 + $0x30] sm:$0xff] %vm292_vm2, %v1080_v16  ;;  %2486 = vmatmul.msk.f32.gmra.mxu1 %vm292_vm2, %v1143_v52 }
 0x1c4   :  { %357 = vadd.xlane.f32.xlu1 %v356_v35 }
 0x1ca   :  { %v1144_v30 = vld [vmem:[#allocation2 + $0x30] sm:$0xff] }
 0x1cb   :  { %2487 = vmatmul.msk.f32.gmra.mxu1 %vm292_vm2, %v1144_v30 }
 0x1f7   :  { %v515_v32 = vpop.xlane.xlu2 %514 }
 0x1f8   :  { %v595_v54 = vmul.f32 %v515_v32, %v2911_v58 }
 0x1fa   :  { %v627_v63 = vadd.f32 1e-05, %v595_v54 }
 0x1fc   :  { %2579 = vrsqrt.f32 %v627_v63  ;;  %vm728_vm11 = vweird.f32 %v627_v63 }
 0x1ff   :  { %v518_v33 = vpop.xlane.xlu1 %517  ;;  %v337_v36 = vpop.xlane.xlu2 %336 }
 0x200   :  { %v596_v37 = vmul.f32 %v518_v33, %v2911_v58  ;;  %v410_v57 = vmul.f32 %v2911_v58, %v337_v36  ;;  %v3284_v33 = vadd.f32 %v2813_v13, %v284_v19 }
 0x202   :  { %v2580_v38 = vpop.eup %2579  ;;  %v628_v43 = vadd.f32 1e-05, %v596_v37  ;;  %v3256_v45 = vsub.f32 %v3066_v40, %v410_v57 }
 0x203   :  { %v723_v18 = vmul.f32 %v2580_v38, %v627_v63  ;;  %vm729_vm10 = vweird.f32 %v2580_v38 }
 0x204   :  { %2581 = vrsqrt.f32 %v628_v43  ;;  %v474_v46 = vmul.f32 %v3256_v45, %v3256_v45  ;;  %vm730_vm12 = vmor %vm728_vm11, %vm729_vm10  ;;  %vm738_vm14 = vweird.f32 %v628_v43 }
 0x205   :  { %v724_v51 = vmul.f32 %v2580_v38, %v723_v18 }
 0x206   :  { %v534_v56 = vsel %vm292_vm2, %v474_v46, 0.0  ;;  %v3295_v46 = vadd.f32 %v2813_v13, %v3040_v8 }
 0x207   :  { %v725_v48 = vmul.f32 0.5, %v724_v51  ;;  %v340_v60 = vpop.xlane.xlu1 %339  ;;  %535 = vadd.xlane.f32.xlu0 %v534_v56  ;;  %v521_v55 = vpop.xlane.xlu0 %520 }
 0x208   :  { %v411_v23 = vmul.f32 %v2911_v58, %v340_v60  ;;  %v367_v1 = vpop.xlane.xlu2 %366  ;;  %v597_v2 = vmul.f32 %v521_v55, %v2911_v58  ;;  %v383_v60 = vsel %vm292_vm2, %v3284_v33, 0.0 }
 0x209   :  { %v726_v39 = vsub.f32 1.5, %v725_v48  ;;  %v420_v40 = vmul.f32 %v2911_v58, %v367_v1  ;;  %v287_v1 = vpop.f32.mrf.mxu3 }
 0x20a   :  { %v2582_v25 = vpop.eup %2581  ;;  %v3265_v3 = vsub.f32 %v3098_v12, %v411_v23  ;;  %v3267_v9 = vadd.f32 1e-05, %v597_v2 }
 0x20b   :  { %v727_v10 = vmul.f32 %v2580_v38, %v726_v39  ;;  %v733_v15 = vmul.f32 %v2582_v25, %v628_v43  ;;  %v3270_v11 = vsub.f32 %v3094_v62, %v420_v40  ;;  %vm739_vm13 = vweird.f32 %v2582_v25 }
 0x20c   :  { %2583 = vrsqrt.f32 %v3267_v9  ;;  %v475_v59 = vmul.f32 %v3265_v3, %v3265_v3  ;;  %vm740_vm15 = vmor %vm738_vm14, %vm739_vm13  ;;  %vm748_vm1 = vweird.f32 %v3267_v9 }
 0x20d   :  { %v731_v22 = vsel %vm730_vm12, %v2580_v38, %v727_v10  ;;  %v734_v61 = vmul.f32 %v2582_v25, %v733_v15  ;;  %v484_v12 = vmul.f32 %v3270_v11, %v3270_v11  ;;  %v359_v10 = vsel %vm292_vm2, %v3295_v46, 0.0 }
 0x20e   :  { %v979_v24 = vmul.f32 %v731_v22, %v3055_v21  ;;  %v537_v50 = vsel %vm292_vm2, %v475_v59, 0.0 }
 0x20f   :  { %v735_v16 = vmul.f32 0.5, %v734_v61  ;;  %v343_v52 = vpop.xlane.xlu1 %342  ;;  %v564_v62 = vsel %vm292_vm2, %v484_v12, 0.0  ;;  %538 = vadd.xlane.f32.xlu0 %v537_v50  ;;  %v524_v35 = vpop.xlane.xlu0 %523 }
 0x210   :  { %v1014_v30 = vmul.f32 %v3076_v47, %v979_v24  ;;  %v412_v32 = vmul.f32 %v2911_v58, %v343_v52  ;;  %565 = vadd.xlane.f32.xlu2 %v564_v62  ;;  %v370_v54 = vpop.xlane.xlu2 %369  ;;  %v598_v63 = vmul.f32 %v524_v35, %v2911_v58 }
 0x211   :  { %v736_v21 = vsub.f32 1.5, %v735_v16  ;;  %v421_v38 = vmul.f32 %v2911_v58, %v370_v54 }
 0x212   :  { %v2584_v36 = vpop.eup %2583  ;;  %v1049_v37 = vadd.f32 %v3084_v14, %v1014_v30  ;;  %v3288_v57 = vsub.f32 %v3125_v49, %v412_v32  ;;  %v3291_v18 = vadd.f32 1e-05, %v598_v63 }
 0x213   :  { %v737_v51 = vmul.f32 %v2582_v25, %v736_v21  ;;  %v743_v56 = vmul.f32 %v2584_v36, %v3267_v9  ;;  %v3306_v43 = vsub.f32 %v3121_v6, %v421_v38  ;;  %v3315_v6 = vadd.f32 %v2813_v13, %v287_v1 }
 0x214   :  { %v1081_v48 = vmax.f32 %v1049_v37, 0.0  ;;  %2585 = vrsqrt.f32 %v3291_v18  ;;  %v476_v49 = vmul.f32 %v3288_v57, %v3288_v57  ;;  %vm749_vm0 = vweird.f32 %v2584_v36 }
 0x215   :  { %v741_v55 = vsel %vm740_vm15, %v2582_v25, %v737_v51  ;;  %v744_v23 = vmul.f32 %v2584_v36, %v743_v56  ;;  %v485_v52 = vmul.f32 %v3306_v43, %v3306_v43  ;;  %vm750_vm3 = vmor %vm748_vm1, %vm749_vm0  ;;  %v386_v30 = vsel %vm292_vm2, %v3315_v6, 0.0 }
 0x216   :  { %1113 = vst.msk [vmem:[#allocation2 + $0x38] sm:$0xff] %vm292_vm2, %v1081_v48  ;;  %v980_v8 = vmul.f32 %v741_v55, %v3071_v42  ;;  %v540_v2 = vsel %vm292_vm2, %v476_v49, 0.0  ;;  %vm758_vm5 = vweird.f32 %v3291_v18 }
 0x217   :  { %v745_v39 = vmul.f32 0.5, %v744_v23  ;;  %541 = vadd.xlane.f32.xlu1 %v540_v2  ;;  %v346_v40 = vpop.xlane.xlu1 %345  ;;  %384 = vadd.xlane.f32.xlu0 %v383_v60  ;;  %v527_v15 = vpop.xlane.xlu0 %526  ;;  %v567_v38 = vsel %vm292_vm2, %v485_v52, 0.0 }
 0x218   :  { %v1015_v25 = vmul.f32 %v3076_v47, %v980_v8  ;;  %v413_v19 = vmul.f32 %v2911_v58, %v346_v40  ;;  %360 = vadd.xlane.f32.xlu2 %v359_v10  ;;  %v373_v59 = vpop.xlane.xlu2 %372  ;;  %v599_v42 = vmul.f32 %v527_v15, %v2911_v58 }
 0x219   :  { %v746_v22 = vsub.f32 1.5, %v745_v39  ;;  %v422_v61 = vmul.f32 %v2911_v58, %v373_v59 }
 0x21a   :  { %v2586_v12 = vpop.eup %2585  ;;  %v1050_v24 = vadd.f32 %v3084_v14, %v1015_v25  ;;  %v3320_v50 = vsub.f32 %v3154_v29, %v413_v19  ;;  %v3322_v16 = vadd.f32 1e-05, %v599_v42 }
 0x21b   :  { %v747_v62 = vmul.f32 %v2584_v36, %v746_v22  ;;  %v753_v13 = vmul.f32 %v2586_v12, %v3291_v18  ;;  %v3334_v63 = vsub.f32 %v3150_v28, %v422_v61  ;;  %vm759_vm4 = vweird.f32 %v2586_v12 }
 0x21c   :  { %v1082_v35 = vmax.f32 %v1050_v24, 0.0  ;;  %2587 = vrsqrt.f32 %v3322_v16  ;;  %v477_v29 = vmul.f32 %v3320_v50, %v3320_v50  ;;  %vm760_vm6 = vmor %vm758_vm5, %vm759_vm4  ;;  %vm768_vm8 = vweird.f32 %v3322_v16 }
 0x21d   :  { %v751_v32 = vsel %vm750_vm3, %v2584_v36, %v747_v62  ;;  %v754_v54 = vmul.f32 %v2586_v12, %v753_v13  ;;  %v1145_v21 = vld [vmem:[#allocation2 + $0x38] sm:$0xff]  ;;  %v486_v1 = vmul.f32 %v3334_v63, %v3334_v63 }
 0x21e   :  { %1114 = vst.msk [vmem:[#allocation2 + $0x40] sm:$0xff] %vm292_vm2, %v1082_v35  ;;  %v981_v9 = vmul.f32 %v751_v32, %v3102_v17  ;;  %2488 = vmatmul.msk.f32.gmra.mxu1 %vm292_vm2, %v1145_v21  ;;  %v543_v37 = vsel %vm292_vm2, %v477_v29, 0.0  ;;  %v2693_v17 = vld [vmem:[%s4885_s2] ss:$0 sm:$0xff] }
 0x21f   :  { %v755_v51 = vmul.f32 0.5, %v754_v54  ;;  %387 = vadd.xlane.f32.xlu1 %v386_v30  ;;  %v349_v56 = vpop.xlane.xlu1 %348  ;;  %568 = vadd.xlane.f32.xlu0 %v567_v38  ;;  %v530_v36 = vpop.xlane.xlu0 %529  ;;  %v3348_v55 = vadd.f32 %v2693_v17, %v3059_v26  ;;  %v570_v52 = vsel %vm292_vm2, %v486_v1, 0.0 }
 0x220   :  { %v1016_v48 = vmul.f32 %v3076_v47, %v981_v9  ;;  %v414_v28 = vmul.f32 %v2911_v58, %v349_v56  ;;  %544 = vadd.xlane.f32.xlu2 %v543_v37  ;;  %v376_v49 = vpop.xlane.xlu2 %375  ;;  %v600_v60 = vmul.f32 %v530_v36, %v2911_v58 }
 0x221   :  { %v756_v23 = vsub.f32 1.5, %v755_v51  ;;  %v423_v40 = vmul.f32 %v2911_v58, %v376_v49  ;;  %v362_v22 = vsel %vm292_vm2, %v3348_v55, 0.0 }
 0x222   :  { %v2588_v8 = vpop.eup %2587  ;;  %v1051_v2 = vadd.f32 %v3084_v14, %v1016_v48  ;;  %v3354_v39 = vsub.f32 %v3183_v4, %v414_v28  ;;  %v3357_v10 = vadd.f32 1e-05, %v600_v60 }
 0x223   :  { %v757_v15 = vmul.f32 %v2586_v12, %v756_v23  ;;  %v763_v26 = vmul.f32 %v2588_v8, %v3322_v16  ;;  %v3369_v18 = vsub.f32 %v3179_v0, %v423_v40  ;;  %vm769_vm7 = vweird.f32 %v2588_v8 }
 0x224   :  { %v1083_v25 = vmax.f32 %v1051_v2, 0.0  ;;  %2589 = vrsqrt.f32 %v3357_v10  ;;  %v478_v19 = vmul.f32 %v3354_v39, %v3354_v39  ;;  %vm770_vm9 = vmor %vm768_vm8, %vm769_vm7  ;;  %vm778_vm11 = vweird.f32 %v3357_v10 }
 0x225   :  { %v761_v59 = vsel %vm760_vm6, %v2586_v12, %v757_v15  ;;  %v764_v42 = vmul.f32 %v2588_v8, %v763_v26  ;;  %v1146_v4 = vld [vmem:[#allocation2 + $0x40] sm:$0xff]  ;;  %v487_v38 = vmul.f32 %v3369_v18, %v3369_v18 }
 0x226   :  { %1115 = vst.msk [vmem:[#allocation2 + $0x48] sm:$0xff] %vm292_vm2, %v1083_v25  ;;  %v982_v61 = vmul.f32 %v761_v59, %v3131_v53  ;;  %2489 = vmatmul.msk.f32.gmra.mxu1 %vm292_vm2, %v1146_v4  ;;  %v546_v24 = vsel %vm292_vm2, %v478_v19, 0.0 }
 0x227   :  { %v765_v62 = vmul.f32 0.5, %v764_v42  ;;  %v352_v12 = vpop.xlane.xlu1 %351  ;;  %571 = vadd.xlane.f32.xlu1 %v570_v52  ;;  %363 = vadd.xlane.f32.xlu0 %v362_v22  ;;  %v533_v13 = vpop.xlane.xlu0 %532  ;;  %v573_v23 = vsel %vm292_vm2, %v487_v38, 0.0 }
 0x228   :  { %v1017_v35 = vmul.f32 %v3076_v47, %v982_v61  ;;  %v415_v30 = vmul.f32 %v2911_v58, %v352_v12  ;;  %547 = vadd.xlane.f32.xlu2 %v546_v24  ;;  %v379_v53 = vpop.xlane.xlu2 %378  ;;  %v601_v0 = vmul.f32 %v533_v13, %v2911_v58 }
 0x229   :  { %v766_v29 = vsub.f32 1.5, %v765_v62  ;;  %v424_v32 = vmul.f32 %v2911_v58, %v379_v53 }
 0x22a   :  { %v2590_v54 = vpop.eup %2589  ;;  %v1052_v21 = vadd.f32 %v3084_v14, %v1017_v35  ;;  %v3380_v9 = vsub.f32 %v3208_v5, %v415_v30  ;;  %v3382_v37 = vadd.f32 1e-05, %v601_v0 }
 0x22b   :  { %v767_v51 = vmul.f32 %v2588_v8, %v766_v29  ;;  %v773_v56 = vmul.f32 %v2590_v54, %v3357_v10  ;;  %v3389_v36 = vsub.f32 %v3204_v27, %v424_v32  ;;  %vm779_vm10 = vweird.f32 %v2590_v54 }
 0x22c   :  { %v1084_v48 = vmax.f32 %v1052_v21, 0.0  ;;  %2591 = vrsqrt.f32 %v3382_v37  ;;  %v479_v5 = vmul.f32 %v3380_v9, %v3380_v9  ;;  %vm780_vm12 = vmor %vm778_vm11, %vm779_vm10  ;;  %vm788_vm14 = vweird.f32 %v3382_v37 }
 0x22d   :  { %v771_v28 = vsel %vm770_vm9, %v2588_v8, %v767_v51  ;;  %v774_v49 = vmul.f32 %v2590_v54, %v773_v56  ;;  %v1147_v60 = vld [vmem:[#allocation2 + $0x48] sm:$0xff]  ;;  %v488_v17 = vmul.f32 %v3389_v36, %v3389_v36 }
 0x22e   :  { %1116 = vst.msk [vmem:[#allocation2 + $0x50] sm:$0xff] %vm292_vm2, %v1084_v48  ;;  %v983_v16 = vmul.f32 %v771_v28, %v3160_v20  ;;  %2490 = vmatmul.msk.f32.gmra.mxu1 %vm292_vm2, %v1147_v60  ;;  %v549_v27 = vsel %vm292_vm2, %v479_v5, 0.0 }
 0x22f   :  { %v775_v1 = vmul.f32 0.5, %v774_v49  ;;  %v355_v2 = vpop.xlane.xlu1 %354  ;;  %550 = vadd.xlane.f32.xlu1 %v549_v27  ;;  %v576_v8 = vsel %vm292_vm2, %v488_v17, 0.0  ;;  %574 = vadd.xlane.f32.xlu0 %v573_v23 }
 0x230   :  { %v1018_v40 = vmul.f32 %v3076_v47, %v983_v16  ;;  %v416_v15 = vmul.f32 %v2911_v58, %v355_v2  ;;  %577 = vadd.xlane.f32.xlu2 %v576_v8  ;;  %v382_v26 = vpop.xlane.xlu2 %381  ;;  %v1291_v16 = vpop.f32.mrf.mxu1 }
 0x231   :  { %v776_v25 = vsub.f32 1.5, %v775_v1  ;;  %v425_v20 = vmul.f32 %v2911_v58, %v382_v26 }
 0x232   :  { %v2592_v19 = vpop.eup %2591  ;;  %v1053_v59 = vadd.f32 %v3084_v14, %v1018_v40  ;;  %v3407_v42 = vsub.f32 %v3231_v31, %v416_v15 }
 0x233   :  { %v777_v4 = vmul.f32 %v2590_v54, %v776_v25  ;;  %v783_v22 = vmul.f32 %v2592_v19, %v3382_v37  ;;  %v3412_v61 = vsub.f32 %v3227_v7, %v425_v20  ;;  %vm789_vm13 = vweird.f32 %v2592_v19 }
 0x234   :  { %v1085_v24 = vmax.f32 %v1053_v59, 0.0  ;;  %v480_v52 = vmul.f32 %v3407_v42, %v3407_v42  ;;  %vm790_vm15 = vmor %vm788_vm14, %vm789_vm13 }
 0x235   :  { %v781_v62 = vsel %vm780_vm12, %v2590_v54, %v777_v4  ;;  %v784_v12 = vmul.f32 %v2592_v19, %v783_v22  ;;  %v1148_v13 = vld [vmem:[#allocation2 + $0x50] sm:$0xff]  ;;  %v489_v31 = vmul.f32 %v3412_v61, %v3412_v61 }
 0x236   :  { %1117 = vst.msk [vmem:[#allocation2 + $0x58] sm:$0xff] %vm292_vm2, %v1085_v24  ;;  %v984_v10 = vmul.f32 %v781_v62, %v3187_v34  ;;  %2491 = vmatmul.msk.f32.gmra.mxu1 %vm292_vm2, %v1148_v13  ;;  %v552_v7 = vsel %vm292_vm2, %v480_v52, 0.0 }
 0x237   :  { %v785_v35 = vmul.f32 0.5, %v784_v12  ;;  %v358_v30 = vpop.xlane.xlu1 %357  ;;  %v579_v53 = vsel %vm292_vm2, %v489_v31, 0.0  ;;  %553 = vadd.xlane.f32.xlu0 %v552_v7 }
 0x238   :  { %v1019_v0 = vmul.f32 %v3076_v47, %v984_v10  ;;  %v417_v29 = vmul.f32 %v2911_v58, %v358_v30  ;;  %580 = vadd.xlane.f32.xlu1 %v579_v53 }
 0x239   :  { %v786_v32 = vsub.f32 1.5, %v785_v35  ;;  %v3460_v35 = vld [vmem:[%s4889_s6] ss:$0 sm:$0xff] }
 0x23a   :  { %v1054_v54 = vadd.f32 %v3084_v14, %v1019_v0  ;;  %v3427_v34 = vsub.f32 %v3244_v41, %v417_v29 }
 0x23b   :  { %v787_v21 = vmul.f32 %v2592_v19, %v786_v32 }
 0x23c   :  { %v1086_v38 = vmax.f32 %v1054_v54, 0.0  ;;  %v481_v51 = vmul.f32 %v3427_v34, %v3427_v34 }
 0x23d   :  { %v791_v56 = vsel %vm790_vm15, %v2592_v19, %v787_v21  ;;  %v1149_v48 = vld [vmem:[#allocation2 + $0x58] sm:$0xff] }
 0x23e   :  { %1118 = vst.msk [vmem:[#allocation2 + $0x60] sm:$0xff] %vm292_vm2, %v1086_v38  ;;  %v985_v5 = vmul.f32 %v791_v56, %v3212_v44  ;;  %2492 = vmatmul.msk.f32.gmra.mxu1 %vm292_vm2, %v1149_v48  ;;  %v555_v28 = vsel %vm292_vm2, %v481_v51, 0.0  ;;  %v1294_v44 = vpop.f32.mrf.mxu1  ;;  %v3478_v48 = vadd.f32 %v3460_v35, %v1291_v16 }
 0x23f   :  { %556 = vadd.xlane.f32.xlu2 %v555_v28 }
 0x240   :  { %v1020_v41 = vmul.f32 %v3076_v47, %v985_v5 }
 0x242   :  { %v1055_v37 = vadd.f32 %v3084_v14, %v1020_v41  ;;  %v3484_v41 = vadd.f32 %v3460_v35, %v1294_v44 }
 0x244   :  { %v1087_v49 = vmax.f32 %v1055_v37, 0.0 }
 0x245   :  { %v1150_v60 = vld [vmem:[#allocation2 + $0x60] sm:$0xff] }
 0x246   :  { %1119 = vst.msk [vmem:[#allocation2 + $0x68] sm:$0xff] %vm292_vm2, %v1087_v49  ;;  %2493 = vmatmul.msk.f32.gmra.mxu1 %vm292_vm2, %v1150_v60  ;;  %v3442_v1 = vpop.f32.mrf.mxu1 }
 0x24d   :  { %v1151_v17 = vld [vmem:[#allocation2 + $0x68] sm:$0xff] }
 0x24e   :  { %2494 = vmatmul.msk.f32.gmra.mxu1 %vm292_vm2, %v1151_v17  ;;  %v3450_v59 = vpop.f32.mrf.mxu1 }
 0x256   :  { %v3480_v5 = vpop.f32.mrf.mxu1 }
 0x27a   :  { %v536_v27 = vpop.xlane.xlu0 %535 }
 0x27b   :  { %v602_v23 = vmul.f32 %v536_v27, %v2911_v58 }
 0x27d   :  { %v634_v2 = vadd.f32 1e-05, %v602_v23 }
 0x27f   :  { %2593 = vrsqrt.f32 %v634_v2  ;;  %vm798_vm1 = vweird.f32 %v634_v2 }
 0x282   :  { %v539_v8 = vpop.xlane.xlu0 %538 }
 0x283   :  { %v566_v14 = vpop.xlane.xlu2 %565  ;;  %v603_v40 = vmul.f32 %v539_v8, %v2911_v58 }
 0x284   :  { %v612_v15 = vmul.f32 %v566_v14, %v2911_v58 }
 0x285   :  { %v2594_v26 = vpop.eup %2593  ;;  %v3446_v25 = vadd.f32 1e-05, %v603_v40 }
 0x286   :  { %v793_v20 = vmul.f32 %v2594_v26, %v634_v2  ;;  %v3448_v19 = vadd.f32 1e-05, %v612_v15  ;;  %vm799_vm0 = vweird.f32 %v2594_v26  ;;  %v3497_v15 = vld [vmem:[%s4887_s4] ss:$0 sm:$0xff] }
 0x287   :  { %2595 = vrsqrt.f32 %v3446_v25  ;;  %vm800_vm3 = vmor %vm798_vm1, %vm799_vm0  ;;  %vm808_vm6 = vweird.f32 %v3446_v25 }
 0x288   :  { %v794_v4 = vmul.f32 %v2594_v26, %v793_v20  ;;  %2597 = vrsqrt.f32 %v3448_v19  ;;  %vm898_vm7 = vweird.f32 %v3448_v19 }
 0x28a   :  { %v795_v22 = vmul.f32 0.5, %v794_v4  ;;  %v542_v24 = vpop.xlane.xlu1 %541  ;;  %v385_v52 = vpop.xlane.xlu0 %384 }
 0x28b   :  { %v604_v62 = vmul.f32 %v542_v24, %v2911_v58  ;;  %v361_v12 = vpop.xlane.xlu2 %360  ;;  %v426_v13 = vmul.f32 %v2911_v58, %v385_v52 }
 0x28c   :  { %v796_v31 = vsub.f32 1.5, %v795_v22  ;;  %v418_v10 = vmul.f32 %v2911_v58, %v361_v12 }
 0x28d   :  { %v2596_v7 = vpop.eup %2595  ;;  %v3462_v30 = vadd.f32 1e-05, %v604_v62  ;;  %v3465_v53 = vsub.f32 %v3284_v33, %v426_v13 }
 0x28e   :  { %v2598_v0 = vpop.eup %2597  ;;  %v797_v29 = vmul.f32 %v2594_v26, %v796_v31  ;;  %v803_v32 = vmul.f32 %v2596_v7, %v3446_v25  ;;  %v3469_v54 = vsub.f32 %v3295_v46, %v418_v10  ;;  %vm809_vm5 = vweird.f32 %v2596_v7 }
 0x28f   :  { %v893_v21 = vmul.f32 %v2598_v0, %v3448_v19  ;;  %2599 = vrsqrt.f32 %v3462_v30  ;;  %v490_v33 = vmul.f32 %v3465_v53, %v3465_v53  ;;  %vm899_vm4 = vweird.f32 %v2598_v0  ;;  %vm810_vm8 = vmor %vm808_vm6, %vm809_vm5 }
 0x290   :  { %v801_v38 = vsel %vm800_vm3, %v2594_v26, %v797_v29  ;;  %v804_v51 = vmul.f32 %v2596_v7, %v803_v32  ;;  %v482_v56 = vmul.f32 %v3469_v54, %v3469_v54  ;;  %vm900_vm9 = vmor %vm898_vm7, %vm899_vm4  ;;  %v1389_v19 = vsel %vm292_vm2, %v3478_v48, 0.0 }
 0x291   :  { %v986_v46 = vmul.f32 %v801_v38, %v3256_v45  ;;  %v894_v28 = vmul.f32 %v2598_v0, %v893_v21  ;;  %v582_v17 = vsel %vm292_vm2, %v490_v33, 0.0  ;;  %v3524_v29 = vadd.f32 %v3460_v35, %v3442_v1 }
 0x292   :  { %v805_v37 = vmul.f32 0.5, %v804_v51  ;;  %v388_v49 = vpop.xlane.xlu1 %387  ;;  %v558_v60 = vsel %vm292_vm2, %v482_v56, 0.0  ;;  %v569_v27 = vpop.xlane.xlu0 %568  ;;  %583 = vadd.xlane.f32.xlu0 %v582_v17  ;;  %vm818_vm11 = vweird.f32 %v3462_v30 }
 0x293   :  { %v1021_v23 = vmul.f32 %v3076_v47, %v986_v46  ;;  %v895_v2 = vmul.f32 0.5, %v894_v28  ;;  %v427_v16 = vmul.f32 %v2911_v58, %v388_v49  ;;  %559 = vadd.xlane.f32.xlu1 %v558_v60  ;;  %v545_v8 = vpop.xlane.xlu2 %544  ;;  %v613_v45 = vmul.f32 %v569_v27, %v2911_v58  ;;  %v1306_v28 = vpop.f32.mrf.mxu1 }
 0x294   :  { %v806_v44 = vsub.f32 1.5, %v805_v37  ;;  %v605_v14 = vmul.f32 %v545_v8, %v2911_v58  ;;  %v3540_v46 = vadd.f32 %v3460_v35, %v3450_v59 }
 0x295   :  { %v3492_v40 = vpop.eup %2599  ;;  %v1056_v47 = vadd.f32 %v3497_v15, %v1021_v23  ;;  %v896_v26 = vsub.f32 1.5, %v895_v2  ;;  %v3501_v20 = vsub.f32 %v3315_v6, %v427_v16  ;;  %v3503_v4 = vadd.f32 1e-05, %v613_v45 }
 0x296   :  { %v807_v22 = vmul.f32 %v2596_v7, %v806_v44  ;;  %v813_v24 = vmul.f32 %v3492_v40, %v3462_v30  ;;  %v3508_v52 = vadd.f32 1e-05, %v605_v14  ;;  %vm819_vm10 = vweird.f32 %v3492_v40 }
 0x297   :  { %v1088_v62 = vmax.f32 %v1056_v47, 0.0  ;;  %v897_v12 = vmul.f32 %v2598_v0, %v896_v26  ;;  %2601 = vrsqrt.f32 %v3503_v4  ;;  %v491_v10 = vmul.f32 %v3501_v20, %v3501_v20  ;;  %vm820_vm12 = vmor %vm818_vm11, %vm819_vm10 }
 0x298   :  { %v811_v6 = vsel %vm810_vm8, %v2596_v7, %v807_v22  ;;  %v814_v13 = vmul.f32 %v3492_v40, %v813_v24  ;;  %2603 = vrsqrt.f32 %v3508_v52  ;;  %v1398_v24 = vsel %vm292_vm2, %v3540_v46, 0.0 }
 0x299   :  { %1120 = vst.msk [vmem:[#allocation2 + $0x70] sm:$0xff] %vm292_vm2, %v1088_v62  ;;  %v901_v25 = vsel %vm900_vm9, %v2598_v0, %v897_v12  ;;  %v987_v31 = vmul.f32 %v811_v6, %v3265_v3  ;;  %v1392_v0 = vsel %vm292_vm2, %v3484_v41, 0.0  ;;  %v3532_v3 = vld [vmem:[%s4886_s3] ss:$0 sm:$0xff]  ;;  %v585_v1 = vsel %vm292_vm2, %v491_v10, 0.0 }
 0x29a   :  { %v996_v7 = vmul.f32 %v901_v25, %v3270_v11  ;;  %v815_v32 = vmul.f32 0.5, %v814_v13  ;;  %v572_v21 = vpop.xlane.xlu1 %571  ;;  %v364_v38 = vpop.xlane.xlu0 %363  ;;  %586 = vadd.xlane.f32.xlu2 %v585_v1  ;;  %v3584_v25 = vadd.f32 %v3460_v35, %v1306_v28  ;;  %vm908_vm13 = vweird.f32 %v3503_v4 }
 0x29b   :  { %v1022_v51 = vmul.f32 %v3532_v3, %v987_v31  ;;  %v614_v56 = vmul.f32 %v572_v21, %v2911_v58  ;;  %1390 = vadd.xlane.f32.xlu1 %v1389_v19  ;;  %v548_v33 = vpop.xlane.xlu2 %547  ;;  %v419_v11 = vmul.f32 %v2911_v58, %v364_v38  ;;  %v1309_v28 = vpop.f32.mrf.mxu1  ;;  %vm828_vm0 = vweird.f32 %v3508_v52 }
 0x29c   :  { %v1031_v37 = vmul.f32 %v3532_v3, %v996_v7  ;;  %v816_v49 = vsub.f32 1.5, %v815_v32  ;;  %v606_v23 = vmul.f32 %v548_v33, %v2911_v58 }
 0x29d   :  { %v3544_v60 = vpop.eup %2601  ;;  %v1057_v17 = vadd.f32 %v3497_v15, %v1022_v51  ;;  %v3547_v27 = vadd.f32 1e-05, %v614_v56  ;;  %v3551_v2 = vsub.f32 %v3348_v55, %v419_v11  ;;  %v3565_v55 = vsel %vm292_vm2, %v3524_v29, 0.0 }
 0x29e   :  { %v3553_v59 = vpop.eup %2603  ;;  %v1066_v16 = vadd.f32 %v3497_v15, %v1031_v37  ;;  %v817_v8 = vmul.f32 %v3492_v40, %v816_v49  ;;  %v903_v45 = vmul.f32 %v3544_v60, %v3503_v4  ;;  %v3574_v6 = vadd.f32 1e-05, %v606_v23 }
 0x29f   :  { %v1089_v44 = vmax.f32 %v1057_v17, 0.0  ;;  %v823_v14 = vmul.f32 %v3553_v59, %v3508_v52  ;;  %2605 = vrsqrt.f32 %v3547_v27  ;;  %v483_v13 = vmul.f32 %v3551_v2, %v3551_v2 }
 0x2a0   :  { %v1098_v47 = vmax.f32 %v1066_v16, 0.0  ;;  %v821_v26 = vsel %vm820_vm12, %v3492_v40, %v817_v8  ;;  %v904_v22 = vmul.f32 %v3544_v60, %v903_v45  ;;  %v1152_v30 = vld [vmem:[#allocation2 + $0x70] sm:$0xff]  ;;  %v3581_v40 = vadd.f32 %v3460_v35, %v3480_v5 }
 0x2a1   :  { %1121 = vst.msk [vmem:[#allocation2 + $0x78] sm:$0xff] %vm292_vm2, %v1089_v44  ;;  %v988_v62 = vmul.f32 %v821_v26, %v3288_v57  ;;  %v824_v12 = vmul.f32 %v3553_v59, %v823_v14  ;;  %2495 = vmatmul.msk.f32.gmra.mxu1 %vm292_vm2, %v1152_v30  ;;  %vm909_vm14 = vweird.f32 %v3544_v60  ;;  %2607 = vrsqrt.f32 %v3574_v6 }
 0x2a2   :  { %1130 = vst.msk [vmem:[#allocation2 + $0xc0] sm:$0xff] %vm292_vm2, %v1098_v47  ;;  %v905_v31 = vmul.f32 0.5, %v904_v22  ;;  %v551_v57 = vpop.xlane.xlu1 %550  ;;  %v575_v10 = vpop.xlane.xlu0 %574  ;;  %1393 = vadd.xlane.f32.xlu2 %v1392_v0  ;;  %v561_v51 = vsel %vm292_vm2, %v483_v13, 0.0  ;;  %vm829_vm15 = vweird.f32 %v3553_v59  ;;  %vm910_vm1 = vmor %vm908_vm13, %vm909_vm14  ;;  %v1401_v14 = vsel %vm292_vm2, %v3581_v40, 0.0 }
 0x2a3   :  { %v1023_v19 = vmul.f32 %v3532_v3, %v988_v62  ;;  %v825_v7 = vmul.f32 0.5, %v824_v12  ;;  %v578_v32 = vpop.xlane.xlu2 %577  ;;  %1399 = vadd.xlane.f32.xlu1 %v1398_v24  ;;  %v607_v21 = vmul.f32 %v551_v57, %v2911_v58  ;;  %562 = vadd.xlane.f32.xlu0 %v561_v51  ;;  %v615_v11 = vmul.f32 %v575_v10, %v2911_v58  ;;  %vm830_vm3 = vmor %vm828_vm0, %vm829_vm15 }
 0x2a4   :  { %v906_v5 = vsub.f32 1.5, %v905_v31  ;;  %v616_v38 = vmul.f32 %v578_v32, %v2911_v58  ;;  %v3622_v4 = vadd.f32 %v3460_v35, %v1309_v28  ;;  %v1404_v13 = vsel %vm292_vm2, %v3584_v25, 0.0 }
 0x2a5   :  { %v3594_v56 = vpop.eup %2605  ;;  %v1058_v1 = vadd.f32 %v3497_v15, %v1023_v19  ;;  %v826_v33 = vsub.f32 1.5, %v825_v7  ;;  %v3603_v49 = vadd.f32 1e-05, %v607_v21  ;;  %v3612_v8 = vadd.f32 1e-05, %v615_v11 }
 0x2a6   :  { %v907_v37 = vmul.f32 %v3544_v60, %v906_v5  ;;  %v913_v0 = vmul.f32 %v3594_v56, %v3547_v27  ;;  %v3610_v16 = vadd.f32 1e-05, %v616_v38  ;;  %vm919_vm4 = vweird.f32 %v3594_v56 }
 0x2a7   :  { %v1090_v17 = vmax.f32 %v1058_v1, 0.0  ;;  %v827_v23 = vmul.f32 %v3553_v59, %v826_v33  ;;  %2609 = vrsqrt.f32 %v3603_v49  ;;  %v3619_v47 = vpop.eup %2607  ;;  %vm918_vm5 = vweird.f32 %v3547_v27 }
 0x2a8   :  { %v911_v52 = vsel %vm910_vm1, %v3544_v60, %v907_v37  ;;  %v914_v45 = vmul.f32 %v3594_v56, %v913_v0  ;;  %v1153_v44 = vld [vmem:[#allocation2 + $0x78] sm:$0xff]  ;;  %2611 = vrsqrt.f32 %v3610_v16  ;;  %v833_v62 = vmul.f32 %v3619_v47, %v3574_v6  ;;  %vm920_vm6 = vmor %vm918_vm5, %vm919_vm4 }
 0x2a9   :  { %1122 = vst.msk [vmem:[#allocation2 + $0x80] sm:$0xff] %vm292_vm2, %v1090_v17  ;;  %v831_v26 = vsel %vm830_vm3, %v3553_v59, %v827_v23  ;;  %v997_v22 = vmul.f32 %v911_v52, %v3306_v43  ;;  %2496 = vmatmul.msk.f32.gmra.mxu1 %vm292_vm2, %v1153_v44  ;;  %v1162_v60 = vld [vmem:[#allocation2 + $0xc0] sm:$0xff]  ;;  %2613 = vrsqrt.f32 %v3612_v8  ;;  %v1407_v5 = vsel %vm292_vm2, %v3622_v4, 0.0 }
 0x2aa   :  { %v989_v30 = vmul.f32 %v831_v26, %v3320_v50  ;;  %v915_v24 = vmul.f32 0.5, %v914_v45  ;;  %2505 = vmatmul.msk.f32.vlgmr.msrb.gmra.mxu3 %vm292_vm2, %v1162_v60  ;;  %v554_v12 = vpop.xlane.xlu0 %553  ;;  %v834_v10 = vmul.f32 %v3619_v47, %v833_v62  ;;  %1402 = vadd.xlane.f32.xlu2 %v1401_v14  ;;  %vm839_vm7 = vweird.f32 %v3619_v47 }
 0x2ab   :  { %v1032_v59 = vmul.f32 %v3532_v3, %v997_v22  ;;  %v581_v43 = vpop.xlane.xlu1 %580  ;;  %v608_v31 = vmul.f32 %v554_v12, %v2911_v58  ;;  %1396 = vadd.xlane.f32.xlu0 %v3565_v55  ;;  %vm838_vm8 = vweird.f32 %v3574_v6  ;;  %vm848_vm9 = vweird.f32 %v3603_v49 }
 0x2ac   :  { %v1024_v50 = vmul.f32 %v3532_v3, %v989_v30  ;;  %v916_v57 = vsub.f32 1.5, %v915_v24  ;;  %v617_v19 = vmul.f32 %v581_v43, %v2911_v58  ;;  %v835_v1 = vmul.f32 0.5, %v834_v10  ;;  %vm840_vm10 = vmor %vm838_vm8, %vm839_vm7 }
 0x2ad   :  { %v1067_v7 = vadd.f32 %v3497_v15, %v1032_v59  ;;  %v3645_v32 = vadd.f32 1e-05, %v608_v31  ;;  %v3649_v21 = vpop.eup %2609  ;;  %vm938_vm11 = vweird.f32 %v3610_v16  ;;  %vm928_vm12 = vweird.f32 %v3612_v8 }
 0x2ae   :  { %v1059_v38 = vadd.f32 %v3497_v15, %v1024_v50  ;;  %v917_v51 = vmul.f32 %v3594_v56, %v916_v57  ;;  %v3653_v33 = vadd.f32 1e-05, %v617_v19  ;;  %v3655_v11 = vpop.eup %2611  ;;  %v843_v27 = vmul.f32 %v3649_v21, %v3603_v49 }
 0x2af   :  { %v1099_v28 = vmax.f32 %v1067_v7, 0.0  ;;  %2615 = vrsqrt.f32 %v3645_v32  ;;  %v836_v0 = vsub.f32 1.5, %v835_v1  ;;  %v933_v17 = vmul.f32 %v3655_v11, %v3610_v16  ;;  %v3666_v52 = vpop.eup %2613 }
 0x2b0   :  { %v1091_v55 = vmax.f32 %v1059_v38, 0.0  ;;  %v921_v37 = vsel %vm920_vm6, %v3594_v56, %v917_v51  ;;  %v1154_v23 = vld [vmem:[#allocation2 + $0x80] sm:$0xff]  ;;  %v844_v44 = vmul.f32 %v3649_v21, %v843_v27  ;;  %2617 = vrsqrt.f32 %v3653_v33 }
 0x2b1   :  { %1131 = vst.msk [vmem:[#allocation2 + $0xc8] sm:$0xff] %vm292_vm2, %v1099_v28  ;;  %v998_v45 = vmul.f32 %v921_v37, %v3334_v63  ;;  %2497 = vmatmul.msk.f32.gmra.mxu1 %vm292_vm2, %v1154_v23  ;;  %v837_v56 = vmul.f32 %v3619_v47, %v836_v0  ;;  %v934_v14 = vmul.f32 %v3655_v11, %v933_v17  ;;  %vm849_vm13 = vweird.f32 %v3649_v21 }
 0x2b2   :  { %1123 = vst.msk [vmem:[#allocation2 + $0x88] sm:$0xff] %vm292_vm2, %v1091_v55  ;;  %v923_v26 = vmul.f32 %v3666_v52, %v3612_v8  ;;  %v557_v63 = vpop.xlane.xlu2 %556  ;;  %v845_v22 = vmul.f32 0.5, %v844_v44  ;;  %1408 = vadd.xlane.f32.xlu2 %v1407_v5  ;;  %vm939_vm14 = vweird.f32 %v3655_v11  ;;  %vm850_vm15 = vmor %vm848_vm9, %vm849_vm13  ;;  %vm929_vm0 = vweird.f32 %v3666_v52 }
 0x2b3   :  { %v1033_v6 = vmul.f32 %v3532_v3, %v998_v45  ;;  %v841_v60 = vsel %vm840_vm10, %v3619_v47, %v837_v56  ;;  %v935_v30 = vmul.f32 0.5, %v934_v14  ;;  %v609_v62 = vmul.f32 %v557_v63, %v2911_v58  ;;  %1405 = vadd.xlane.f32.xlu0 %v1404_v13  ;;  %vm940_vm1 = vmor %vm938_vm11, %vm939_vm14 }
 0x2b4   :  { %v924_v24 = vmul.f32 %v3666_v52, %v923_v26  ;;  %v990_v43 = vmul.f32 %v841_v60, %v3354_v39  ;;  %v846_v31 = vsub.f32 1.5, %v845_v22  ;;  %vm930_vm3 = vmor %vm928_vm12, %vm929_vm0  ;;  %vm858_vm6 = vweird.f32 %v3645_v32 }
 0x2b5   :  { %v3688_v12 = vpop.eup %2615  ;;  %v1068_v59 = vadd.f32 %v3497_v15, %v1033_v6  ;;  %v936_v50 = vsub.f32 1.5, %v935_v30  ;;  %v3698_v38 = vadd.f32 1e-05, %v609_v62  ;;  %vm948_vm7 = vweird.f32 %v3653_v33 }
 0x2b6   :  { %v925_v47 = vmul.f32 0.5, %v924_v24  ;;  %v853_v57 = vmul.f32 %v3688_v12, %v3645_v32  ;;  %v2618_v10 = vpop.eup %2617  ;;  %v1025_v7 = vmul.f32 %v3532_v3, %v990_v43  ;;  %v847_v5 = vmul.f32 %v3649_v21, %v846_v31 }
 0x2b7   :  { %v1100_v19 = vmax.f32 %v1068_v59, 0.0  ;;  %v937_v39 = vmul.f32 %v3655_v11, %v936_v50  ;;  %v943_v51 = vmul.f32 %v2618_v10, %v3653_v33  ;;  %2619 = vrsqrt.f32 %v3698_v38 }
 0x2b8   :  { %v926_v13 = vsub.f32 1.5, %v925_v47  ;;  %v1163_v1 = vld [vmem:[#allocation2 + $0xc8] sm:$0xff]  ;;  %v1060_v28 = vadd.f32 %v3497_v15, %v1025_v7  ;;  %v851_v27 = vsel %vm850_vm15, %v3649_v21, %v847_v5  ;;  %v854_v49 = vmul.f32 %v3688_v12, %v853_v57 }
 0x2b9   :  { %1132 = vst.msk [vmem:[#allocation2 + $0xd0] sm:$0xff] %vm292_vm2, %v1100_v19  ;;  %v1155_v55 = vld [vmem:[#allocation2 + $0x88] sm:$0xff]  ;;  %2506 = vmatmul.msk.f32.gmra.mxu3 %vm292_vm2, %v1163_v1  ;;  %v991_v37 = vmul.f32 %v851_v27, %v3380_v9  ;;  %v941_v0 = vsel %vm940_vm1, %v3655_v11, %v937_v39  ;;  %v944_v23 = vmul.f32 %v2618_v10, %v943_v51  ;;  %vm859_vm4 = vweird.f32 %v3688_v12 }
 0x2ba   :  { %v927_v17 = vmul.f32 %v3666_v52, %v926_v13  ;;  %2498 = vmatmul.msk.f32.gmra.mxu1 %vm292_vm2, %v1155_v55  ;;  %v1092_v21 = vmax.f32 %v1060_v28, 0.0  ;;  %v1000_v16 = vmul.f32 %v941_v0, %v3389_v36  ;;  %v855_v45 = vmul.f32 0.5, %v854_v49  ;;  %vm860_vm8 = vmor %vm858_vm6, %vm859_vm4 }
 0x2bb   :  { %v1026_v44 = vmul.f32 %v3532_v3, %v991_v37  ;;  %v945_v56 = vmul.f32 0.5, %v944_v23  ;;  %vm949_vm5 = vweird.f32 %v2618_v10  ;;  %vm868_vm11 = vweird.f32 %v3698_v38  ;;  %v1312_v23 = vpop.f32.mrf.mxu1 }
 0x2bc   :  { %v931_v9 = vsel %vm930_vm3, %v3666_v52, %v927_v17  ;;  %1124 = vst.msk [vmem:[#allocation2 + $0x90] sm:$0xff] %vm292_vm2, %v1092_v21  ;;  %v1035_v11 = vmul.f32 %v3532_v3, %v1000_v16  ;;  %v856_v26 = vsub.f32 1.5, %v855_v45  ;;  %vm950_vm9 = vmor %vm948_vm7, %vm949_vm5 }
 0x2bd   :  { %v999_v14 = vmul.f32 %v931_v9, %v3369_v18  ;;  %v1061_v36 = vadd.f32 %v3497_v15, %v1026_v44  ;;  %v946_v63 = vsub.f32 1.5, %v945_v56  ;;  %v2620_v8 = vpop.eup %2619 }
 0x2be   :  { %v1070_v6 = vadd.f32 %v3497_v15, %v1035_v11  ;;  %v857_v52 = vmul.f32 %v3688_v12, %v856_v26  ;;  %v863_v18 = vmul.f32 %v2620_v8, %v3698_v38  ;;  %vm869_vm10 = vweird.f32 %v2620_v8 }
 0x2bf   :  { %v1034_v22 = vmul.f32 %v3532_v3, %v999_v14  ;;  %v1093_v60 = vmax.f32 %v1061_v36, 0.0  ;;  %v947_v30 = vmul.f32 %v2618_v10, %v946_v63  ;;  %vm870_vm12 = vmor %vm868_vm11, %vm869_vm10 }
 0x2c0   :  { %v1164_v24 = vld [vmem:[#allocation2 + $0xd0] sm:$0xff]  ;;  %v1102_v62 = vmax.f32 %v1070_v6, 0.0  ;;  %v861_v43 = vsel %vm860_vm8, %v3688_v12, %v857_v52  ;;  %v864_v50 = vmul.f32 %v2620_v8, %v863_v18 }
 0x2c1   :  { %v1069_v59 = vadd.f32 %v3497_v15, %v1034_v22  ;;  %2507 = vmatmul.msk.f32.gmra.mxu3 %vm292_vm2, %v1164_v24  ;;  %1125 = vst.msk [vmem:[#allocation2 + $0x98] sm:$0xff] %vm292_vm2, %v1093_v60  ;;  %v951_v31 = vsel %vm950_vm9, %v2618_v10, %v947_v30  ;;  %v992_v32 = vmul.f32 %v861_v43, %v3407_v42 }
 0x2c2   :  { %1134 = vst.msk [vmem:[#allocation2 + $0xe0] sm:$0xff] %vm292_vm2, %v1102_v62  ;;  %v1001_v47 = vmul.f32 %v951_v31, %v3412_v61  ;;  %v865_v19 = vmul.f32 0.5, %v864_v50 }
 0x2c3   :  { %v1101_v33 = vmax.f32 %v1069_v59, 0.0  ;;  %v1027_v57 = vmul.f32 %v3532_v3, %v992_v32  ;;  %v1156_v7 = vld [vmem:[#allocation2 + $0x90] sm:$0xff]  ;;  %v3763_v21 = vpop.f32.mrf.mxu1 }
 0x2c4   :  { %v1036_v12 = vmul.f32 %v3532_v3, %v1001_v47  ;;  %2499 = vmatmul.msk.f32.gmra.mxu1 %vm292_vm2, %v1156_v7  ;;  %v866_v5 = vsub.f32 1.5, %v865_v19 }
 0x2c5   :  { %1133 = vst.msk [vmem:[#allocation2 + $0xd8] sm:$0xff] %vm292_vm2, %v1101_v33  ;;  %v1062_v10 = vadd.f32 %v3497_v15, %v1027_v57 }
 0x2c6   :  { %v1071_v42 = vadd.f32 %v3497_v15, %v1036_v12  ;;  %v867_v13 = vmul.f32 %v2620_v8, %v866_v5 }
 0x2c7   :  { %v1094_v39 = vmax.f32 %v1062_v10, 0.0 }
 0x2c8   :  { %v1103_v61 = vmax.f32 %v1071_v42, 0.0  ;;  %v871_v51 = vsel %vm870_vm12, %v2620_v8, %v867_v13  ;;  %v1157_v1 = vld [vmem:[#allocation2 + $0x98] sm:$0xff] }
 0x2c9   :  { %1126 = vst.msk [vmem:[#allocation2 + $0xa0] sm:$0xff] %vm292_vm2, %v1094_v39  ;;  %v993_v28 = vmul.f32 %v871_v51, %v3427_v34  ;;  %v1166_v0 = vld [vmem:[#allocation2 + $0xe0] sm:$0xff] }
 0x2ca   :  { %1135 = vst.msk [vmem:[#allocation2 + $0xe8] sm:$0xff] %vm292_vm2, %v1103_v61 }
 0x2cb   :  { %v1028_v49 = vmul.f32 %v3532_v3, %v993_v28  ;;  %v3767_v14 = vpop.f32.mrf.mxu1 }
 0x2cc   :  { %v1165_v27 = vld [vmem:[#allocation2 + $0xd8] sm:$0xff]  ;;  %2500 = vmatmul.msk.f32.gmra.mxu1 %vm292_vm2, %v1157_v1 }
 0x2cd   :  { %2508 = vmatmul.msk.f32.gmra.mxu3 %vm292_vm2, %v1165_v27  ;;  %v1063_v55 = vadd.f32 %v3497_v15, %v1028_v49 }
 0x2cf   :  { %v1095_v38 = vmax.f32 %v1063_v55, 0.0 }
 0x2d0   :  { %v1158_v37 = vld [vmem:[#allocation2 + $0xa0] sm:$0xff] }
 0x2d1   :  { %1127 = vst.msk [vmem:[#allocation2 + $0xa8] sm:$0xff] %vm292_vm2, %v1095_v38  ;;  %v1167_v34 = vld [vmem:[#allocation2 + $0xe8] sm:$0xff] }
 0x2d3   :  { %v3783_v47 = vpop.f32.mrf.mxu1 }
 0x2d4   :  { %2501 = vmatmul.msk.f32.gmra.mxu1 %vm292_vm2, %v1158_v37 }
 0x2d5   :  { %2509 = vmatmul.msk.f32.gmra.mxu3 %vm292_vm2, %v1166_v0 }
 0x2d8   :  { %v1159_v17 = vld [vmem:[#allocation2 + $0xa8] sm:$0xff] }
 0x2dc   :  { %2502 = vmatmul.msk.f32.gmra.mxu1 %vm292_vm2, %v1159_v17 }
 0x2dd   :  { %2510 = vmatmul.msk.f32.gmra.mxu3 %vm292_vm2, %v1167_v34 }
 0x305   :  { %v584_v45 = vpop.xlane.xlu0 %583 }
 0x306   :  { %v560_v16 = vpop.xlane.xlu1 %559  ;;  %v618_v9 = vmul.f32 %v584_v45, %v2911_v58 }
 0x307   :  { %v610_v44 = vmul.f32 %v560_v16, %v2911_v58 }
 0x308   :  { %v650_v11 = vadd.f32 1e-05, %v618_v9 }
 0x309   :  { %v642_v56 = vadd.f32 1e-05, %v610_v44 }
 0x30a   :  { %vm958_vm1 = vweird.f32 %v650_v11 }
 0x30b   :  { %2621 = vrsqrt.f32 %v642_v56  ;;  %vm878_vm15 = vweird.f32 %v642_v56 }
 0x30c   :  { %2623 = vrsqrt.f32 %v650_v11 }
 0x30d   :  { %v587_v63 = vpop.xlane.xlu2 %586 }
 0x30e   :  { %v1391_v26 = vpop.xlane.xlu1 %1390  ;;  %v619_v8 = vmul.f32 %v587_v63, %v2911_v58 }
 0x30f   :  { %v1485_v36 = vmul.f32 %v1391_v26, %v2911_v58 }
 0x310   :  { %v3774_v30 = vadd.f32 1e-05, %v619_v8 }
 0x311   :  { %v2622_v6 = vpop.eup %2621  ;;  %v3772_v22 = vsub.f32 %v3478_v48, %v1485_v36  ;;  %v3781_v48 = vadd.f32 %v3460_v35, %v1312_v23 }
 0x312   :  { %v2624_v52 = vpop.eup %2623  ;;  %v873_v60 = vmul.f32 %v2622_v6, %v642_v56  ;;  %2625 = vrsqrt.f32 %v3774_v30  ;;  %vm879_vm13 = vweird.f32 %v2622_v6  ;;  %v3813_v56 = vadd.f32 %v3460_v35, %v3763_v21 }
 0x313   :  { %v953_v18 = vmul.f32 %v2624_v52, %v650_v11  ;;  %v1549_v24 = vmul.f32 %v3772_v22, %v3772_v22  ;;  %vm959_vm14 = vweird.f32 %v2624_v52  ;;  %vm880_vm0 = vmor %vm878_vm15, %vm879_vm13  ;;  %v1410_v49 = vsel %vm292_vm2, %v3781_v48, 0.0  ;;  %v1324_v11 = vpop.f32.mrf.mxu1 }
 0x314   :  { %v874_v62 = vmul.f32 %v2622_v6, %v873_v60  ;;  %vm960_vm3 = vmor %vm958_vm1, %vm959_vm14  ;;  %vm968_vm5 = vweird.f32 %v3774_v30 }
 0x315   :  { %v954_v59 = vmul.f32 %v2624_v52, %v953_v18  ;;  %v1581_v43 = vsel %vm292_vm2, %v1549_v24, 0.0  ;;  %v1394_v33 = vpop.xlane.xlu2 %1393 }
 0x316   :  { %v875_v31 = vmul.f32 0.5, %v874_v62  ;;  %1582 = vadd.xlane.f32.xlu1 %v1581_v43  ;;  %v1400_v32 = vpop.xlane.xlu1 %1399  ;;  %v1486_v19 = vmul.f32 %v1394_v33, %v2911_v58  ;;  %v563_v12 = vpop.xlane.xlu0 %562  ;;  %v1413_v43 = vsel %vm292_vm2, %v3813_v56, 0.0 }
 0x317   :  { %v955_v50 = vmul.f32 0.5, %v954_v59  ;;  %v1488_v7 = vmul.f32 %v1400_v32, %v2911_v58  ;;  %v611_v5 = vmul.f32 %v563_v12, %v2911_v58 }
 0x318   :  { %v876_v57 = vsub.f32 1.5, %v875_v31  ;;  %v2626_v42 = vpop.eup %2625  ;;  %v3789_v13 = vsub.f32 %v3484_v41, %v1486_v19 }
 0x319   :  { %v956_v10 = vsub.f32 1.5, %v955_v50  ;;  %v963_v51 = vmul.f32 %v2626_v42, %v3774_v30  ;;  %v3792_v1 = vadd.f32 1e-05, %v611_v5  ;;  %v3795_v27 = vsub.f32 %v3540_v46, %v1488_v7 }
 0x31a   :  { %v877_v39 = vmul.f32 %v2622_v6, %v876_v57  ;;  %v1550_v55 = vmul.f32 %v3789_v13, %v3789_v13  ;;  %vm969_vm4 = vweird.f32 %v2626_v42 }
 0x31b   :  { %v957_v61 = vmul.f32 %v2624_v52, %v956_v10  ;;  %v964_v37 = vmul.f32 %v2626_v42, %v963_v51  ;;  %2627 = vrsqrt.f32 %v3792_v1  ;;  %vm970_vm6 = vmor %vm968_vm5, %vm969_vm4  ;;  %v3846_v10 = vadd.f32 %v3460_v35, %v3767_v14 }
 0x31c   :  { %v881_v28 = vsel %vm880_vm0, %v2622_v6, %v877_v39  ;;  %v1584_v17 = vsel %vm292_vm2, %v1550_v55, 0.0  ;;  %vm888_vm8 = vweird.f32 %v3792_v1 }
 0x31d   :  { %v994_v41 = vmul.f32 %v881_v28, %v3469_v54  ;;  %v961_v38 = vsel %vm960_vm3, %v2624_v52, %v957_v61  ;;  %v965_v34 = vmul.f32 0.5, %v964_v37  ;;  %v1403_v23 = vpop.xlane.xlu2 %1402  ;;  %1585 = vadd.xlane.f32.xlu0 %v1584_v17 }
 0x31e   :  { %v1002_v0 = vmul.f32 %v961_v38, %v3465_v53  ;;  %1411 = vadd.xlane.f32.xlu1 %v1410_v49  ;;  %v1397_v45 = vpop.xlane.xlu0 %1396  ;;  %v1552_v53 = vmul.f32 %v3795_v27, %v3795_v27  ;;  %v1489_v36 = vmul.f32 %v1403_v23, %v2911_v58 }
 0x31f   :  { %v1029_v46 = vmul.f32 %v3532_v3, %v994_v41  ;;  %v966_v44 = vsub.f32 1.5, %v965_v34  ;;  %v1487_v9 = vmul.f32 %v1397_v45, %v2911_v58 }
 0x320   :  { %v1037_v16 = vmul.f32 %v3532_v3, %v1002_v0  ;;  %v1590_v24 = vsel %vm292_vm2, %v1552_v53, 0.0  ;;  %v3869_v0 = vadd.f32 %v3460_v35, %v1324_v11 }
 0x321   :  { %v1064_v54 = vadd.f32 %v3497_v15, %v1029_v46  ;;  %v2628_v63 = vpop.eup %2627  ;;  %v967_v6 = vmul.f32 %v2626_v42, %v966_v44  ;;  %v3819_v52 = vsub.f32 %v3524_v29, %v1487_v9  ;;  %v3830_v29 = vsub.f32 %v3581_v40, %v1489_v36 }
 0x322   :  { %v1072_v26 = vadd.f32 %v3497_v15, %v1037_v16  ;;  %v883_v18 = vmul.f32 %v2628_v63, %v3792_v1  ;;  %vm889_vm7 = vweird.f32 %v2628_v63 }
 0x323   :  { %v1096_v8 = vmax.f32 %v1064_v54, 0.0  ;;  %v971_v21 = vsel %vm970_vm6, %v2626_v42, %v967_v6  ;;  %v1551_v62 = vmul.f32 %v3819_v52, %v3819_v52  ;;  %v1553_v12 = vmul.f32 %v3830_v29, %v3830_v29  ;;  %v1327_v42 = vpop.f32.mrf.mxu1  ;;  %vm890_vm9 = vmor %vm888_vm8, %vm889_vm7 }
 0x324   :  { %v1104_v60 = vmax.f32 %v1072_v26, 0.0  ;;  %v1003_v30 = vmul.f32 %v971_v21, %v3501_v20  ;;  %v884_v59 = vmul.f32 %v2628_v63, %v883_v18  ;;  %v3838_v20 = vadd.f32 %v3460_v35, %v3783_v47  ;;  %v2196_v21 = vld [vmem:[%s4892_s9 + $0x8] sm:$0xff] }
 0x325   :  { %1128 = vst.msk [vmem:[#allocation2 + $0xb0] sm:$0xff] %vm292_vm2, %v1096_v8  ;;  %v1409_v31 = vpop.xlane.xlu2 %1408  ;;  %1414 = vadd.xlane.f32.xlu0 %v1413_v43  ;;  %v1587_v32 = vsel %vm292_vm2, %v1551_v62, 0.0  ;;  %v1593_v55 = vsel %vm292_vm2, %v1553_v12, 0.0  ;;  %v3884_v45 = vadd.f32 %v3460_v35, %v1327_v42  ;;  %v2197_v8 = vld [vmem:[%s4892_s9 + $0x10] sm:$0xff]  ;;  %v3920_v42 = vld [vmem:[%s4889_s6] ss:$0 sm:$0xff] }
 0x326   :  { %1136 = vst.msk [vmem:[#allocation2 + $0xf0] sm:$0xff] %vm292_vm2, %v1104_v60  ;;  %1591 = vadd.xlane.f32.xlu1 %v1590_v24  ;;  %v1038_v50 = vmul.f32 %v3532_v3, %v1003_v30  ;;  %v885_v33 = vmul.f32 0.5, %v884_v59  ;;  %1588 = vadd.xlane.f32.xlu2 %v1587_v32  ;;  %v1406_v57 = vpop.xlane.xlu0 %1405  ;;  %v1491_v40 = vmul.f32 %v1409_v31, %v2911_v58  ;;  %v1419_v49 = vsel %vm292_vm2, %v3838_v20, 0.0  ;;  %v2195_v31 = vld [vmem:[%s4892_s9] sm:$0xff] }
 0x327   :  { %v1490_v5 = vmul.f32 %v1406_v57, %v2911_v58  ;;  %v1425_v9 = vsel %vm292_vm2, %v3884_v45, 0.0 }
 0x328   :  { %v1073_v19 = vadd.f32 %v3497_v15, %v1038_v50  ;;  %v886_v7 = vsub.f32 1.5, %v885_v33  ;;  %v3851_v51 = vsub.f32 %v3622_v4, %v1491_v40  ;;  %v1416_v4 = vsel %vm292_vm2, %v3846_v10, 0.0 }
 0x329   :  { %v3861_v41 = vsub.f32 %v3584_v25, %v1490_v5 }
 0x32a   :  { %v1105_v39 = vmax.f32 %v1073_v19, 0.0  ;;  %v887_v61 = vmul.f32 %v2628_v63, %v886_v7  ;;  %v1555_v37 = vmul.f32 %v3851_v51, %v3851_v51 }
 0x32b   :  { %v1330_v23 = vpop.f32.mrf.mxu1 }
 0x32c   :  { %v1160_v47 = vld [vmem:[#allocation2 + $0xb0] sm:$0xff]  ;;  %1137 = vst.msk [vmem:[#allocation2 + $0xf8] sm:$0xff] %vm292_vm2, %v1105_v39  ;;  %v891_v14 = vsel %vm890_vm9, %v2628_v63, %v887_v61  ;;  %v1599_v34 = vsel %vm292_vm2, %v1555_v37, 0.0 }
 0x32d   :  { %2503 = vmatmul.msk.f32.gmra.mxu1 %vm292_vm2, %v1160_v47  ;;  %v1168_v28 = vld [vmem:[#allocation2 + $0xf0] sm:$0xff]  ;;  %v995_v1 = vmul.f32 %v891_v14, %v3551_v2  ;;  %1594 = vadd.xlane.f32.xlu0 %v1593_v55  ;;  %v1554_v2 = vmul.f32 %v3861_v41, %v3861_v41 }
 0x32e   :  { %2511 = vmatmul.msk.f32.gmra.mxu3 %vm292_vm2, %v1168_v28  ;;  %1420 = vadd.xlane.f32.xlu1 %v1419_v49 }
 0x32f   :  { %1417 = vadd.xlane.f32.xlu2 %v1416_v4  ;;  %v1030_v38 = vmul.f32 %v3532_v3, %v995_v1  ;;  %v1422_v3 = vsel %vm292_vm2, %v3869_v0, 0.0  ;;  %v1596_v16 = vsel %vm292_vm2, %v1554_v2, 0.0  ;;  %v3936_v1 = vld [vmem:[%s4890_s7] ss:$0 sm:$0xff] }
 0x331   :  { %v1065_v17 = vadd.f32 %v3497_v15, %v1030_v38  ;;  %v3881_v15 = vadd.f32 %v3460_v35, %v1330_v23  ;;  %v2198_v35 = vld [vmem:[%s4892_s9 + $0x18] sm:$0xff] }
 0x332   :  { %2311 = vmatpush.msra.mxu2 %v2198_v35  ;;  %2551 = vmatpush.msra.mxu3 %v2198_v35 }
 0x333   :  { %v1097_v25 = vmax.f32 %v1065_v17, 0.0  ;;  %v1169_v46 = vld [vmem:[#allocation2 + $0xf8] sm:$0xff]  ;;  %v1428_v54 = vsel %vm292_vm2, %v3881_v15, 0.0  ;;  %v1333_v26 = vpop.f32.mrf.mxu1 }
 0x334   :  { %2312 = vmatpush.msra.mxu2 %v2197_v8  ;;  %2552 = vmatpush.msra.mxu3 %v2197_v8  ;;  %v3923_v39 = vadd.f32 %v3920_v42, %v1333_v26 }
 0x335   :  { %1129 = vst.msk [vmem:[#allocation2 + $0xb8] sm:$0xff] %vm292_vm2, %v1097_v25  ;;  %1423 = vadd.xlane.f32.xlu0 %v1422_v3  ;;  %v1363_v3 = vpop.f32.mrf.mxu3 }
 0x336   :  { %2512 = vmatmul.msk.f32.gmra.mxu3 %vm292_vm2, %v1169_v46  ;;  %1600 = vadd.xlane.f32.xlu1 %v1599_v34  ;;  %v1431_v2 = vsel %vm292_vm2, %v3923_v39, 0.0  ;;  %v3950_v46 = vld [vmem:[%s4891_s8] ss:$0 sm:$0xff] }
 0x337   :  { %1597 = vadd.xlane.f32.xlu2 %v1596_v16  ;;  %2313 = vmatpush.msra.mxu2 %v2196_v21 }
 0x338   :  { %2553 = vmatpush.msra.mxu3 %v2196_v21 }
 0x339   :  { %2314 = vmatpush.msra.mxu2 %v2195_v31 }
 0x33a   :  { %2554 = vmatpush.msra.mxu3 %v2195_v31 }
 0x33b   :  { %v1336_v30 = vpop.f32.mrf.mxu1 }
 0x33c   :  { %v1161_v44 = vld [vmem:[#allocation2 + $0xb8] sm:$0xff]  ;;  %v3965_v8 = vadd.f32 %v3920_v42, %v1336_v30 }
 0x33d   :  { %2504 = vmatmul.msk.f32.gmra.mxu1 %vm292_vm2, %v1161_v44 }
 0x33e   :  { %1429 = vadd.xlane.f32.xlu1 %v1428_v54 }
 0x33f   :  { %1426 = vadd.xlane.f32.xlu2 %v1425_v9 }
 0x343   :  { %v3938_v4 = vpop.f32.mrf.mxu1 }
 0x389   :  { %v1583_v53 = vpop.xlane.xlu1 %1582 }
 0x38a   :  { %v1677_v11 = vmul.f32 %v1583_v53, %v2911_v58 }
 0x38c   :  { %v1709_v36 = vadd.f32 1e-05, %v1677_v11 }
 0x38e   :  { %2629 = vrsqrt.f32 %v1709_v36  ;;  %vm1747_vm11 = vweird.f32 %v1709_v36 }
 0x390   :  { %v1586_v60 = vpop.xlane.xlu0 %1585 }
 0x391   :  { %v1412_v63 = vpop.xlane.xlu1 %1411  ;;  %v1678_v18 = vmul.f32 %v1586_v60, %v2911_v58 }
 0x392   :  { %v1492_v6 = vmul.f32 %v1412_v63, %v2911_v58 }
 0x393   :  { %v3906_v43 = vadd.f32 1e-05, %v1678_v18 }
 0x394   :  { %v2630_v24 = vpop.eup %2629  ;;  %v3904_v62 = vsub.f32 %v3781_v48, %v1492_v6 }
 0x395   :  { %v1742_v59 = vmul.f32 %v2630_v24, %v1709_v36  ;;  %2631 = vrsqrt.f32 %v3906_v43  ;;  %vm1748_vm10 = vweird.f32 %v2630_v24  ;;  %vm1757_vm14 = vweird.f32 %v3906_v43 }
 0x396   :  { %v1556_v32 = vmul.f32 %v3904_v62, %v3904_v62  ;;  %vm1749_vm12 = vmor %vm1747_vm11, %vm1748_vm10 }
 0x397   :  { %v1743_v50 = vmul.f32 %v2630_v24, %v1742_v59 }
 0x398   :  { %v1602_v48 = vsel %vm292_vm2, %v1556_v32, 0.0  ;;  %v1415_v19 = vpop.xlane.xlu0 %1414 }
 0x399   :  { %v1744_v33 = vmul.f32 0.5, %v1743_v50  ;;  %v1592_v57 = vpop.xlane.xlu1 %1591  ;;  %1603 = vadd.xlane.f32.xlu0 %v1602_v48  ;;  %v1589_v12 = vpop.xlane.xlu2 %1588  ;;  %v1493_v5 = vmul.f32 %v1415_v19, %v2911_v58 }
 0x39a   :  { %v1680_v40 = vmul.f32 %v1592_v57, %v2911_v58  ;;  %v1679_v47 = vmul.f32 %v1589_v12, %v2911_v58  ;;  %v1434_v57 = vsel %vm292_vm2, %v3965_v8, 0.0  ;;  %v1366_v19 = vpop.f32.mrf.mxu3 }
 0x39b   :  { %v1745_v7 = vsub.f32 1.5, %v1744_v33  ;;  %v2632_v28 = vpop.eup %2631  ;;  %v3929_v14 = vsub.f32 %v3813_v56, %v1493_v5 }
 0x39c   :  { %v3925_v61 = vadd.f32 1e-05, %v1680_v40  ;;  %v1752_v55 = vmul.f32 %v2632_v28, %v3906_v43  ;;  %v3940_v37 = vadd.f32 1e-05, %v1679_v47  ;;  %vm1758_vm13 = vweird.f32 %v2632_v28 }
 0x39d   :  { %v1746_v49 = vmul.f32 %v2630_v24, %v1745_v7  ;;  %v1557_v17 = vmul.f32 %v3929_v14, %v3929_v14  ;;  %vm1759_vm15 = vmor %vm1757_vm14, %vm1758_vm13 }
 0x39e   :  { %2633 = vrsqrt.f32 %v3925_v61  ;;  %v1753_v56 = vmul.f32 %v2632_v28, %v1752_v55  ;;  %vm1777_vm3 = vweird.f32 %v3925_v61  ;;  %vm1767_vm5 = vweird.f32 %v3940_v37 }
 0x39f   :  { %v1750_v38 = vsel %vm1749_vm12, %v2630_v24, %v1746_v49  ;;  %2635 = vrsqrt.f32 %v3940_v37  ;;  %v1605_v23 = vsel %vm292_vm2, %v1557_v17, 0.0 }
 0x3a0   :  { %v2061_v25 = vmul.f32 %v1750_v38, %v3772_v22  ;;  %v1754_v16 = vmul.f32 0.5, %v1753_v56  ;;  %1606 = vadd.xlane.f32.xlu2 %v1605_v23  ;;  %v1595_v44 = vpop.xlane.xlu0 %1594 }
 0x3a1   :  { %v1421_v34 = vpop.xlane.xlu1 %1420  ;;  %1432 = vadd.xlane.f32.xlu0 %v1431_v2  ;;  %v1681_v53 = vmul.f32 %v1595_v44, %v2911_v58  ;;  %v4012_v44 = vadd.f32 %v3920_v42, %v3938_v4 }
 0x3a2   :  { %v1495_v54 = vmul.f32 %v1421_v34, %v2911_v58  ;;  %v2096_v9 = vmul.f32 %v3936_v1, %v2061_v25  ;;  %v1418_v22 = vpop.xlane.xlu2 %1417  ;;  %v1755_v26 = vsub.f32 1.5, %v1754_v16  ;;  %v4000_v25 = vadd.f32 %v3920_v42, %v1363_v3 }
 0x3a3   :  { %v1494_v35 = vmul.f32 %v1418_v22, %v2911_v58  ;;  %v3970_v60 = vadd.f32 1e-05, %v1681_v53 }
 0x3a4   :  { %v3957_v11 = vpop.eup %2633  ;;  %v3960_v36 = vsub.f32 %v3838_v20, %v1495_v54  ;;  %v2131_v63 = vadd.f32 %v3950_v46, %v2096_v9  ;;  %v1756_v18 = vmul.f32 %v2632_v28, %v1755_v26  ;;  %v1461_v4 = vsel %vm292_vm2, %v4000_v25, 0.0 }
 0x3a5   :  { %v1772_v6 = vmul.f32 %v3957_v11, %v3925_v61  ;;  %v3973_v21 = vsub.f32 %v3846_v10, %v1494_v35  ;;  %v2636_v59 = vpop.eup %2635  ;;  %2637 = vrsqrt.f32 %v3970_v60  ;;  %v3983_v10 = vpop.f32.mrf.mxu1  ;;  %vm1778_vm0 = vweird.f32 %v3957_v11 }
 0x3a6   :  { %v2163_v20 = vmax.f32 %v2131_v63, 0.0  ;;  %v1559_v24 = vmul.f32 %v3960_v36, %v3960_v36  ;;  %v1760_v43 = vsel %vm1759_vm15, %v2632_v28, %v1756_v18  ;;  %v1762_v31 = vmul.f32 %v2636_v59, %v3940_v37  ;;  %vm4018_vm4 = vmor %vm1777_vm3, %vm1778_vm0 }
 0x3a7   :  { %v1773_v30 = vmul.f32 %v3957_v11, %v1772_v6  ;;  %v1558_v33 = vmul.f32 %v3973_v21, %v3973_v21  ;;  %v2062_v40 = vmul.f32 %v1760_v43, %v3789_v13  ;;  %vm1768_vm1 = vweird.f32 %v2636_v59 }
 0x3a8   :  { %2513 = vmatmul.msk.f32.vlgmr.msra.gmra.mxu2 %vm292_vm2, %v2163_v20  ;;  %v1611_v32 = vsel %vm292_vm2, %v1559_v24, 0.0  ;;  %v1763_v7 = vmul.f32 %v2636_v59, %v1762_v31  ;;  %1435 = vadd.xlane.f32.xlu2 %v1434_v57  ;;  %v1424_v5 = vpop.xlane.xlu0 %1423  ;;  %vm1769_vm6 = vmor %vm1767_vm5, %vm1768_vm1  ;;  %v1437_v18 = vsel %vm292_vm2, %v4012_v44, 0.0  ;;  %v1369_v31 = vpop.f32.mrf.mxu3  ;;  %vm1787_vm8 = vweird.f32 %v3970_v60 }
 0x3a9   :  { %v1774_v50 = vmul.f32 0.5, %v1773_v30  ;;  %v1601_v48 = vpop.xlane.xlu1 %1600  ;;  %1612 = vadd.xlane.f32.xlu0 %v1611_v32  ;;  %v1608_v28 = vsel %vm292_vm2, %v1558_v33, 0.0  ;;  %v1496_v55 = vmul.f32 %v1424_v5, %v2911_v58  ;;  %v2097_v13 = vmul.f32 %v3936_v1, %v2062_v40 }
 0x3aa   :  { %v1683_v12 = vmul.f32 %v1601_v48, %v2911_v58  ;;  %v1598_v49 = vpop.xlane.xlu2 %1597  ;;  %v1764_v38 = vmul.f32 0.5, %v1763_v7  ;;  %1609 = vadd.xlane.f32.xlu1 %v1608_v28 }
 0x3ab   :  { %v1775_v47 = vsub.f32 1.5, %v1774_v50  ;;  %v1682_v56 = vmul.f32 %v1598_v49, %v2911_v58  ;;  %v3997_v2 = vpop.eup %2637  ;;  %v4004_v34 = vsub.f32 %v3869_v0, %v1496_v55  ;;  %v2132_v9 = vadd.f32 %v3950_v46, %v2097_v13 }
 0x3ac   :  { %v3993_v17 = vadd.f32 1e-05, %v1683_v12  ;;  %v1765_v16 = vsub.f32 1.5, %v1764_v38  ;;  %v1782_v54 = vmul.f32 %v3997_v2, %v3970_v60  ;;  %vm1788_vm7 = vweird.f32 %v3997_v2 }
 0x3ad   :  { %v1776_v23 = vmul.f32 %v3957_v11, %v1775_v47  ;;  %v4015_v3 = vadd.f32 1e-05, %v1682_v56  ;;  %v1560_v26 = vmul.f32 %v4004_v34, %v4004_v34  ;;  %v2164_v61 = vmax.f32 %v2132_v9, 0.0  ;;  %v1345_v37 = vpop.f32.mrf.mxu1  ;;  %vm4063_vm9 = vmor %vm1787_vm8, %vm1788_vm7 }
 0x3ae   :  { %2639 = vrsqrt.f32 %v3993_v17  ;;  %v1766_v22 = vmul.f32 %v2636_v59, %v1765_v16  ;;  %v1783_v53 = vmul.f32 %v3997_v2, %v1782_v54  ;;  %v4055_v12 = vadd.f32 %v3920_v42, %v3983_v10 }
 0x3af   :  { %2641 = vrsqrt.f32 %v4015_v3  ;;  %v1780_v35 = vsel %vm4018_vm4, %v3957_v11, %v1776_v23  ;;  %v1614_v24 = vsel %vm292_vm2, %v1560_v26, 0.0  ;;  %v4082_v54 = vadd.f32 %v3920_v42, %v1369_v31 }
 0x3b0   :  { %v1770_v63 = vsel %vm1769_vm6, %v2636_v59, %v1766_v22  ;;  %v1784_v6 = vmul.f32 0.5, %v1783_v53  ;;  %1462 = vadd.xlane.f32.xlu2 %v1461_v4  ;;  %2514 = vmatmul.msk.f32.gmra.mxu2 %vm292_vm2, %v2164_v61  ;;  %v4042_v59 = vadd.f32 %v3920_v42, %v1366_v19  ;;  %v2064_v33 = vmul.f32 %v1780_v35, %v3795_v27  ;;  %v1372_v22 = vpop.f32.mrf.mxu3 }
 0x3b1   :  { %v2063_v30 = vmul.f32 %v1770_v63, %v3819_v52  ;;  %v1430_v50 = vpop.xlane.xlu1 %1429  ;;  %1615 = vadd.xlane.f32.xlu0 %v1614_v24  ;;  %v1440_v23 = vsel %vm292_vm2, %v4055_v12, 0.0  ;;  %v4087_v26 = vadd.f32 %v3920_v42, %v1345_v37  ;;  %vm1797_vm11 = vweird.f32 %v4015_v3 }
 0x3b2   :  { %v1427_v20 = vpop.xlane.xlu2 %1426  ;;  %v1785_v32 = vsub.f32 1.5, %v1784_v6  ;;  %1438 = vadd.xlane.f32.xlu1 %v1437_v18  ;;  %v1498_v19 = vmul.f32 %v1430_v50, %v2911_v58  ;;  %v1464_v10 = vsel %vm292_vm2, %v4042_v59, 0.0  ;;  %v2099_v49 = vmul.f32 %v3936_v1, %v2064_v33 }
 0x3b3   :  { %v1497_v11 = vmul.f32 %v1427_v20, %v2911_v58  ;;  %v2098_v48 = vmul.f32 %v3936_v1, %v2063_v30  ;;  %v1467_v63 = vsel %vm292_vm2, %v4082_v54, 0.0  ;;  %v1443_v37 = vsel %vm292_vm2, %v4087_v26, 0.0 }
 0x3b4   :  { %v4038_v43 = vpop.eup %2639  ;;  %v1786_v57 = vmul.f32 %v3997_v2, %v1785_v32  ;;  %v4076_v13 = vsub.f32 %v3881_v15, %v1498_v19  ;;  %vm1807_vm14 = vweird.f32 %v3993_v17 }
 0x3b5   :  { %v1802_v52 = vmul.f32 %v4038_v43, %v3993_v17  ;;  %v4051_v40 = vsub.f32 %v3884_v45, %v1497_v11  ;;  %v2642_v7 = vpop.eup %2641  ;;  %v2133_v5 = vadd.f32 %v3950_v46, %v2098_v48  ;;  %v1348_v0 = vpop.f32.mrf.mxu1  ;;  %vm1808_vm13 = vweird.f32 %v4038_v43 }
 0x3b6   :  { %v1792_v27 = vmul.f32 %v2642_v7, %v4015_v3  ;;  %v1790_v55 = vsel %vm4063_vm9, %v3997_v2, %v1786_v57  ;;  %v2134_v2 = vadd.f32 %v3950_v46, %v2099_v49  ;;  %vm1798_vm10 = vweird.f32 %v2642_v7  ;;  %vm1809_vm15 = vmor %vm1807_vm14, %vm1808_vm13 }
 0x3b7   :  { %v1561_v47 = vmul.f32 %v4051_v40, %v4051_v40  ;;  %v2165_v45 = vmax.f32 %v2133_v5, 0.0  ;;  %v1803_v60 = vmul.f32 %v4038_v43, %v1802_v52  ;;  %v2065_v9 = vmul.f32 %v1790_v55, %v3830_v29  ;;  %vm1799_vm12 = vmor %vm1797_vm11, %vm1798_vm10 }
 0x3b8   :  { %v1793_v38 = vmul.f32 %v2642_v7, %v1792_v27  ;;  %1465 = vadd.xlane.f32.xlu2 %v1464_v10  ;;  %v1562_v61 = vmul.f32 %v4076_v13, %v4076_v13  ;;  %v2166_v35 = vmax.f32 %v2134_v2, 0.0  ;;  %v4100_v3 = vadd.f32 %v3920_v42, %v1372_v22  ;;  %v1375_v11 = vpop.f32.mrf.mxu3 }
 0x3b9   :  { %v1617_v56 = vsel %vm292_vm2, %v1561_v47, 0.0  ;;  %2515 = vmatmul.msk.f32.gmra.mxu2 %vm292_vm2, %v2165_v45  ;;  %v1804_v53 = vmul.f32 0.5, %v1803_v60  ;;  %v2100_v29 = vmul.f32 %v3936_v1, %v2065_v9  ;;  %v4107_v32 = vadd.f32 %v3920_v42, %v1348_v0 }
 0x3ba   :  { %v1794_v16 = vmul.f32 0.5, %v1793_v38  ;;  %1441 = vadd.xlane.f32.xlu1 %v1440_v23  ;;  %1618 = vadd.xlane.f32.xlu0 %v1617_v56  ;;  %v1620_v20 = vsel %vm292_vm2, %v1562_v61, 0.0  ;;  %v1470_v33 = vsel %vm292_vm2, %v4100_v3, 0.0 }
 0x3bb   :  { %v1805_v6 = vsub.f32 1.5, %v1804_v53  ;;  %v2135_v24 = vadd.f32 %v3950_v46, %v2100_v29  ;;  %v1446_v52 = vsel %vm292_vm2, %v4107_v32, 0.0 }
 0x3bc   :  { %v1795_v15 = vsub.f32 1.5, %v1794_v16 }
 0x3bd   :  { %v1806_v31 = vmul.f32 %v4038_v43, %v1805_v6  ;;  %v1351_v50 = vpop.f32.mrf.mxu1  ;;  %v2167_v48 = vmax.f32 %v2135_v24, 0.0 }
 0x3be   :  { %v1796_v4 = vmul.f32 %v2642_v7, %v1795_v15  ;;  %v4123_v5 = vadd.f32 %v3920_v42, %v1351_v50 }
 0x3c0   :  { %v1800_v18 = vsel %vm1799_vm12, %v2642_v7, %v1796_v4  ;;  %1468 = vadd.xlane.f32.xlu2 %v1467_v63  ;;  %v4118_v7 = vadd.f32 %v3920_v42, %v1375_v11  ;;  %v1378_v45 = vpop.f32.mrf.mxu3  ;;  %v1449_v10 = vsel %vm292_vm2, %v4123_v5, 0.0 }
 0x3c1   :  { %2516 = vmatmul.msk.f32.gmra.mxu2 %vm292_vm2, %v2166_v35  ;;  %v2066_v30 = vmul.f32 %v1800_v18, %v3861_v41  ;;  %v1810_v41 = vsel %vm1809_vm15, %v4038_v43, %v1806_v31 }
 0x3c2   :  { %1444 = vadd.xlane.f32.xlu1 %v1443_v37  ;;  %1621 = vadd.xlane.f32.xlu0 %v1620_v20  ;;  %v2067_v19 = vmul.f32 %v1810_v41, %v3851_v51  ;;  %v1473_v43 = vsel %vm292_vm2, %v4118_v7, 0.0  ;;  %v4132_v51 = vadd.f32 %v3920_v42, %v1378_v45 }
 0x3c3   :  { %v2101_v57 = vmul.f32 %v3936_v1, %v2066_v30 }
 0x3c4   :  { %v2102_v47 = vmul.f32 %v3936_v1, %v2067_v19  ;;  %v1476_v38 = vsel %vm292_vm2, %v4132_v51, 0.0 }
 0x3c5   :  { %v2136_v17 = vadd.f32 %v3950_v46, %v2101_v57  ;;  %v1354_v28 = vpop.f32.mrf.mxu1 }
 0x3c6   :  { %v2137_v49 = vadd.f32 %v3950_v46, %v2102_v47  ;;  %v4136_v55 = vadd.f32 %v3920_v42, %v1354_v28 }
 0x3c7   :  { %v2168_v27 = vmax.f32 %v2136_v17, 0.0 }
 0x3c8   :  { %1471 = vadd.xlane.f32.xlu2 %v1470_v33  ;;  %v2169_v60 = vmax.f32 %v2137_v49, 0.0  ;;  %v1452_v23 = vsel %vm292_vm2, %v4136_v55, 0.0  ;;  %v1381_v28 = vpop.f32.mrf.mxu3 }
 0x3c9   :  { %2517 = vmatmul.msk.f32.gmra.mxu2 %vm292_vm2, %v2167_v48 }
 0x3ca   :  { %1447 = vadd.xlane.f32.xlu1 %v1446_v52 }
 0x3cd   :  { %v1357_v56 = vpop.f32.mrf.mxu1 }
 0x3ce   :  { %v4144_v16 = vadd.f32 %v3920_v42, %v1357_v56  ;;  %v4175_v56 = vadd.f32 %v3920_v42, %v1381_v28 }
 0x3d0   :  { %1474 = vadd.xlane.f32.xlu2 %v1473_v43  ;;  %v1455_v2 = vsel %vm292_vm2, %v4144_v16, 0.0 }
 0x3d1   :  { %2518 = vmatmul.msk.f32.gmra.mxu2 %vm292_vm2, %v2168_v27 }
 0x3d2   :  { %1450 = vadd.xlane.f32.xlu1 %v1449_v10 }
 0x3d8   :  { %1477 = vadd.xlane.f32.xlu2 %v1476_v38 }
 0x3d9   :  { %2519 = vmatmul.msk.f32.gmra.mxu2 %vm292_vm2, %v2169_v60 }
 0x3da   :  { %1453 = vadd.xlane.f32.xlu1 %v1452_v23 }
 0x3e0   :  { %1456 = vadd.xlane.f32.xlu2 %v1455_v2 }
 0x40c   :  { %v1604_v9 = vpop.xlane.xlu0 %1603 }
 0x40d   :  { %v1684_v0 = vmul.f32 %v1604_v9, %v2911_v58 }
 0x40f   :  { %v1716_v22 = vadd.f32 1e-05, %v1684_v0 }
 0x411   :  { %2643 = vrsqrt.f32 %v1716_v22  ;;  %vm1817_vm1 = vweird.f32 %v1716_v22 }
 0x413   :  { %v1607_v15 = vpop.xlane.xlu2 %1606 }
 0x414   :  { %v1433_v53 = vpop.xlane.xlu0 %1432  ;;  %v1685_v4 = vmul.f32 %v1607_v15, %v2911_v58 }
 0x415   :  { %v1499_v61 = vmul.f32 %v1433_v53, %v2911_v58 }
 0x416   :  { %v1717_v6 = vadd.f32 1e-05, %v1685_v4  ;;  %v4190_v4 = vld [vmem:[%s4893_s10] ss:$0 sm:$0xff] }
 0x417   :  { %v2644_v35 = vpop.eup %2643  ;;  %v4152_v63 = vsub.f32 %v3923_v39, %v1499_v61 }
 0x418   :  { %v1812_v29 = vmul.f32 %v2644_v35, %v1716_v22  ;;  %2645 = vrsqrt.f32 %v1717_v6  ;;  %vm1818_vm0 = vweird.f32 %v2644_v35  ;;  %vm1827_vm5 = vweird.f32 %v1717_v6 }
 0x419   :  { %v1563_v18 = vmul.f32 %v4152_v63, %v4152_v63  ;;  %vm1819_vm3 = vmor %vm1817_vm1, %vm1818_vm0 }
 0x41a   :  { %v1813_v37 = vmul.f32 %v2644_v35, %v1812_v29 }
 0x41b   :  { %v1623_v20 = vsel %vm292_vm2, %v1563_v18, 0.0  ;;  %v1436_v31 = vpop.xlane.xlu2 %1435 }
 0x41c   :  { %v1814_v24 = vmul.f32 0.5, %v1813_v37  ;;  %1624 = vadd.xlane.f32.xlu0 %v1623_v20  ;;  %v1613_v30 = vpop.xlane.xlu0 %1612  ;;  %v1500_v39 = vmul.f32 %v1436_v31, %v2911_v58 }
 0x41d   :  { %v1687_v50 = vmul.f32 %v1613_v30, %v2911_v58  ;;  %v1610_v48 = vpop.xlane.xlu1 %1609 }
 0x41e   :  { %v1815_v11 = vsub.f32 1.5, %v1814_v24  ;;  %v2646_v57 = vpop.eup %2645  ;;  %v1686_v52 = vmul.f32 %v1610_v48, %v2911_v58  ;;  %v4163_v17 = vsub.f32 %v3965_v8, %v1500_v39 }
 0x41f   :  { %v4159_v33 = vadd.f32 1e-05, %v1687_v50  ;;  %v1822_v19 = vmul.f32 %v2646_v57, %v1717_v6  ;;  %vm1828_vm4 = vweird.f32 %v2646_v57 }
 0x420   :  { %v1816_v41 = vmul.f32 %v2644_v35, %v1815_v11  ;;  %v4166_v43 = vadd.f32 1e-05, %v1686_v52  ;;  %v1564_v47 = vmul.f32 %v4163_v17, %v4163_v17  ;;  %vm1829_vm6 = vmor %vm1827_vm5, %vm1828_vm4 }
 0x421   :  { %2647 = vrsqrt.f32 %v4159_v33  ;;  %v1823_v45 = vmul.f32 %v2646_v57, %v1822_v19  ;;  %vm1847_vm11 = vweird.f32 %v4159_v33 }
 0x422   :  { %v1820_v27 = vsel %vm1819_vm3, %v2644_v35, %v1816_v41  ;;  %2649 = vrsqrt.f32 %v4166_v43  ;;  %v1626_v49 = vsel %vm292_vm2, %v1564_v47, 0.0  ;;  %vm1837_vm9 = vweird.f32 %v4166_v43 }
 0x423   :  { %v2068_v10 = vmul.f32 %v1820_v27, %v3904_v62  ;;  %v1824_v8 = vmul.f32 0.5, %v1823_v45  ;;  %v1463_v60 = vpop.xlane.xlu2 %1462 }
 0x424   :  { %1627 = vadd.xlane.f32.xlu0 %v1626_v49  ;;  %v1509_v23 = vmul.f32 %v1463_v60, %v2911_v58  ;;  %v1616_v62 = vpop.xlane.xlu0 %1615 }
 0x425   :  { %v2103_v38 = vmul.f32 %v3936_v1, %v2068_v10  ;;  %v1825_v9 = vsub.f32 1.5, %v1824_v8  ;;  %v1439_v0 = vpop.xlane.xlu1 %1438  ;;  %v1688_v29 = vmul.f32 %v1616_v62, %v2911_v58 }
 0x426   :  { %v1501_v15 = vmul.f32 %v1439_v0, %v2911_v58  ;;  %v4185_v61 = vsub.f32 %v4000_v25, %v1509_v23  ;;  %v1479_v25 = vsel %vm292_vm2, %v4175_v56, 0.0 }
 0x427   :  { %v4178_v2 = vpop.eup %2647  ;;  %v2138_v22 = vadd.f32 %v3950_v46, %v2103_v38  ;;  %v1826_v35 = vmul.f32 %v2646_v57, %v1825_v9  ;;  %v4205_v50 = vadd.f32 1e-05, %v1688_v29 }
 0x428   :  { %v1842_v53 = vmul.f32 %v4178_v2, %v4159_v33  ;;  %v4193_v37 = vpop.eup %2649  ;;  %v1573_v24 = vmul.f32 %v4185_v61, %v4185_v61  ;;  %v4203_v6 = vsub.f32 %v4012_v44, %v1501_v15  ;;  %vm1848_vm8 = vweird.f32 %v4178_v2 }
 0x429   :  { %v2170_v18 = vmax.f32 %v2138_v22, 0.0  ;;  %v1830_v30 = vsel %vm1829_vm6, %v2646_v57, %v1826_v35  ;;  %v1832_v31 = vmul.f32 %v4193_v37, %v4166_v43  ;;  %2651 = vrsqrt.f32 %v4205_v50  ;;  %v1360_v35 = vpop.f32.mrf.mxu1  ;;  %vm4255_vm12 = vmor %vm1847_vm11, %vm1848_vm8 }
 0x42a   :  { %v1843_v20 = vmul.f32 %v4178_v2, %v1842_v53  ;;  %v1653_v41 = vsel %vm292_vm2, %v1573_v24, 0.0  ;;  %v2069_v52 = vmul.f32 %v1830_v30, %v3929_v14  ;;  %v1565_v60 = vmul.f32 %v4203_v6, %v4203_v6  ;;  %v1384_v30 = vpop.f32.mrf.mxu3 }
 0x42b   :  { %v2316_v11 = vpop.f32.mrf.mxu2  ;;  %2520 = vmatmul.msk.f32.gmra.mxu2 %vm292_vm2, %v2170_v18  ;;  %v1833_v57 = vmul.f32 %v4193_v37, %v1832_v31  ;;  %1654 = vadd.xlane.f32.xlu1 %v1653_v41  ;;  %v1466_v19 = vpop.xlane.xlu2 %1465  ;;  %vm1838_vm7 = vweird.f32 %v4193_v37  ;;  %vm1857_vm14 = vweird.f32 %v4205_v50 }
 0x42c   :  { %v1844_v39 = vmul.f32 0.5, %v1843_v20  ;;  %v2317_v48 = vadd.f32 %v4190_v4, %v2316_v11  ;;  %1480 = vadd.xlane.f32.xlu0 %v1479_v25  ;;  %v1510_v27 = vmul.f32 %v1466_v19, %v2911_v58  ;;  %v2104_v47 = vmul.f32 %v3936_v1, %v2069_v52  ;;  %vm4241_vm10 = vmor %vm1837_vm9, %vm1838_vm7 }
 0x42d   :  { %v1834_v28 = vmul.f32 0.5, %v1833_v57  ;;  %v1442_v45 = vpop.xlane.xlu1 %1441  ;;  %v1619_v14 = vpop.xlane.xlu0 %1618  ;;  %v1629_v18 = vsel %vm292_vm2, %v1565_v60, 0.0 }
 0x42e   :  { %v1845_v44 = vsub.f32 1.5, %v1844_v39  ;;  %2412 = vst.msk [vmem:[%s4894_s11] sm:$0xff] %vm292_vm2, %v2317_v48  ;;  %v1502_v10 = vmul.f32 %v1442_v45, %v2911_v58  ;;  %v4221_v49 = vsub.f32 %v4042_v59, %v1510_v27  ;;  %v1689_v8 = vmul.f32 %v1619_v14, %v2911_v58 }
 0x42f   :  { %v1835_v38 = vsub.f32 1.5, %v1834_v28  ;;  %v2139_v23 = vadd.f32 %v3950_v46, %v2104_v47  ;;  %v4237_v22 = vpop.eup %2651  ;;  %v4269_v48 = vadd.f32 %v3920_v42, %v1360_v35  ;;  %v4277_v28 = vadd.f32 %v3920_v42, %v1384_v30 }
 0x430   :  { %v1846_v9 = vmul.f32 %v4178_v2, %v1845_v44  ;;  %v4231_v0 = vsub.f32 %v4055_v12, %v1502_v10  ;;  %v4233_v62 = vadd.f32 1e-05, %v1689_v8  ;;  %v1574_v59 = vmul.f32 %v4221_v49, %v4221_v49 }
 0x431   :  { %v1836_v53 = vmul.f32 %v4193_v37, %v1835_v38  ;;  %v2171_v15 = vmax.f32 %v2139_v23, 0.0  ;;  %v1852_v12 = vmul.f32 %v4237_v22, %v4205_v50  ;;  %vm1858_vm13 = vweird.f32 %v4237_v22 }
 0x432   :  { %2653 = vrsqrt.f32 %v4233_v62  ;;  %v1566_v33 = vmul.f32 %v4231_v0, %v4231_v0  ;;  %v1656_v24 = vsel %vm292_vm2, %v1574_v59, 0.0  ;;  %vm4306_vm15 = vmor %vm1857_vm14, %vm1858_vm13  ;;  %vm1867_vm1 = vweird.f32 %v4233_v62 }
 0x433   :  { %v1840_v20 = vsel %vm4241_vm10, %v4193_v37, %v1836_v53  ;;  %2521 = vmatmul.msk.f32.gmra.mxu2 %vm292_vm2, %v2171_v15  ;;  %v1469_v25 = vpop.xlane.xlu2 %1468  ;;  %v1850_v37 = vsel %vm4255_vm12, %v4178_v2, %v1846_v9  ;;  %v1853_v31 = vmul.f32 %v4237_v22, %v1852_v12  ;;  %v2319_v11 = vpop.f32.mrf.mxu2  ;;  %1657 = vadd.xlane.f32.xlu2 %v1656_v24  ;;  %v1482_v24 = vsel %vm292_vm2, %v4277_v28, 0.0 }
 0x434   :  { %1630 = vadd.xlane.f32.xlu0 %v1629_v18  ;;  %v2070_v39 = vmul.f32 %v1840_v20, %v3973_v21  ;;  %v2320_v41 = vadd.f32 %v4190_v4, %v2319_v11  ;;  %v1632_v57 = vsel %vm292_vm2, %v1566_v33, 0.0  ;;  %v1511_v2 = vmul.f32 %v1469_v25, %v2911_v58 }
 0x435   :  { %v1445_v52 = vpop.xlane.xlu1 %1444  ;;  %v1622_v19 = vpop.xlane.xlu0 %1621  ;;  %v1854_v44 = vmul.f32 0.5, %v1853_v31  ;;  %1633 = vadd.xlane.f32.xlu1 %v1632_v57  ;;  %v2071_v45 = vmul.f32 %v1850_v37, %v3960_v36  ;;  %v1458_v36 = vsel %vm292_vm2, %v4269_v48, 0.0 }
 0x436   :  { %v1503_v27 = vmul.f32 %v1445_v52, %v2911_v58  ;;  %v1690_v47 = vmul.f32 %v1622_v19, %v2911_v58  ;;  %2413 = vst.msk [vmem:[%s4894_s11 + $0x8] sm:$0xff] %vm292_vm2, %v2320_v41  ;;  %v2105_v21 = vmul.f32 %v3936_v1, %v2070_v39  ;;  %v4301_v9 = vsub.f32 %v4082_v54, %v1511_v2 }
 0x437   :  { %v1855_v10 = vsub.f32 1.5, %v1854_v44  ;;  %v2106_v35 = vmul.f32 %v3936_v1, %v2071_v45 }
 0x438   :  { %v4285_v14 = vpop.eup %2653  ;;  %v4289_v8 = vsub.f32 %v4087_v26, %v1503_v27  ;;  %v4291_v60 = vadd.f32 1e-05, %v1690_v47  ;;  %v2140_v38 = vadd.f32 %v3950_v46, %v2105_v21  ;;  %v1575_v30 = vmul.f32 %v4301_v9, %v4301_v9 }
 0x439   :  { %v1862_v42 = vmul.f32 %v4285_v14, %v4233_v62  ;;  %v1856_v23 = vmul.f32 %v4237_v22, %v1855_v10  ;;  %v2141_v31 = vadd.f32 %v3950_v46, %v2106_v35  ;;  %vm1868_vm0 = vweird.f32 %v4285_v14 }
 0x43a   :  { %2655 = vrsqrt.f32 %v4291_v60  ;;  %v1567_v26 = vmul.f32 %v4289_v8, %v4289_v8  ;;  %v2172_v53 = vmax.f32 %v2140_v38, 0.0  ;;  %v1659_v44 = vsel %vm292_vm2, %v1575_v30, 0.0  ;;  %vm4346_vm3 = vmor %vm1867_vm1, %vm1868_vm0 }
 0x43b   :  { %v1863_v59 = vmul.f32 %v4285_v14, %v1862_v42  ;;  %v1472_v15 = vpop.xlane.xlu2 %1471  ;;  %v1860_v54 = vsel %vm4306_vm15, %v4237_v22, %v1856_v23  ;;  %v2173_v2 = vmax.f32 %v2141_v31, 0.0  ;;  %vm1877_vm5 = vweird.f32 %v4291_v60 }
 0x43c   :  { %1459 = vadd.xlane.f32.xlu0 %v1458_v36  ;;  %v2322_v29 = vpop.f32.mrf.mxu2  ;;  %v1635_v12 = vsel %vm292_vm2, %v1567_v26, 0.0  ;;  %v1512_v18 = vmul.f32 %v1472_v15, %v2911_v58  ;;  %2522 = vmatmul.msk.f32.gmra.mxu2 %vm292_vm2, %v2172_v53  ;;  %v2072_v11 = vmul.f32 %v1860_v54, %v4004_v34 }
 0x43d   :  { %v1864_v20 = vmul.f32 0.5, %v1863_v59  ;;  %v2323_v43 = vadd.f32 %v4190_v4, %v2322_v29  ;;  %v1448_v33 = vpop.xlane.xlu1 %1447  ;;  %1636 = vadd.xlane.f32.xlu2 %v1635_v12  ;;  %1483 = vadd.xlane.f32.xlu1 %v1482_v24 }
 0x43e   :  { %v1504_v25 = vmul.f32 %v1448_v33, %v2911_v58  ;;  %v4323_v22 = vsub.f32 %v4100_v3, %v1512_v18  ;;  %v2107_v21 = vmul.f32 %v3936_v1, %v2072_v11 }
 0x43f   :  { %v1865_v37 = vsub.f32 1.5, %v1864_v20  ;;  %2414 = vst.msk [vmem:[%s4894_s11 + $0x10] sm:$0xff] %vm292_vm2, %v2323_v43 }
 0x440   :  { %v2656_v39 = vpop.eup %2655  ;;  %v4335_v41 = vsub.f32 %v4107_v32, %v1504_v25  ;;  %v1576_v3 = vmul.f32 %v4323_v22, %v4323_v22 }
 0x441   :  { %v1866_v52 = vmul.f32 %v4285_v14, %v1865_v37  ;;  %v1872_v57 = vmul.f32 %v2656_v39, %v4291_v60  ;;  %vm1878_vm4 = vweird.f32 %v2656_v39 }
 0x442   :  { %v1568_v19 = vmul.f32 %v4335_v41, %v4335_v41  ;;  %v1662_v34 = vsel %vm292_vm2, %v1576_v3, 0.0  ;;  %vm4376_vm6 = vmor %vm1877_vm5, %vm1878_vm4 }
 0x443   :  { %v1873_v32 = vmul.f32 %v2656_v39, %v1872_v57  ;;  %v1475_v47 = vpop.xlane.xlu2 %1474  ;;  %v1870_v62 = vsel %vm4346_vm3, %v4285_v14, %v1866_v52  ;;  %v2142_v14 = vadd.f32 %v3950_v46, %v2107_v21 }
 0x444   :  { %1660 = vadd.xlane.f32.xlu0 %v1659_v44  ;;  %v2325_v45 = vpop.f32.mrf.mxu2  ;;  %v1638_v10 = vsel %vm292_vm2, %v1568_v19, 0.0  ;;  %v1513_v42 = vmul.f32 %v1475_v47, %v2911_v58  ;;  %2523 = vmatmul.msk.f32.gmra.mxu2 %vm292_vm2, %v2173_v2  ;;  %v2073_v53 = vmul.f32 %v1870_v62, %v4051_v40 }
 0x445   :  { %v1874_v38 = vmul.f32 0.5, %v1873_v32  ;;  %v2326_v36 = vadd.f32 %v4190_v4, %v2325_v45  ;;  %v1451_v23 = vpop.xlane.xlu1 %1450  ;;  %1663 = vadd.xlane.f32.xlu2 %v1662_v34  ;;  %1639 = vadd.xlane.f32.xlu1 %v1638_v10  ;;  %v2174_v12 = vmax.f32 %v2142_v14, 0.0 }
 0x446   :  { %v1505_v26 = vmul.f32 %v1451_v23, %v2911_v58  ;;  %v4360_v50 = vsub.f32 %v4118_v7, %v1513_v42 }
 0x447   :  { %v1875_v59 = vsub.f32 1.5, %v1874_v38  ;;  %2415 = vst.msk [vmem:[%s4894_s11 + $0x18] sm:$0xff] %vm292_vm2, %v2326_v36 }
 0x448   :  { %v4369_v15 = vsub.f32 %v4123_v5, %v1505_v26  ;;  %v1577_v35 = vmul.f32 %v4360_v50, %v4360_v50  ;;  %v2108_v5 = vmul.f32 %v3936_v1, %v2073_v53 }
 0x449   :  { %v1876_v54 = vmul.f32 %v2656_v39, %v1875_v59 }
 0x44a   :  { %v1569_v7 = vmul.f32 %v4369_v15, %v4369_v15  ;;  %v1665_v40 = vsel %vm292_vm2, %v1577_v35, 0.0  ;;  %v2143_v31 = vadd.f32 %v3950_v46, %v2108_v5 }
 0x44b   :  { %v1478_v18 = vpop.xlane.xlu2 %1477  ;;  %v1880_v20 = vsel %vm4376_vm6, %v2656_v39, %v1876_v54 }
 0x44c   :  { %v2328_v43 = vpop.f32.mrf.mxu2  ;;  %v1514_v33 = vmul.f32 %v1478_v18, %v2911_v58  ;;  %v1641_v60 = vsel %vm292_vm2, %v1569_v7, 0.0  ;;  %2524 = vmatmul.msk.f32.gmra.mxu2 %vm292_vm2, %v2174_v12  ;;  %v2074_v11 = vmul.f32 %v1880_v20, %v4076_v13 }
 0x44d   :  { %v2329_v24 = vadd.f32 %v4190_v4, %v2328_v43  ;;  %v1454_v25 = vpop.xlane.xlu1 %1453  ;;  %1642 = vadd.xlane.f32.xlu0 %v1641_v60  ;;  %1666 = vadd.xlane.f32.xlu1 %v1665_v40 }
 0x44e   :  { %v1506_v30 = vmul.f32 %v1454_v25, %v2911_v58  ;;  %v4390_v37 = vsub.f32 %v4132_v51, %v1514_v33  ;;  %v2175_v51 = vmax.f32 %v2143_v31, 0.0  ;;  %v2109_v34 = vmul.f32 %v3936_v1, %v2074_v11 }
 0x44f   :  { %2416 = vst.msk [vmem:[%s4894_s11 + $0x20] sm:$0xff] %vm292_vm2, %v2329_v24 }
 0x450   :  { %v4399_v39 = vsub.f32 %v4136_v55, %v1506_v30  ;;  %v1578_v3 = vmul.f32 %v4390_v37, %v4390_v37  ;;  %v2144_v2 = vadd.f32 %v3950_v46, %v2109_v34 }
 0x452   :  { %v1570_v52 = vmul.f32 %v4399_v39, %v4399_v39  ;;  %v1668_v19 = vsel %vm292_vm2, %v1578_v3, 0.0  ;;  %v2176_v62 = vmax.f32 %v2144_v2, 0.0 }
 0x453   :  { %v1457_v57 = vpop.xlane.xlu2 %1456 }
 0x454   :  { %v2331_v44 = vpop.f32.mrf.mxu2  ;;  %v1644_v27 = vsel %vm292_vm2, %v1570_v52, 0.0  ;;  %v1507_v13 = vmul.f32 %v1457_v57, %v2911_v58  ;;  %2525 = vmatmul.msk.f32.gmra.mxu2 %vm292_vm2, %v2175_v51 }
 0x455   :  { %v2332_v55 = vadd.f32 %v4190_v4, %v2331_v44  ;;  %1645 = vadd.xlane.f32.xlu2 %v1644_v27  ;;  %1669 = vadd.xlane.f32.xlu0 %v1668_v19 }
 0x456   :  { %v4412_v32 = vsub.f32 %v4144_v16, %v1507_v13 }
 0x457   :  { %2417 = vst.msk [vmem:[%s4894_s11 + $0x28] sm:$0xff] %vm292_vm2, %v2332_v55 }
 0x458   :  { %v1571_v47 = vmul.f32 %v4412_v32, %v4412_v32 }
 0x45a   :  { %v1647_v21 = vsel %vm292_vm2, %v1571_v47, 0.0 }
 0x45b   :  { %1648 = vadd.xlane.f32.xlu1 %v1647_v21 }
 0x45c   :  { %v2334_v45 = vpop.f32.mrf.mxu2  ;;  %2526 = vmatmul.msk.f32.gmra.mxu2 %vm292_vm2, %v2176_v62 }
 0x45d   :  { %v2335_v10 = vadd.f32 %v4190_v4, %v2334_v45 }
 0x45f   :  { %2418 = vst.msk [vmem:[%s4894_s11 + $0x30] sm:$0xff] %vm292_vm2, %v2335_v10 }
 0x48f   :  { %v1625_v16 = vpop.xlane.xlu0 %1624 }
 0x490   :  { %v1691_v42 = vmul.f32 %v1625_v16, %v2911_v58 }
 0x492   :  { %v1723_v38 = vadd.f32 1e-05, %v1691_v42 }
 0x494   :  { %2657 = vrsqrt.f32 %v1723_v38  ;;  %vm1887_vm8 = vweird.f32 %v1723_v38 }
 0x497   :  { %v1628_v36 = vpop.xlane.xlu0 %1627 }
 0x498   :  { %v1692_v23 = vmul.f32 %v1628_v36, %v2911_v58 }
 0x49a   :  { %v2658_v26 = vpop.eup %2657  ;;  %v1724_v14 = vadd.f32 1e-05, %v1692_v23  ;;  %v4464_v23 = vld [vmem:[%s4890_s7] ss:$0 sm:$0xff] }
 0x49b   :  { %v1882_v59 = vmul.f32 %v2658_v26, %v1723_v38  ;;  %vm1888_vm7 = vweird.f32 %v2658_v26 }
 0x49c   :  { %2659 = vrsqrt.f32 %v1724_v14  ;;  %vm1889_vm9 = vmor %vm1887_vm8, %vm1888_vm7  ;;  %vm1897_vm11 = vweird.f32 %v1724_v14 }
 0x49d   :  { %v1883_v53 = vmul.f32 %v2658_v26, %v1882_v59 }
 0x49e   :  { %v1655_v54 = vpop.xlane.xlu1 %1654 }
 0x49f   :  { %v1884_v35 = vmul.f32 0.5, %v1883_v53  ;;  %v1481_v7 = vpop.xlane.xlu0 %1480  ;;  %v1701_v12 = vmul.f32 %v1655_v54, %v2911_v58 }
 0x4a0   :  { %v1515_v40 = vmul.f32 %v1481_v7, %v2911_v58  ;;  %v4476_v7 = vld [vmem:[%s4891_s8] ss:$0 sm:$0xff] }
 0x4a1   :  { %v1885_v29 = vsub.f32 1.5, %v1884_v35  ;;  %v1733_v20 = vadd.f32 1e-05, %v1701_v12 }
 0x4a2   :  { %v2660_v18 = vpop.eup %2659  ;;  %v4433_v43 = vsub.f32 %v4175_v56, %v1515_v40 }
 0x4a3   :  { %v1886_v5 = vmul.f32 %v2658_v26, %v1885_v29  ;;  %v1892_v33 = vmul.f32 %v2660_v18, %v1724_v14  ;;  %2661 = vrsqrt.f32 %v1733_v20  ;;  %vm1898_vm10 = vweird.f32 %v2660_v18 }
 0x4a4   :  { %v1579_v24 = vmul.f32 %v4433_v43, %v4433_v43  ;;  %vm1899_vm12 = vmor %vm1897_vm11, %vm1898_vm10  ;;  %vm1987_vm14 = vweird.f32 %v1733_v20 }
 0x4a5   :  { %v1890_v60 = vsel %vm1889_vm9, %v2658_v26, %v1886_v5  ;;  %v1893_v25 = vmul.f32 %v2660_v18, %v1892_v33 }
 0x4a6   :  { %v2075_v30 = vmul.f32 %v1890_v60, %v4152_v63  ;;  %v1671_v31 = vsel %vm292_vm2, %v1579_v24, 0.0  ;;  %v1658_v51 = vpop.xlane.xlu2 %1657 }
 0x4a7   :  { %v1894_v11 = vmul.f32 0.5, %v1893_v25  ;;  %1672 = vadd.xlane.f32.xlu2 %v1671_v31  ;;  %v1631_v3 = vpop.xlane.xlu0 %1630  ;;  %v1702_v19 = vmul.f32 %v1658_v51, %v2911_v58 }
 0x4a8   :  { %v2110_v52 = vmul.f32 %v3936_v1, %v2075_v30  ;;  %v1693_v56 = vmul.f32 %v1631_v3, %v2911_v58  ;;  %v1634_v27 = vpop.xlane.xlu1 %1633 }
 0x4a9   :  { %v1895_v57 = vsub.f32 1.5, %v1894_v11  ;;  %v2662_v44 = vpop.eup %2661  ;;  %v1694_v2 = vmul.f32 %v1634_v27, %v2911_v58  ;;  %v4446_v1 = vadd.f32 1e-05, %v1702_v19 }
 0x4aa   :  { %v2145_v34 = vadd.f32 %v3950_v46, %v2110_v52  ;;  %v4443_v13 = vadd.f32 1e-05, %v1693_v56  ;;  %v1982_v55 = vmul.f32 %v2662_v44, %v1733_v20  ;;  %vm1988_vm13 = vweird.f32 %v2662_v44 }
 0x4ab   :  { %v1896_v63 = vmul.f32 %v2660_v18, %v1895_v57  ;;  %v4449_v45 = vadd.f32 1e-05, %v1694_v2  ;;  %vm1989_vm15 = vmor %vm1987_vm14, %vm1988_vm13  ;;  %vm1997_vm1 = vweird.f32 %v4446_v1 }
 0x4ac   :  { %2663 = vrsqrt.f32 %v4443_v13  ;;  %v2177_v47 = vmax.f32 %v2145_v34, 0.0  ;;  %v1983_v62 = vmul.f32 %v2662_v44, %v1982_v55  ;;  %vm1907_vm0 = vweird.f32 %v4443_v13 }
 0x4ad   :  { %v1900_v21 = vsel %vm1899_vm12, %v2660_v18, %v1896_v63  ;;  %2665 = vrsqrt.f32 %v4446_v1  ;;  %vm1917_vm8 = vweird.f32 %v4449_v45 }
 0x4ae   :  { %v2337_v46 = vpop.f32.mrf.mxu2  ;;  %2527 = vmatmul.msk.f32.gmra.mxu2 %vm292_vm2, %v2177_v47  ;;  %v2076_v16 = vmul.f32 %v1900_v21, %v4163_v17  ;;  %v1984_v42 = vmul.f32 0.5, %v1983_v62  ;;  %2667 = vrsqrt.f32 %v4449_v45 }
 0x4af   :  { %v2338_v10 = vadd.f32 %v4190_v4, %v2337_v46  ;;  %v1460_v38 = vpop.xlane.xlu0 %1459 }
 0x4b0   :  { %v1508_v36 = vmul.f32 %v1460_v38, %v2911_v58  ;;  %v2111_v26 = vmul.f32 %v4464_v23, %v2076_v16  ;;  %v1985_v59 = vsub.f32 1.5, %v1984_v42  ;;  %v1637_v17 = vpop.xlane.xlu2 %1636  ;;  %v1484_v53 = vpop.xlane.xlu1 %1483 }
 0x4b1   :  { %2419 = vst.msk [vmem:[%s4894_s11 + $0x38] sm:$0xff] %vm292_vm2, %v2338_v10  ;;  %v1695_v35 = vmul.f32 %v1637_v17, %v2911_v58  ;;  %v1516_v18 = vmul.f32 %v1484_v53, %v2911_v58 }
 0x4b2   :  { %v4467_v14 = vpop.eup %2663  ;;  %v4471_v54 = vsub.f32 %v4269_v48, %v1508_v36  ;;  %v2146_v29 = vadd.f32 %v4476_v7, %v2111_v26  ;;  %v1986_v12 = vmul.f32 %v2662_v44, %v1985_v59 }
 0x4b3   :  { %v1902_v40 = vmul.f32 %v4467_v14, %v4443_v13  ;;  %v4482_v5 = vpop.eup %2665  ;;  %v4485_v48 = vadd.f32 1e-05, %v1695_v35  ;;  %vm1908_vm3 = vweird.f32 %v4467_v14  ;;  %v4500_v3 = vsub.f32 %v4277_v28, %v1516_v18 }
 0x4b4   :  { %v2178_v33 = vmax.f32 %v2146_v29, 0.0  ;;  %v4487_v60 = vpop.eup %2667  ;;  %v1990_v24 = vsel %vm1989_vm15, %v2662_v44, %v1986_v12  ;;  %v1992_v25 = vmul.f32 %v4482_v5, %v4446_v1  ;;  %v1572_v30 = vmul.f32 %v4471_v54, %v4471_v54  ;;  %vm4529_vm6 = vmor %vm1907_vm0, %vm1908_vm3 }
 0x4b5   :  { %v1903_v20 = vmul.f32 %v4467_v14, %v1902_v40  ;;  %v2085_v31 = vmul.f32 %v1990_v24, %v4185_v61  ;;  %v1912_v11 = vmul.f32 %v4487_v60, %v4449_v45  ;;  %vm1998_vm4 = vweird.f32 %v4482_v5 }
 0x4b6   :  { %2528 = vmatmul.msk.f32.gmra.mxu2 %vm292_vm2, %v2178_v33  ;;  %v1993_v52 = vmul.f32 %v4482_v5, %v1992_v25  ;;  %2669 = vrsqrt.f32 %v4485_v48  ;;  %v2340_v56 = vpop.f32.mrf.mxu2  ;;  %v1580_v28 = vmul.f32 %v4500_v3, %v4500_v3  ;;  %v1650_v55 = vsel %vm292_vm2, %v1572_v30, 0.0  ;;  %vm1999_vm7 = vmor %vm1997_vm1, %vm1998_vm4 }
 0x4b7   :  { %v1904_v51 = vmul.f32 0.5, %v1903_v20  ;;  %v1661_v57 = vpop.xlane.xlu0 %1660  ;;  %v2120_v61 = vmul.f32 %v4464_v23, %v2085_v31  ;;  %v1913_v19 = vmul.f32 %v4487_v60, %v1912_v11  ;;  %v2341_v34 = vadd.f32 %v4190_v4, %v2340_v56  ;;  %1651 = vadd.xlane.f32.xlu0 %v1650_v55 }
 0x4b8   :  { %v1994_v44 = vmul.f32 0.5, %v1993_v52  ;;  %v1664_v63 = vpop.xlane.xlu2 %1663  ;;  %v1703_v2 = vmul.f32 %v1661_v57, %v2911_v58  ;;  %v1640_v21 = vpop.xlane.xlu1 %1639  ;;  %v1674_v62 = vsel %vm292_vm2, %v1580_v28, 0.0  ;;  %vm1918_vm5 = vweird.f32 %v4487_v60 }
 0x4b9   :  { %v1905_v27 = vsub.f32 1.5, %v1904_v51  ;;  %v1914_v47 = vmul.f32 0.5, %v1913_v19  ;;  %2420 = vst.msk [vmem:[%s4894_s11 + $0x40] sm:$0xff] %vm292_vm2, %v2341_v34  ;;  %v1704_v46 = vmul.f32 %v1664_v63, %v2911_v58  ;;  %v2155_v10 = vadd.f32 %v4476_v7, %v2120_v61  ;;  %1675 = vadd.xlane.f32.xlu1 %v1674_v62  ;;  %vm4558_vm9 = vmor %vm1917_vm8, %vm1918_vm5 }
 0x4ba   :  { %v1995_v16 = vsub.f32 1.5, %v1994_v44  ;;  %v1696_v38 = vmul.f32 %v1640_v21, %v2911_v58  ;;  %v4522_v36 = vadd.f32 1e-05, %v1703_v2  ;;  %vm1927_vm11 = vweird.f32 %v4485_v48 }
 0x4bb   :  { %v1906_v42 = vmul.f32 %v4467_v14, %v1905_v27  ;;  %v1915_v26 = vsub.f32 1.5, %v1914_v47  ;;  %v4533_v17 = vadd.f32 1e-05, %v1704_v46  ;;  %v2187_v53 = vmax.f32 %v2155_v10, 0.0 }
 0x4bc   :  { %v4535_v35 = vpop.eup %2669  ;;  %v1996_v29 = vmul.f32 %v4482_v5, %v1995_v16  ;;  %v4541_v40 = vadd.f32 1e-05, %v1696_v38  ;;  %2671 = vrsqrt.f32 %v4522_v36  ;;  %vm2007_vm12 = vweird.f32 %v4522_v36 }
 0x4bd   :  { %v1910_v12 = vsel %vm4529_vm6, %v4467_v14, %v1906_v42  ;;  %v1916_v13 = vmul.f32 %v4487_v60, %v1915_v26  ;;  %v1922_v18 = vmul.f32 %v4535_v35, %v4485_v48  ;;  %2673 = vrsqrt.f32 %v4533_v17  ;;  %2537 = vmatmul.msk.f32.vlgmr.msra.gmra.mxu3 %vm292_vm2, %v2187_v53 }
 0x4be   :  { %v2000_v14 = vsel %vm1999_vm7, %v4482_v5, %v1996_v29  ;;  %2675 = vrsqrt.f32 %v4541_v40  ;;  %v2077_v24 = vmul.f32 %v1910_v12, %v4203_v6  ;;  %vm1928_vm10 = vweird.f32 %v4535_v35 }
 0x4bf   :  { %v1923_v1 = vmul.f32 %v4535_v35, %v1922_v18  ;;  %v1920_v25 = vsel %vm4558_vm9, %v4487_v60, %v1916_v13  ;;  %v2343_v20 = vpop.f32.mrf.mxu2  ;;  %v2086_v5 = vmul.f32 %v2000_v14, %v4221_v49  ;;  %vm4604_vm13 = vmor %vm1927_vm11, %vm1928_vm10  ;;  %vm2017_vm3 = vweird.f32 %v4533_v17 }
 0x4c0   :  { %v1643_v45 = vpop.xlane.xlu0 %1642  ;;  %v2344_v31 = vadd.f32 %v4190_v4, %v2343_v20  ;;  %v1667_v11 = vpop.xlane.xlu1 %1666  ;;  %v2112_v51 = vmul.f32 %v4464_v23, %v2077_v24  ;;  %v2078_v19 = vmul.f32 %v1920_v25, %v4231_v0  ;;  %vm1937_vm4 = vweird.f32 %v4541_v40 }
 0x4c1   :  { %v1924_v30 = vmul.f32 0.5, %v1923_v1  ;;  %v1697_v52 = vmul.f32 %v1643_v45, %v2911_v58  ;;  %v1705_v6 = vmul.f32 %v1667_v11, %v2911_v58  ;;  %v2121_v63 = vmul.f32 %v4464_v23, %v2086_v5 }
 0x4c2   :  { %v4571_v56 = vpop.eup %2671  ;;  %2421 = vst.msk [vmem:[%s4894_s11 + $0x48] sm:$0xff] %vm292_vm2, %v2344_v31  ;;  %v2147_v27 = vadd.f32 %v4476_v7, %v2112_v51  ;;  %v2113_v10 = vmul.f32 %v4464_v23, %v2078_v19 }
 0x4c3   :  { %v4575_v57 = vpop.eup %2673  ;;  %v1925_v60 = vsub.f32 1.5, %v1924_v30  ;;  %v2002_v49 = vmul.f32 %v4571_v56, %v4522_v36  ;;  %v4583_v61 = vadd.f32 1e-05, %v1697_v52  ;;  %v4590_v44 = vadd.f32 1e-05, %v1705_v6 }
 0x4c4   :  { %v4586_v34 = vpop.eup %2675  ;;  %v2012_v28 = vmul.f32 %v4575_v57, %v4533_v17  ;;  %v2179_v38 = vmax.f32 %v2147_v27, 0.0  ;;  %v2156_v26 = vadd.f32 %v4476_v7, %v2121_v63  ;;  %vm2008_vm14 = vweird.f32 %v4571_v56 }
 0x4c5   :  { %v1926_v55 = vmul.f32 %v4535_v35, %v1925_v60  ;;  %v1932_v2 = vmul.f32 %v4586_v34, %v4541_v40  ;;  %v2003_v47 = vmul.f32 %v4571_v56, %v2002_v49  ;;  %2677 = vrsqrt.f32 %v4590_v44  ;;  %vm4644_vm1 = vmor %vm2007_vm12, %vm2008_vm14 }
 0x4c6   :  { %v2013_v0 = vmul.f32 %v4575_v57, %v2012_v28  ;;  %2679 = vrsqrt.f32 %v4583_v61  ;;  %2529 = vmatmul.msk.f32.gmra.mxu2 %vm292_vm2, %v2179_v38  ;;  %v2188_v33 = vmax.f32 %v2156_v26, 0.0  ;;  %v2148_v20 = vadd.f32 %v4476_v7, %v2113_v10 }
 0x4c7   :  { %v1933_v62 = vmul.f32 %v4586_v34, %v1932_v2  ;;  %v2004_v46 = vmul.f32 0.5, %v2003_v47  ;;  %v1930_v48 = vsel %vm4604_vm13, %v4535_v35, %v1926_v55  ;;  %v2346_v42 = vpop.f32.mrf.mxu2  ;;  %vm2018_vm15 = vweird.f32 %v4575_v57 }
 0x4c8   :  { %v2014_v16 = vmul.f32 0.5, %v2013_v0  ;;  %v1646_v59 = vpop.xlane.xlu2 %1645  ;;  %v2347_v12 = vadd.f32 %v4190_v4, %v2346_v42  ;;  %v1670_v18 = vpop.xlane.xlu0 %1669  ;;  %2538 = vmatmul.msk.f32.gmra.mxu3 %vm292_vm2, %v2188_v33  ;;  %v2079_v31 = vmul.f32 %v1930_v48, %v4289_v8  ;;  %vm1938_vm0 = vweird.f32 %v4586_v34  ;;  %vm4660_vm5 = vmor %vm2017_vm3, %vm2018_vm15 }
 0x4c9   :  { %v1934_v53 = vmul.f32 0.5, %v1933_v62  ;;  %v2005_v29 = vsub.f32 1.5, %v2004_v46  ;;  %v1698_v13 = vmul.f32 %v1646_v59, %v2911_v58  ;;  %v1706_v35 = vmul.f32 %v1670_v18, %v2911_v58  ;;  %vm4666_vm6 = vmor %vm1937_vm4, %vm1938_vm0 }
 0x4ca   :  { %v2015_v14 = vsub.f32 1.5, %v2014_v16  ;;  %2422 = vst.msk [vmem:[%s4894_s11 + $0x50] sm:$0xff] %vm292_vm2, %v2347_v12  ;;  %v2180_v19 = vmax.f32 %v2148_v20, 0.0  ;;  %v2114_v55 = vmul.f32 %v4464_v23, %v2079_v31  ;;  %vm2027_vm9 = vweird.f32 %v4590_v44 }
 0x4cb   :  { %v1935_v1 = vsub.f32 1.5, %v1934_v53  ;;  %v2006_v24 = vmul.f32 %v4571_v56, %v2005_v29  ;;  %v4625_v25 = vadd.f32 1e-05, %v1698_v13  ;;  %v4628_v45 = vpop.eup %2677  ;;  %v4633_v30 = vadd.f32 1e-05, %v1706_v35 }
 0x4cc   :  { %v2016_v5 = vmul.f32 %v4575_v57, %v2015_v14  ;;  %v4636_v11 = vpop.eup %2679  ;;  %v2022_v6 = vmul.f32 %v4628_v45, %v4590_v44  ;;  %vm2028_vm7 = vweird.f32 %v4628_v45  ;;  %v2149_v16 = vadd.f32 %v4476_v7, %v2114_v55 }
 0x4cd   :  { %v1936_v52 = vmul.f32 %v4586_v34, %v1935_v1  ;;  %v2010_v8 = vsel %vm4644_vm1, %v4571_v56, %v2006_v24  ;;  %v1942_v60 = vmul.f32 %v4636_v11, %v4583_v61  ;;  %2681 = vrsqrt.f32 %v4625_v25  ;;  %vm4706_vm10 = vmor %vm2027_vm9, %vm2028_vm7 }
 0x4ce   :  { %v1649_v49 = vpop.xlane.xlu1 %1648  ;;  %v2023_v17 = vmul.f32 %v4628_v45, %v2022_v6  ;;  %2683 = vrsqrt.f32 %v4633_v30  ;;  %v2020_v28 = vsel %vm4660_vm5, %v4575_v57, %v2016_v5  ;;  %v2087_v21 = vmul.f32 %v2010_v8, %v4301_v9  ;;  %2530 = vmatmul.msk.f32.gmra.mxu2 %vm292_vm2, %v2180_v19 }
 0x4cf   :  { %v1943_v40 = vmul.f32 %v4636_v11, %v1942_v60  ;;  %v2349_v27 = vpop.f32.mrf.mxu2  ;;  %v1699_v63 = vmul.f32 %v1649_v49, %v2911_v58  ;;  %v1940_v2 = vsel %vm4666_vm6, %v4586_v34, %v1936_v52  ;;  %v2088_v10 = vmul.f32 %v2020_v28, %v4323_v22 }
 0x4d0   :  { %v2024_v47 = vmul.f32 0.5, %v2023_v17  ;;  %v2350_v0 = vadd.f32 %v4190_v4, %v2349_v27  ;;  %v2122_v34 = vmul.f32 %v4464_v23, %v2087_v21  ;;  %v2080_v42 = vmul.f32 %v1940_v2, %v4335_v41 }
 0x4d1   :  { %v1944_v62 = vmul.f32 0.5, %v1943_v40  ;;  %v4682_v57 = vadd.f32 1e-05, %v1699_v63  ;;  %vm1948_vm8 = vweird.f32 %v4636_v11  ;;  %vm1947_vm11 = vweird.f32 %v4583_v61 }
 0x4d2   :  { %v2025_v46 = vsub.f32 1.5, %v2024_v47  ;;  %2423 = vst.msk [vmem:[%s4894_s11 + $0x58] sm:$0xff] %vm292_vm2, %v2350_v0  ;;  %v2157_v53 = vadd.f32 %v4476_v7, %v2122_v34  ;;  %v2123_v18 = vmul.f32 %v4464_v23, %v2088_v10  ;;  %vm4716_vm12 = vmor %vm1947_vm11, %vm1948_vm8  ;;  %v2181_v1 = vmax.f32 %v2149_v16, 0.0 }
 0x4d3   :  { %v4691_v48 = vpop.eup %2681  ;;  %v1945_v9 = vsub.f32 1.5, %v1944_v62  ;;  %2685 = vrsqrt.f32 %v4682_v57  ;;  %v2115_v24 = vmul.f32 %v4464_v23, %v2080_v42  ;;  %vm2037_vm15 = vweird.f32 %v4633_v30 }
 0x4d4   :  { %v2684_v38 = vpop.eup %2683  ;;  %v2026_v26 = vmul.f32 %v4628_v45, %v2025_v46  ;;  %v1952_v59 = vmul.f32 %v4691_v48, %v4625_v25  ;;  %v2189_v13 = vmax.f32 %v2157_v53, 0.0  ;;  %v2158_v6 = vadd.f32 %v4476_v7, %v2123_v18 }
 0x4d5   :  { %v1946_v22 = vmul.f32 %v4636_v11, %v1945_v9  ;;  %v2032_v29 = vmul.f32 %v2684_v38, %v4633_v30  ;;  %vm2038_vm13 = vweird.f32 %v2684_v38  ;;  %v2150_v60 = vadd.f32 %v4476_v7, %v2115_v24 }
 0x4d6   :  { %v1953_v12 = vmul.f32 %v4691_v48, %v1952_v59  ;;  %v2030_v44 = vsel %vm4706_vm10, %v4628_v45, %v2026_v26  ;;  %2539 = vmatmul.msk.f32.gmra.mxu3 %vm292_vm2, %v2189_v13  ;;  %2531 = vmatmul.msk.f32.gmra.mxu2 %vm292_vm2, %v2181_v1  ;;  %vm1958_vm14 = vweird.f32 %v4691_v48  ;;  %vm1957_vm0 = vweird.f32 %v4625_v25  ;;  %vm4740_vm1 = vmor %vm2037_vm15, %vm2038_vm13 }
 0x4d7   :  { %v2033_v33 = vmul.f32 %v2684_v38, %v2032_v29  ;;  %v2352_v35 = vpop.f32.mrf.mxu2  ;;  %v1950_v61 = vsel %vm4716_vm12, %v4636_v11, %v1946_v22  ;;  %v2089_v11 = vmul.f32 %v2030_v44, %v4360_v50  ;;  %v2190_v28 = vmax.f32 %v2158_v6, 0.0  ;;  %vm1959_vm3 = vmor %vm1957_vm0, %vm1958_vm14 }
 0x4d8   :  { %v1954_v20 = vmul.f32 0.5, %v1953_v12  ;;  %v2353_v5 = vadd.f32 %v4190_v4, %v2352_v35  ;;  %v2081_v49 = vmul.f32 %v1950_v61, %v4369_v15  ;;  %v2182_v63 = vmax.f32 %v2150_v60, 0.0 }
 0x4d9   :  { %v2686_v31 = vpop.eup %2685  ;;  %v2034_v45 = vmul.f32 0.5, %v2033_v33  ;;  %v2124_v40 = vmul.f32 %v4464_v23, %v2089_v11  ;;  %vm1967_vm5 = vweird.f32 %v4682_v57 }
 0x4da   :  { %v1955_v52 = vsub.f32 1.5, %v1954_v20  ;;  %v1962_v51 = vmul.f32 %v2686_v31, %v4682_v57  ;;  %2424 = vst.msk [vmem:[%s4894_s11 + $0x60] sm:$0xff] %vm292_vm2, %v2353_v5  ;;  %v2116_v55 = vmul.f32 %v4464_v23, %v2081_v49  ;;  %vm1968_vm4 = vweird.f32 %v2686_v31 }
 0x4db   :  { %v2035_v8 = vsub.f32 1.5, %v2034_v45  ;;  %v2159_v47 = vadd.f32 %v4476_v7, %v2124_v40  ;;  %vm1969_vm6 = vmor %vm1967_vm5, %vm1968_vm4  ;;  %v4780_v45 = vld [vmem:[%s4893_s10] ss:$0 sm:$0xff] }
 0x4dc   :  { %v1956_v36 = vmul.f32 %v4691_v48, %v1955_v52  ;;  %v1963_v17 = vmul.f32 %v2686_v31, %v1962_v51  ;;  %v2151_v21 = vadd.f32 %v4476_v7, %v2116_v55 }
 0x4dd   :  { %v2036_v19 = vmul.f32 %v2684_v38, %v2035_v8 }
 0x4de   :  { %v1964_v50 = vmul.f32 0.5, %v1963_v17  ;;  %v1960_v30 = vsel %vm1959_vm3, %v4691_v48, %v1956_v36  ;;  %2540 = vmatmul.msk.f32.gmra.mxu3 %vm292_vm2, %v2190_v28  ;;  %2532 = vmatmul.msk.f32.gmra.mxu2 %vm292_vm2, %v2182_v63  ;;  %v2183_v10 = vmax.f32 %v2151_v21, 0.0 }
 0x4df   :  { %v2040_v15 = vsel %vm4740_vm1, %v2684_v38, %v2036_v19  ;;  %v2355_v27 = vpop.f32.mrf.mxu2  ;;  %v2082_v62 = vmul.f32 %v1960_v30, %v4399_v39 }
 0x4e0   :  { %v1965_v2 = vsub.f32 1.5, %v1964_v50  ;;  %v2356_v25 = vadd.f32 %v4190_v4, %v2355_v27  ;;  %v2090_v0 = vmul.f32 %v2040_v15, %v4390_v37  ;;  %v2191_v4 = vmax.f32 %v2159_v47, 0.0 }
 0x4e1   :  { %v2117_v48 = vmul.f32 %v4464_v23, %v2082_v62 }
 0x4e2   :  { %2425 = vst.msk [vmem:[%s4894_s11 + $0x68] sm:$0xff] %vm292_vm2, %v2356_v25  ;;  %v1966_v46 = vmul.f32 %v2686_v31, %v1965_v2  ;;  %v2125_v34 = vmul.f32 %v4464_v23, %v2090_v0 }
 0x4e3   :  { %v2152_v39 = vadd.f32 %v4476_v7, %v2117_v48 }
 0x4e4   :  { %v1970_v9 = vsel %vm1969_vm6, %v2686_v31, %v1966_v46  ;;  %v2160_v37 = vadd.f32 %v4476_v7, %v2125_v34 }
 0x4e5   :  { %v2083_v16 = vmul.f32 %v1970_v9, %v4412_v32  ;;  %v2184_v57 = vmax.f32 %v2152_v39, 0.0 }
 0x4e6   :  { %2541 = vmatmul.msk.f32.gmra.mxu3 %vm292_vm2, %v2191_v4  ;;  %2533 = vmatmul.msk.f32.gmra.mxu2 %vm292_vm2, %v2183_v10  ;;  %v2192_v42 = vmax.f32 %v2160_v37, 0.0 }
 0x4e7   :  { %v2118_v38 = vmul.f32 %v4464_v23, %v2083_v16 }
 0x4e9   :  { %v2153_v26 = vadd.f32 %v4476_v7, %v2118_v38 }
 0x4eb   :  { %v2185_v59 = vmax.f32 %v2153_v26, 0.0 }
 0x4ee   :  { %2542 = vmatmul.msk.f32.gmra.mxu3 %vm292_vm2, %v2192_v42  ;;  %2534 = vmatmul.msk.f32.gmra.mxu2 %vm292_vm2, %v2184_v57 }
 0x4f6   :  { %2535 = vmatmul.msk.f32.gmra.mxu2 %vm292_vm2, %v2185_v59 }
 0x51a   :  { %v1673_v53 = vpop.xlane.xlu2 %1672 }
 0x51b   :  { %v1707_v22 = vmul.f32 %v1673_v53, %v2911_v58 }
 0x51d   :  { %v1739_v29 = vadd.f32 1e-05, %v1707_v22 }
 0x51f   :  { %2687 = vrsqrt.f32 %v1739_v29  ;;  %vm2047_vm8 = vweird.f32 %v1739_v29 }
 0x525   :  { %v2688_v41 = vpop.eup %2687 }
 0x526   :  { %v2042_v32 = vmul.f32 %v2688_v41, %v1739_v29  ;;  %vm2048_vm7 = vweird.f32 %v2688_v41 }
 0x527   :  { %vm2049_vm9 = vmor %vm2047_vm8, %vm2048_vm7 }
 0x528   :  { %v2043_v12 = vmul.f32 %v2688_v41, %v2042_v32 }
 0x52a   :  { %v2044_v13 = vmul.f32 0.5, %v2043_v12  ;;  %v1652_v44 = vpop.xlane.xlu0 %1651 }
 0x52b   :  { %v1700_v35 = vmul.f32 %v1652_v44, %v2911_v58 }
 0x52c   :  { %v2045_v18 = vsub.f32 1.5, %v2044_v13  ;;  %v1676_v33 = vpop.xlane.xlu1 %1675 }
 0x52d   :  { %v1708_v1 = vmul.f32 %v1676_v33, %v2911_v58  ;;  %v1732_v61 = vadd.f32 1e-05, %v1700_v35 }
 0x52e   :  { %v2046_v14 = vmul.f32 %v2688_v41, %v2045_v18 }
 0x52f   :  { %v1740_v20 = vadd.f32 1e-05, %v1708_v1  ;;  %2689 = vrsqrt.f32 %v1732_v61  ;;  %vm1977_vm12 = vweird.f32 %v1732_v61 }
 0x530   :  { %v2050_v24 = vsel %vm2049_vm9, %v2688_v41, %v2046_v14 }
 0x531   :  { %v2358_v5 = vpop.f32.mrf.mxu2  ;;  %v2091_v31 = vmul.f32 %v2050_v24, %v4433_v43  ;;  %2691 = vrsqrt.f32 %v1740_v20  ;;  %vm2057_vm13 = vweird.f32 %v1740_v20 }
 0x532   :  { %v2359_v52 = vadd.f32 %v4780_v45, %v2358_v5 }
 0x533   :  { %v2126_v51 = vmul.f32 %v4464_v23, %v2091_v31 }
 0x534   :  { %2426 = vst.msk [vmem:[%s4894_s11 + $0x70] sm:$0xff] %vm292_vm2, %v2359_v52 }
 0x535   :  { %v2161_v58 = vadd.f32 %v4476_v7, %v2126_v51  ;;  %v2690_v43 = vpop.eup %2689 }
 0x536   :  { %v1972_v8 = vmul.f32 %v2690_v43, %v1732_v61  ;;  %vm1978_vm10 = vweird.f32 %v2690_v43 }
 0x537   :  { %v2193_v6 = vmax.f32 %v2161_v58, 0.0  ;;  %v2692_v11 = vpop.eup %2691  ;;  %vm1979_vm14 = vmor %vm1977_vm12, %vm1978_vm10 }
 0x538   :  { %v2052_v49 = vmul.f32 %v2692_v11, %v1740_v20  ;;  %v1973_v17 = vmul.f32 %v2690_v43, %v1972_v8  ;;  %vm2058_vm11 = vweird.f32 %v2692_v11 }
 0x539   :  { %v2361_v60 = vpop.f32.mrf.mxu2  ;;  %2543 = vmatmul.msk.f32.gmra.mxu3 %vm292_vm2, %v2193_v6  ;;  %vm2059_vm15 = vmor %vm2057_vm13, %vm2058_vm11 }
 0x53a   :  { %v2362_v36 = vadd.f32 %v4780_v45, %v2361_v60  ;;  %v2053_v19 = vmul.f32 %v2692_v11, %v2052_v49  ;;  %v1974_v56 = vmul.f32 0.5, %v1973_v17 }
 0x53c   :  { %2427 = vst.msk [vmem:[%s4894_s11 + $0x78] sm:$0xff] %vm292_vm2, %v2362_v36  ;;  %v2054_v50 = vmul.f32 0.5, %v2053_v19  ;;  %v1975_v28 = vsub.f32 1.5, %v1974_v56 }
 0x53e   :  { %v2055_v40 = vsub.f32 1.5, %v2054_v50  ;;  %v1976_v15 = vmul.f32 %v2690_v43, %v1975_v28 }
 0x540   :  { %v2388_v27 = vpop.f32.mrf.mxu3  ;;  %v2056_v63 = vmul.f32 %v2692_v11, %v2055_v40  ;;  %v1980_v30 = vsel %vm1979_vm14, %v2690_v43, %v1976_v15 }
 0x541   :  { %v2389_v55 = vadd.f32 %v4780_v45, %v2388_v27  ;;  %v2084_v25 = vmul.f32 %v1980_v30, %v4471_v54 }
 0x542   :  { %v2060_v2 = vsel %vm2059_vm15, %v2692_v11, %v2056_v63 }
 0x543   :  { %2436 = vst.msk [vmem:[%s4894_s11 + $0xc0] sm:$0xff] %vm292_vm2, %v2389_v55  ;;  %v2092_v47 = vmul.f32 %v2060_v2, %v4500_v3  ;;  %v2119_v0 = vmul.f32 %v4464_v23, %v2084_v25 }
 0x545   :  { %v2127_v21 = vmul.f32 %v4464_v23, %v2092_v47  ;;  %v2154_v62 = vadd.f32 %v4476_v7, %v2119_v0 }
 0x547   :  { %v2162_v46 = vadd.f32 %v4476_v7, %v2127_v21  ;;  %v2186_v4 = vmax.f32 %v2154_v62, 0.0 }
 0x549   :  { %v2194_v34 = vmax.f32 %v2162_v46, 0.0  ;;  %2536 = vmatmul.msk.f32.gmra.mxu2 %vm292_vm2, %v2186_v4  ;;  %v2364_v10 = vpop.f32.mrf.mxu2 }
 0x54a   :  { %v2365_v48 = vadd.f32 %v4780_v45, %v2364_v10 }
 0x54b   :  { %2544 = vmatmul.msk.f32.gmra.mxu3 %vm292_vm2, %v2194_v34  ;;  %v2391_v54 = vpop.f32.mrf.mxu3 }
 0x54c   :  { %2428 = vst.msk [vmem:[%s4894_s11 + $0x80] sm:$0xff] %vm292_vm2, %v2365_v48  ;;  %v2392_v23 = vadd.f32 %v4780_v45, %v2391_v54 }
 0x54e   :  { %2437 = vst.msk [vmem:[%s4894_s11 + $0xc8] sm:$0xff] %vm292_vm2, %v2392_v23 }
 0x551   :  { %v2367_v7 = vpop.f32.mrf.mxu2 }
 0x552   :  { %v2368_v3 = vadd.f32 %v4780_v45, %v2367_v7 }
 0x554   :  { %2429 = vst.msk [vmem:[%s4894_s11 + $0x88] sm:$0xff] %vm292_vm2, %v2368_v3 }
 0x559   :  { %v2394_v9 = vpop.f32.mrf.mxu3  ;;  %v2370_v37 = vpop.f32.mrf.mxu2 }
 0x55a   :  { %v2395_v39 = vadd.f32 %v4780_v45, %v2394_v9  ;;  %v2371_v16 = vadd.f32 %v4780_v45, %v2370_v37 }
 0x55c   :  { %2438 = vst.msk [vmem:[%s4894_s11 + $0xd0] sm:$0xff] %vm292_vm2, %v2395_v39 }
 0x55d   :  { %2430 = vst.msk [vmem:[%s4894_s11 + $0x90] sm:$0xff] %vm292_vm2, %v2371_v16 }
 0x561   :  { %v2397_v42 = vpop.f32.mrf.mxu3  ;;  %v2373_v57 = vpop.f32.mrf.mxu2 }
 0x562   :  { %v2398_v38 = vadd.f32 %v4780_v45, %v2397_v42  ;;  %v2374_v26 = vadd.f32 %v4780_v45, %v2373_v57 }
 0x564   :  { %2439 = vst.msk [vmem:[%s4894_s11 + $0xd8] sm:$0xff] %vm292_vm2, %v2398_v38 }
 0x565   :  { %2431 = vst.msk [vmem:[%s4894_s11 + $0x98] sm:$0xff] %vm292_vm2, %v2374_v26 }
 0x569   :  { %v2400_v59 = vpop.f32.mrf.mxu3  ;;  %v2376_v53 = vpop.f32.mrf.mxu2 }
 0x56a   :  { %v2401_v22 = vadd.f32 %v4780_v45, %v2400_v59  ;;  %v2377_v29 = vadd.f32 %v4780_v45, %v2376_v53 }
 0x56c   :  { %2440 = vst.msk [vmem:[%s4894_s11 + $0xe0] sm:$0xff] %vm292_vm2, %v2401_v22 }
 0x56d   :  { %2432 = vst.msk [vmem:[%s4894_s11 + $0xa0] sm:$0xff] %vm292_vm2, %v2377_v29 }
 0x571   :  { %v2403_v41 = vpop.f32.mrf.mxu3  ;;  %v2379_v32 = vpop.f32.mrf.mxu2 }
 0x572   :  { %v2404_v12 = vadd.f32 %v4780_v45, %v2403_v41  ;;  %v2380_v13 = vadd.f32 %v4780_v45, %v2379_v32 }
 0x574   :  { %2441 = vst.msk [vmem:[%s4894_s11 + $0xe8] sm:$0xff] %vm292_vm2, %v2404_v12 }
 0x575   :  { %2433 = vst.msk [vmem:[%s4894_s11 + $0xa8] sm:$0xff] %vm292_vm2, %v2380_v13 }
 0x579   :  { %v2382_v18 = vpop.f32.mrf.mxu2 }
 0x57a   :  { %v2383_v44 = vadd.f32 %v4780_v45, %v2382_v18 }
 0x57c   :  { %2434 = vst.msk [vmem:[%s4894_s11 + $0xb0] sm:$0xff] %vm292_vm2, %v2383_v44 }
 0x5bc   :  { %v2406_v14 = vpop.f32.mrf.mxu3 }
 0x5bd   :  { %v2407_v33 = vadd.f32 %v4780_v45, %v2406_v14 }
 0x5bf   :  { %2442 = vst.msk [vmem:[%s4894_s11 + $0xf0] sm:$0xff] %vm292_vm2, %v2407_v33 }
 0x5cc   :  { %v2385_v35 = vpop.f32.mrf.mxu2 }
 0x5cd   :  { %v2386_v1 = vadd.f32 %v4780_v45, %v2385_v35 }
 0x5ce   :  { %v2409_v24 = vpop.f32.mrf.mxu3 }
 0x5cf   :  { %v2410_v61 = vadd.f32 %v4780_v45, %v2409_v24  ;;  %2435 = vst.msk [vmem:[%s4894_s11 + $0xb8] sm:$0xff] %vm292_vm2, %v2386_v1 }
 0x5d1   :  { %2443 = vst.msk [vmem:[%s4894_s11 + $0xf8] sm:$0xff] %vm292_vm2, %v2410_v61 }

</bundles_post_ra>
